<compile_context>
chip_gen: v5e
topology: v5e:2x2
jax: 0.10.0
libtpu: 0.0.40
codegen_flags: <defaults>
</compile_context>

<pallas_src>
import jax
import jax.numpy as jnp
from jax.experimental import pallas as pl
from jax.experimental.pallas import tpu as pltpu

IN_DIM = 256 * 10       # 2560
HID_DIM = 256 * 5       # 1280
NUM_CLASSES = 5
N_PAD = 128             # lane-dense padded class dim
TN = 640                # hidden-dim tile (-> 2 chunks total)
NCORES = 2              # leading 'parallel' axis (v7x dual TensorCore split)
NCHUNKS = HID_DIM // TN
NSTEPS = NCHUNKS // NCORES   # reduction steps per core

assert HID_DIM % TN == 0 and NCHUNKS % NCORES == 0


def _ecg_classifier_kernel(x_ref, w1_ref, b1_ref, w2_ref, out_ref):
    k = pl.program_id(1)

    @pl.when(k == 0)
    def _():
        out_ref[...] = jnp.zeros_like(out_ref)

    # Which hidden chunk this (core, step) pair handles.
    chunk = pl.program_id(0) * pl.num_programs(1) + k

    # First linear chunk: bf16 x bf16 on the MXU, f32 accumulation.
    h = jnp.dot(x_ref[...], w1_ref[...], preferred_element_type=jnp.float32)  # (B, TN)
    h = jnp.maximum(h + b1_ref[pl.ds(chunk, 1), :], 0.0)   # bias + ReLU
    # Dropout is identity in eval mode.

    # Second linear: accumulate this hidden-chunk's contribution directly into
    # the VMEM-resident output block (partial per core; summed outside).
    out_ref[...] += jnp.dot(h.astype(jnp.bfloat16), w2_ref[...],
                            preferred_element_type=jnp.float32)


def prepare_params(w1, b1, w2, b2):
    """One-time parameter prep (do NOT redo per call): bf16 W1/W2, padded class dim."""
    w1_bf = w1.astype(jnp.bfloat16)                                    # (IN_DIM, HID_DIM)
    b1_r = b1.reshape(NCHUNKS, TN).astype(jnp.float32)                 # (NCHUNKS, TN)
    w2_p = jnp.pad(w2, ((0, 0), (0, N_PAD - NUM_CLASSES))).astype(jnp.bfloat16)
    b2_p = jnp.pad(b2, ((0, 0), (0, N_PAD - NUM_CLASSES))).astype(jnp.float32)
    return w1_bf, b1_r, w2_p, b2_p


@jax.jit
def ecg_classifier(x, w1_bf, b1_r, w2_p, b2_p):
    """Fused MLP forward: relu(x @ w1 + b1) @ w2 + b2 (dropout = identity)."""
    B = x.shape[0]
    x_bf = x.astype(jnp.bfloat16)

    parts = pl.pallas_call(
        _ecg_classifier_kernel,
        out_shape=jax.ShapeDtypeStruct((NCORES, B, N_PAD), jnp.float32),
        grid_spec=pltpu.PrefetchScalarGridSpec(
            num_scalar_prefetch=0,
            grid=(NCORES, NSTEPS),
            in_specs=[
                pl.BlockSpec((B, IN_DIM), lambda c, k: (0, 0)),                 # x (resident)
                pl.BlockSpec((IN_DIM, TN), lambda c, k: (0, c * NSTEPS + k)),   # W1 chunk (bf16)
                pl.BlockSpec((NCHUNKS, TN), lambda c, k: (0, 0)),               # b1 (whole, once)
                pl.BlockSpec((TN, N_PAD), lambda c, k: (c * NSTEPS + k, 0)),    # W2 chunk (bf16)
            ],
            out_specs=pl.BlockSpec((None, B, N_PAD), lambda c, k: (c, 0, 0)),   # per-core partial
        ),
        compiler_params=pltpu.CompilerParams(
            # Core-split axis is independent -> 'parallel'; hidden dim is a
            # reduction axis -> 'arbitrary'.
            dimension_semantics=("parallel", "arbitrary"),
        ),
    )(x_bf, w1_bf, b1_r, w2_p)

    out = parts.sum(axis=0) + b2_p      # combine per-core partials + bias (cheap XLA add)
    return out[:, :NUM_CLASSES]


def init_params(key):
    """Deterministic parameter init (matches nn.Linear shapes)."""
    k1, k2, k3, k4 = jax.random.split(key, 4)
    # PyTorch nn.Linear default init: U(-1/sqrt(fan_in), 1/sqrt(fan_in)).
    bound1 = 1.0 / (IN_DIM ** 0.5)
    bound2 = 1.0 / (HID_DIM ** 0.5)
    w1 = jax.random.uniform(k1, (IN_DIM, HID_DIM), jnp.float32, -bound1, bound1)
    b1 = jax.random.uniform(k2, (1, HID_DIM), jnp.float32, -bound1, bound1)
    w2 = jax.random.uniform(k3, (HID_DIM, NUM_CLASSES), jnp.float32, -bound2, bound2)
    b2 = jax.random.uniform(k4, (1, NUM_CLASSES), jnp.float32, -bound2, bound2)
    return w1, b1, w2, b2


if __name__ == "__main__":
    key = jax.random.PRNGKey(0)
    kx, kp = jax.random.split(key)

    B = 8  # small batch; feature dims fixed by the module (256*10 -> 256*5 -> 5)
    x = jax.random.normal(kx, (B, IN_DIM), jnp.float32)
    w1, b1, w2, b2 = init_params(kp)

    params = prepare_params(w1, b1, w2, b2)   # one-time weight prep (bf16 / padded)
    out = ecg_classifier(x, *params)
    out = jax.block_until_ready(out)

    # Pure-JAX reference mirroring the kernel numerics (bf16-rounded operands,
    # f32 accumulation).
    f32 = jnp.float32
    hi = jax.lax.Precision.HIGHEST
    x_r = x.astype(jnp.bfloat16).astype(f32)
    w1_r = w1.astype(jnp.bfloat16).astype(f32)
    w2_r = w2.astype(jnp.bfloat16).astype(f32)
    h_ref = jnp.maximum(jnp.dot(x_r, w1_r, precision=hi) + b1, 0.0)
    ref = jnp.dot(h_ref.astype(jnp.bfloat16).astype(f32), w2_r, precision=hi) + b2

    assert out.shape == (B, NUM_CLASSES)
    assert jnp.allclose(out, ref, atol=2e-2, rtol=2e-2)

    print("KERNEL_OK")
</pallas_src>

<mosaic_0001>
module attributes {stable_mosaic.version = 11 : i64} {
  func.func @_ecg_classifier_kernel(%arg0: i32, %arg1: i32, %arg2: memref<8x2560xbf16, #tpu.memory_space<vmem>>, %arg3: memref<2560x640xbf16, #tpu.memory_space<vmem>>, %arg4: memref<2x640xf32, #tpu.memory_space<vmem>>, %arg5: memref<640x128xbf16, #tpu.memory_space<vmem>>, %arg6: memref<1x8x128xf32, #tpu.memory_space<vmem>>) attributes {dimension_semantics = [#tpu.dimension_semantics<parallel>, #tpu.dimension_semantics<arbitrary>], iteration_bounds = array<i64: 2, 1>, scalar_prefetch = 0 : i64, scratch_operands = 0 : i64, tpu.core_type = #tpu.core_type<tc>, window_params = [{pipeline_mode = #tpu.pipeline_mode<synchronous>, transform_indices = @transform_0, window_bounds = array<i64: 8, 2560>}, {transform_indices = @transform_1, window_bounds = array<i64: 2560, 640>}, {pipeline_mode = #tpu.pipeline_mode<synchronous>, transform_indices = @transform_2, window_bounds = array<i64: 2, 640>}, {transform_indices = @transform_3, window_bounds = array<i64: 640, 128>}, {transform_indices = @transform_4, window_bounds = array<i64: 1, 8, 128>}]} {
    %c0_i32 = arith.constant 0 : i32
    %0 = arith.cmpi eq, %arg1, %c0_i32 : i32
    %1 = arith.extui %0 : i1 to i32
    %c0_i32_0 = arith.constant 0 : i32
    %2 = arith.cmpi ne, %1, %c0_i32_0 : i32
    scf.if %2 {
      %cst_15 = arith.constant 0.000000e+00 : f32
      %23 = vector.broadcast %cst_15 : f32 to vector<8x128xf32>
      %c0_16 = arith.constant 0 : index
      %c0_17 = arith.constant 0 : index
      %c0_18 = arith.constant 0 : index
      %24 = vector.load %arg6[%c0_16, %c0_17, %c0_18] : memref<1x8x128xf32, #tpu.memory_space<vmem>>, vector<1x8x128xf32>
      %25 = vector.shape_cast %24 : vector<1x8x128xf32> to vector<8x128xf32>
      %26 = vector.shape_cast %23 : vector<8x128xf32> to vector<1x8x128xf32>
      tpu.vector_store %arg6[%c0_16, %c0_17, %c0_18], %26 {strides = array<i32>} : memref<1x8x128xf32, #tpu.memory_space<vmem>>, vector<1x8x128xf32>,
    } else {
    }
    %c1_i32 = arith.constant 1 : i32
    %3 = arith.muli %arg0, %c1_i32 : i32
    %4 = arith.addi %3, %arg1 : i32
    %c0 = arith.constant 0 : index
    %c0_1 = arith.constant 0 : index
    %5 = vector.load %arg2[%c0, %c0_1] : memref<8x2560xbf16, #tpu.memory_space<vmem>>, vector<8x2560xbf16>
    %c0_2 = arith.constant 0 : index
    %c0_3 = arith.constant 0 : index
    %6 = vector.load %arg3[%c0_2, %c0_3] : memref<2560x640xbf16, #tpu.memory_space<vmem>>, vector<2560x640xbf16>
    %cst = arith.constant dense<0.000000e+00> : vector<8x640xf32>
    %7 = tpu.matmul %5, %6, %cst {dimension_numbers = #tpu.dot_dimension_numbers<[1], [0], [0], [1], [0, 0, 1, 1], [], []>} : vector<8x2560xbf16>, vector<2560x640xbf16>, vector<8x640xf32> -> vector<8x640xf32>
    %8 = arith.index_cast %4 : i32 to index
    %c0_4 = arith.constant 0 : index
    %9 = vector.load %arg4[%8, %c0_4] : memref<2x640xf32, #tpu.memory_space<vmem>>, vector<1x640xf32>
    %10 = vector.broadcast %9 : vector<1x640xf32> to vector<8x640xf32>
    %11 = arith.addf %7, %10 : vector<8x640xf32>
    %cst_5 = arith.constant 0.000000e+00 : f32
    %12 = vector.broadcast %cst_5 : f32 to vector<8x640xf32>
    %13 = arith.maximumf %11, %12 : vector<8x640xf32>
    %c0_6 = arith.constant 0 : index
    %c0_7 = arith.constant 0 : index
    %c0_8 = arith.constant 0 : index
    %14 = vector.load %arg6[%c0_6, %c0_7, %c0_8] : memref<1x8x128xf32, #tpu.memory_space<vmem>>, vector<1x8x128xf32>
    %15 = vector.shape_cast %14 : vector<1x8x128xf32> to vector<8x128xf32>
    %16 = arith.truncf %13 : vector<8x640xf32> to vector<8x640xbf16>
    %c0_9 = arith.constant 0 : index
    %c0_10 = arith.constant 0 : index
    %17 = vector.load %arg5[%c0_9, %c0_10] : memref<640x128xbf16, #tpu.memory_space<vmem>>, vector<640x128xbf16>
    %cst_11 = arith.constant dense<0.000000e+00> : vector<8x128xf32>
    %18 = tpu.matmul %16, %17, %cst_11 {dimension_numbers = #tpu.dot_dimension_numbers<[1], [0], [0], [1], [0, 0, 1, 1], [], []>} : vector<8x640xbf16>, vector<640x128xbf16>, vector<8x128xf32> -> vector<8x128xf32>
    %19 = arith.addf %15, %18 : vector<8x128xf32>
    %c0_12 = arith.constant 0 : index
    %c0_13 = arith.constant 0 : index
    %c0_14 = arith.constant 0 : index
    %20 = vector.load %arg6[%c0_12, %c0_13, %c0_14] : memref<1x8x128xf32, #tpu.memory_space<vmem>>, vector<1x8x128xf32>
    %21 = vector.shape_cast %20 : vector<1x8x128xf32> to vector<8x128xf32>
    %22 = vector.shape_cast %19 : vector<8x128xf32> to vector<1x8x128xf32>
    tpu.vector_store %arg6[%c0_12, %c0_13, %c0_14], %22 {strides = array<i32>} : memref<1x8x128xf32, #tpu.memory_space<vmem>>, vector<1x8x128xf32>,
    return
  }
  func.func @transform_0(%arg0: i32, %arg1: i32) -> (i32, i32) {
    %c0_i32 = arith.constant 0 : i32
    %c0_i32_0 = arith.constant 0 : i32
    %c0_i32_1 = arith.constant 0 : i32
    return %c0_i32, %c0_i32_0 : i32, i32
  }
  func.func @transform_1(%arg0: i32, %arg1: i32) -> (i32, i32) {
    %c1_i32 = arith.constant 1 : i32
    %0 = arith.muli %arg0, %c1_i32 : i32
    %1 = arith.addi %0, %arg1 : i32
    %c0_i32 = arith.constant 0 : i32
    %c0_i32_0 = arith.constant 0 : i32
    return %c0_i32, %1 : i32, i32
  }
  func.func @transform_2(%arg0: i32, %arg1: i32) -> (i32, i32) {
    %c0_i32 = arith.constant 0 : i32
    %c0_i32_0 = arith.constant 0 : i32
    %c0_i32_1 = arith.constant 0 : i32
    return %c0_i32, %c0_i32_0 : i32, i32
  }
  func.func @transform_3(%arg0: i32, %arg1: i32) -> (i32, i32) {
    %c1_i32 = arith.constant 1 : i32
    %0 = arith.muli %arg0, %c1_i32 : i32
    %1 = arith.addi %0, %arg1 : i32
    %c0_i32 = arith.constant 0 : i32
    %c0_i32_0 = arith.constant 0 : i32
    return %1, %c0_i32 : i32, i32
  }
  func.func @transform_4(%arg0: i32, %arg1: i32) -> (i32, i32, i32) {
    %c0_i32 = arith.constant 0 : i32
    %c0_i32_0 = arith.constant 0 : i32
    %c0_i32_1 = arith.constant 0 : i32
    return %arg0, %c0_i32, %c0_i32_0 : i32, i32, i32
  }
}

</mosaic_0001>

<bundles_post_ra>
// kernel: ecg_classifier.1
= control target key start
LH: loop header
LB: loop body
LE: loop exit
PB: predicated region body
PF: predicated region fallthrough
CT: control target
= control target key end

     0   :  { %9 = vsyncpa [#allocation3], 0  ;;  %s13838_s0 = inlined_call_operand.vmem [shape: bf16[8,2560], index: 0, kind: input, shape index: {}]   ;;  %s13839_s1 = inlined_call_operand.hbm [shape: bf16[2560,1280], index: 1, kind: input, shape index: {}]   ;;  %s13840_s2 = inlined_call_operand.hbm [shape: f32[2,640], index: 2, kind: input, shape index: {}]   ;;  %s13841_s3 = inlined_call_operand.hbm [shape: bf16[1280,128], index: 3, kind: input, shape index: {}]   ;;  %s13842_s4 = inlined_call_operand.vmem [shape: f32[2,8,128], index: 4, kind: output, shape index: {}]  }
   0x1   :  { %11 = vsyncpa [#allocation3 + $0x1], 0 }
   0x2   :  { %12 = vsyncpa [#allocation5], 0  ;;  %s11807_s15 = smov 0   ;;  %s11809_s16 = smov 0  }
   0x3   :  { %s11811_s17 = smov 0   ;;  %s11813_s18 = smov 0  }
   0x4   :  { %s11815_s19 = smov 0   ;;  %s11817_s20 = smov 0  }
   0x5 LB: > { %s30_s21 = sadd.s32 1, %s11770_s19  ;;  %s60_s22 = sadd.s32 1, %s11762_s17  ;;  %s11774_s20 = sphi %s11817_s20, %s18_s20   ;;  %s11770_s19 = sphi %s11815_s19, %s13851_s19   ;;  %s11766_s18 = sphi %s11813_s18, %s13850_s18   ;;  %s11762_s17 = sphi %s11811_s17, %s13849_s17   ;;  %s11758_s16 = sphi %s11809_s16, %s13848_s16   ;;  %s11754_s15 = sphi %s11807_s15, %s13847_s15  }
   0x6   : > { %p32_p0 = scmp.ge.s32.totalorder %s30_s21, 2  ;;  %p67_p1 = scmp.ne.s32.totalorder %s11762_s17, %s11758_s16 }
   0x7   : > { %p68_p2 = scmp.eq.s32.totalorder %s11774_s20, 0  ;;  %p11565_p4 = scmp.lt.s32.totalorder %s11774_s20, 2 }
   0x8   : > { %s13853_s21 = smov (%p32_p0, %s30_s21), 0  ;;  %s187_s24 = sand.u32 1, %s11774_s20  }
   0x9   : > { %p69_p3 = por %p68_p2, %p67_p1  ;;  %s57_s23 = ssub.s32 %s11770_s19, %s13853_s21 }
   0xa   : > { %p58_p5 = scmp.eq.s32.totalorder %s57_s23, 0  ;;  %s189_s25 = sand.u32 1, %s11762_s17  }
   0xb   : > { %s10699_s26 = smul.u32 20, %s11770_s19  ;;  %p11856_p6 = pnand %p11565_p4, %p69_p3 }
   0xc   : > { %s11851_s27 = scalar_select %p58_p5, %s11762_s17, %s60_s22  }
   0xd   : > { %s11541_s28 = smul.u32 6400, %s189_s25  ;;  %s197_s5 = scalar_lea.hbm %s13839_s1, %s10699_s26 }
   0xe   : > { %s198_s6 = sshll.u32 %s197_s5, 4  ;;  %s11860_s10 = scalar_lea.sflag [#allocation3], %s187_s24  ;;  %s199_s6 = int_to_ptr.hbm [resolvable:$true] %s198_s6 }
   0xf   : > { %s191_s8 = scalar_lea.vmem [#allocation2], %s11541_s28  ;;  %s11776_s11 = smov 640  }
  0x10   : > { %s200_s9 = sshll.u32 %s191_s8, 4  ;;  %s11777_s12 = smov 320   ;;  %s201_s9 = int_to_ptr.vmem [resolvable:$true] %s200_s9 }
  0x11   : > { %s11778_s13 = smov 20   ;;  %s7326_s14 = sadd.s32 4294967295, %s11774_s20  }
  0x12   : > { %11560 = dma.hbm_to_vmem [thread:$0]  (!%p11856_p6), %s199_s6, 102400, %s201_s9, %s11860_s10, %s11776_s11, %s11777_s12, %s11778_s13  }
  0x13   : > { %p73_p7 = scmp.ne.s32.totalorder %s11758_s16, %s11754_s15  ;;  %p11870_p8 = scmp.eq.s32.totalorder %s7326_s14, 0 }
  0x14   : > { %p7328_p9 = scmp.ge.s32.totalorder %s11774_s20, 1  ;;  %p159_p10 = scmp.lt.s32.totalorder %s11774_s20, 3 }
  0x15   : > { %p11878_p11 = por %p11870_p8, %p73_p7  ;;  %s174_s28 = sshll.u32 %s13840_s2, 4  ;;  %s175_s28 = int_to_ptr.hbm [resolvable:$true] %s174_s28 }
  0x16   : > { %p11885_p12 = pnand %p7328_p9, %p159_p10  ;;  %s11542_s29 = smul.u32 320, %s189_s25 }
  0x17   : > { %s11779_s30 = smov [#allocation4]   ;;  %s10700_s6 = smul.u32 320, %s11770_s19 }
  0x18   : > { %p11553_p13 = pneg %p11885_p12  ;;  %s176_s5 = sshll.u32 %s11779_s30, 4  ;;  %s177_s5 = int_to_ptr.vmem [resolvable:$true] %s176_s5 }
  0x19   : > { %s214_s8 = scalar_lea.vmem [#allocation6], %s11542_s29  ;;  %s220_s13 = scalar_lea.hbm %s13841_s3, %s10700_s6 }
  0x1a   : > { %p11554_p0 = pnand %p11553_p13, %p11870_p8  ;;  %s223_s9 = sshll.u32 %s214_s8, 4  ;;  %s224_s9 = int_to_ptr.vmem [resolvable:$true] %s223_s9 }
  0x1b   : > { %s221_s24 = sshll.u32 %s220_s13, 4  ;;  %s11780_s25 = smov 64   ;;  %s222_s24 = int_to_ptr.hbm [resolvable:$true] %s221_s24 }
  0x1c   : > { %11556 = dma.hbm_to_vmem [thread:$0]  (!%p11554_p0), %s175_s28, 160, %s177_s5, [#allocation5]  }
  0x1d   : > { %s11781_s26 = smov 4   ;;  %235 = sbr.rel (%p11885_p12) target bundleno = 1120 (0x460), region = 36 }
  0x1e   : > { %11563 = dma.hbm_to_vmem [thread:$0]  (!%p11856_p6), %s222_s24, 5120, %s224_s9, %s11860_s10, %s11780_s25, %s11780_s25, %s11781_s26  }
  0x1f   : > { %s237_s29 = sand.u32 (!%p11885_p12), 1, %s7326_s14   ;;  %s239_s30 = sand.u32 (!%p11885_p12), 1, %s11758_s16  }
  0x20   : > { %s11543_s8 = smul.u32 (!%p11885_p12), 6400, %s239_s30  ;;  %s238_s11 = scalar_lea.sflag (!%p11885_p12), [#allocation3], %s237_s29 }
  0x22   : > { %s11905_s6 = scalar_lea.vmem [#allocation2], %s11543_s8 }
  0x23   : > { %11741 = dma.done.wait (%p11878_p11), %s238_s11, 102400  }
  0x24   : > { %11743 = vsyncadd (%p11878_p11), %s238_s11, 4294864896 }
  0x25   : > { %11745 = dma.done.wait (%p11870_p8), [#allocation5], 160  }
  0x26   : > { %11747 = vsyncadd (%p11870_p8), [#allocation5], 4294967136  ;;  %s11544_s7 = smul.u32 320, %s239_s30 }
  0x28   : > { %s11915_s10 = scalar_lea.vmem [#allocation6], %s11544_s7 }
  0x29   : > { %11749 = dma.done.wait (%p11878_p11), %s238_s11, 5120  }
  0x2a   : > { %11751 = vsyncadd (%p11878_p11), %s238_s11, 4294962176  ;;  %v7479_v0 = vld [vmem:[%s11905_s6 + $0x118] sm:$0xf]  ;;  %v10738_v1 = vld [vmem:[%s11905_s6 + $0x128] sm:$0xf0]  ;;  %s1270_s28 = sshra.s32 %s11766_s18, 1 }
  0x2b   : > { %v7639_v2 = vld [vmem:[%s11905_s6 + $0x258] sm:$0xf]  ;;  %v7480_v3 = vor.u32 %v10738_v1, %v7479_v0  ;;  %v10778_v4 = vld [vmem:[%s11905_s6 + $0x268] sm:$0xf0]  ;;  %v7459_v11 = vld [vmem:[%s11905_s6 + $0xf0] sm:$0xf] }
  0x2c   : > { %v7799_v5 = vld [vmem:[%s11905_s6 + $0x398] sm:$0xf]  ;;  %v10818_v6 = vld [vmem:[%s11905_s6 + $0x3a8] sm:$0xf0]  ;;  %v7640_v7 = vor.u32 %v10778_v4, %v7639_v2  ;;  %v10733_v13 = vld [vmem:[%s11905_s6 + $0x100] sm:$0xf0] }
  0x2d   : > { %v7800_v8 = vor.u32 %v10818_v6, %v7799_v5  ;;  %v7959_v9 = vld [vmem:[%s11905_s6 + $0x4d8] sm:$0xf]  ;;  %v10858_v10 = vld [vmem:[%s11905_s6 + $0x4e8] sm:$0xf0]  ;;  %5520 = vmatpush.bf16.msra.mxu0 %v7480_v3  ;;  %v7619_v14 = vld [vmem:[%s11905_s6 + $0x230] sm:$0xf]  ;;  %v7460_v16 = vor.u32 %v10733_v13, %v7459_v11 }
  0x2e   : > { %v7960_v12 = vor.u32 %v10858_v10, %v7959_v9  ;;  %v10773_v15 = vld [vmem:[%s11905_s6 + $0x240] sm:$0xf0]  ;;  %5533 = vmatpush.bf16.msra.mxu1 %v7640_v7  ;;  %v7779_v18 = vld [vmem:[%s11905_s6 + $0x370] sm:$0xf]  ;;  %v7439_v23 = vld [vmem:[%s11905_s6 + $0xc8] sm:$0xf] }
  0x2f   : > { %5546 = vmatpush.bf16.msra.mxu2 %v7800_v8  ;;  %v7620_v17 = vor.u32 %v10773_v15, %v7619_v14  ;;  %v10813_v19 = vld [vmem:[%s11905_s6 + $0x380] sm:$0xf0]  ;;  %v7939_v20 = vld [vmem:[%s11905_s6 + $0x4b0] sm:$0xf]  ;;  %v10728_v24 = vld [vmem:[%s11905_s6 + $0xd8] sm:$0xf0] }
  0x30   : > { %5559 = vmatpush.bf16.msra.mxu3 %v7960_v12  ;;  %v7780_v21 = vor.u32 %v10813_v19, %v7779_v18  ;;  %v10853_v22 = vld [vmem:[%s11905_s6 + $0x4c0] sm:$0xf0]  ;;  %v7599_v26 = vld [vmem:[%s11905_s6 + $0x208] sm:$0xf]  ;;  %v10768_v27 = vld [vmem:[%s11905_s6 + $0x218] sm:$0xf0]  ;;  %v7440_v29 = vor.u32 %v10728_v24, %v7439_v23 }
  0x31   : > { %v7940_v25 = vor.u32 %v10853_v22, %v7939_v20  ;;  %v7759_v28 = vld [vmem:[%s11905_s6 + $0x348] sm:$0xf]  ;;  %5521 = vmatpush.bf16.msra.mxu0 %v7460_v16  ;;  %v10808_v30 = vld [vmem:[%s11905_s6 + $0x358] sm:$0xf0]  ;;  %v7600_v33 = vor.u32 %v10768_v27, %v7599_v26  ;;  %v7419_v35 = vld [vmem:[%s11905_s6 + $0xa0] sm:$0xf] }
  0x32   : > { %v7919_v31 = vld [vmem:[%s11905_s6 + $0x488] sm:$0xf]  ;;  %v10848_v32 = vld [vmem:[%s11905_s6 + $0x498] sm:$0xf0]  ;;  %5534 = vmatpush.bf16.msra.mxu1 %v7620_v17  ;;  %v7760_v34 = vor.u32 %v10808_v30, %v7759_v28  ;;  %v10723_v36 = vld [vmem:[%s11905_s6 + $0xb0] sm:$0xf0] }
  0x33   : > { %5547 = vmatpush.bf16.msra.mxu2 %v7780_v21  ;;  %v7579_v37 = vld [vmem:[%s11905_s6 + $0x1e0] sm:$0xf]  ;;  %v7920_v38 = vor.u32 %v10848_v32, %v7919_v31  ;;  %v10763_v39 = vld [vmem:[%s11905_s6 + $0x1f0] sm:$0xf0]  ;;  %v7420_v44 = vor.u32 %v10723_v36, %v7419_v35  ;;  %v7399_v47 = vld [vmem:[%s11905_s6 + $0x78] sm:$0xf] }
  0x34   : > { %5560 = vmatpush.bf16.msra.mxu3 %v7940_v25  ;;  %v7739_v40 = vld [vmem:[%s11905_s6 + $0x320] sm:$0xf]  ;;  %v10803_v41 = vld [vmem:[%s11905_s6 + $0x330] sm:$0xf0]  ;;  %v7580_v45 = vor.u32 %v10763_v39, %v7579_v37  ;;  %v10718_v48 = vld [vmem:[%s11905_s6 + $0x88] sm:$0xf0] }
  0x35   : > { %v7899_v42 = vld [vmem:[%s11905_s6 + $0x460] sm:$0xf]  ;;  %v10843_v43 = vld [vmem:[%s11905_s6 + $0x470] sm:$0xf0]  ;;  %5522 = vmatpush.bf16.msra.mxu0 %v7440_v29  ;;  %v7740_v46 = vor.u32 %v10803_v41, %v7739_v40  ;;  %v7559_v49 = vld [vmem:[%s11905_s6 + $0x1b8] sm:$0xf]  ;;  %v7400_v56 = vor.u32 %v10718_v48, %v7399_v47 }
  0x36   : > { %5535 = vmatpush.bf16.msra.mxu1 %v7600_v33  ;;  %v7900_v50 = vor.u32 %v10843_v43, %v7899_v42  ;;  %v10758_v51 = vld [vmem:[%s11905_s6 + $0x1c8] sm:$0xf0]  ;;  %v7719_v52 = vld [vmem:[%s11905_s6 + $0x2f8] sm:$0xf]  ;;  %v7379_v59 = vld [vmem:[%s11905_s6 + $0x50] sm:$0xf] }
  0x37   : > { %5548 = vmatpush.bf16.msra.mxu2 %v7760_v34  ;;  %v10798_v53 = vld [vmem:[%s11905_s6 + $0x308] sm:$0xf0]  ;;  %v7879_v54 = vld [vmem:[%s11905_s6 + $0x438] sm:$0xf]  ;;  %v7560_v57 = vor.u32 %v10758_v51, %v7559_v49  ;;  %v10713_v60 = vld [vmem:[%s11905_s6 + $0x60] sm:$0xf0] }
  0x38   : > { %5561 = vmatpush.bf16.msra.mxu3 %v7920_v38  ;;  %v10838_v55 = vld [vmem:[%s11905_s6 + $0x448] sm:$0xf0]  ;;  %v7720_v58 = vor.u32 %v10798_v53, %v7719_v52  ;;  %v7539_v61 = vld [vmem:[%s11905_s6 + $0x190] sm:$0xf]  ;;  %v10753_v63 = vld [vmem:[%s11905_s6 + $0x1a0] sm:$0xf0]  ;;  %v7380_v4 = vor.u32 %v10713_v60, %v7379_v59 }
  0x39   : > { %5523 = vmatpush.bf16.msra.mxu0 %v7420_v44  ;;  %v7880_v62 = vor.u32 %v10838_v55, %v7879_v54  ;;  %v7699_v0 = vld [vmem:[%s11905_s6 + $0x2d0] sm:$0xf]  ;;  %v10793_v1 = vld [vmem:[%s11905_s6 + $0x2e0] sm:$0xf0]  ;;  %v7540_v5 = vor.u32 %v10753_v63, %v7539_v61  ;;  %v7359_v7 = vld [vmem:[%s11905_s6 + $0x28] sm:$0xf] }
  0x3a   : > { %5536 = vmatpush.bf16.msra.mxu1 %v7580_v45  ;;  %v7859_v2 = vld [vmem:[%s11905_s6 + $0x410] sm:$0xf]  ;;  %v10833_v3 = vld [vmem:[%s11905_s6 + $0x420] sm:$0xf0]  ;;  %v7700_v6 = vor.u32 %v10793_v1, %v7699_v0  ;;  %v10708_v8 = vld [vmem:[%s11905_s6 + $0x38] sm:$0xf0] }
  0x3b   : > { %5549 = vmatpush.bf16.msra.mxu2 %v7740_v46  ;;  %v7519_v9 = vld [vmem:[%s11905_s6 + $0x168] sm:$0xf]  ;;  %v7860_v10 = vor.u32 %v10833_v3, %v7859_v2  ;;  %v10748_v11 = vld [vmem:[%s11905_s6 + $0x178] sm:$0xf0]  ;;  %v7360_v16 = vor.u32 %v10708_v8, %v7359_v7  ;;  %v7339_v17 = vld [vmem:[%s11905_s6] sm:$0xf] }
  0x3c   : > { %5562 = vmatpush.bf16.msra.mxu3 %v7900_v50  ;;  %v7679_v12 = vld [vmem:[%s11905_s6 + $0x2a8] sm:$0xf]  ;;  %v10788_v13 = vld [vmem:[%s11905_s6 + $0x2b8] sm:$0xf0]  ;;  %v10703_v18 = vld [vmem:[%s11905_s6 + $0x10] sm:$0xf0]  ;;  %v7520_v19 = vor.u32 %v10748_v11, %v7519_v9 }
  0x3d   : > { %5524 = vmatpush.bf16.msra.mxu0 %v7400_v56  ;;  %v7839_v14 = vld [vmem:[%s11905_s6 + $0x3e8] sm:$0xf]  ;;  %v10828_v15 = vld [vmem:[%s11905_s6 + $0x3f8] sm:$0xf0]  ;;  %v7680_v20 = vor.u32 %v10788_v13, %v7679_v12  ;;  %v7499_v21 = vld [vmem:[%s11905_s6 + $0x140] sm:$0xf]  ;;  %v7340_v31 = vor.u32 %v10703_v18, %v7339_v17 }
  0x3e   : > { %5537 = vmatpush.bf16.msra.mxu1 %v7560_v57  ;;  %v10743_v22 = vld [vmem:[%s11905_s6 + $0x150] sm:$0xf0]  ;;  %v7659_v23 = vld [vmem:[%s11905_s6 + $0x280] sm:$0xf]  ;;  %v7840_v24 = vor.u32 %v10828_v15, %v7839_v14  ;;  %v8119_v28 = vld [vmem:[%s11905_s6 + $0x618] sm:$0xf] }
  0x3f   : > { %5550 = vmatpush.bf16.msra.mxu2 %v7720_v58  ;;  %v10783_v25 = vld [vmem:[%s11905_s6 + $0x290] sm:$0xf0]  ;;  %v7819_v26 = vld [vmem:[%s11905_s6 + $0x3c0] sm:$0xf]  ;;  %v10898_v29 = vld [vmem:[%s11905_s6 + $0x628] sm:$0xf0]  ;;  %v7500_v35 = vor.u32 %v10743_v22, %v7499_v21 }
  0x40   : > { %5563 = vmatpush.bf16.msra.mxu3 %v7880_v62  ;;  %v10823_v27 = vld [vmem:[%s11905_s6 + $0x3d0] sm:$0xf0]  ;;  %v8279_v30 = vld [vmem:[%s11905_s6 + $0x758] sm:$0xf]  ;;  %v10938_v32 = vld [vmem:[%s11905_s6 + $0x768] sm:$0xf0]  ;;  %v7660_v36 = vor.u32 %v10783_v25, %v7659_v23  ;;  %v8120_v40 = vor.u32 %v10898_v29, %v8119_v28 }
  0x41   : > { %5525 = vmatpush.bf16.msra.mxu0 %v7380_v4  ;;  %v8439_v33 = vld [vmem:[%s11905_s6 + $0x898] sm:$0xf]  ;;  %v10978_v34 = vld [vmem:[%s11905_s6 + $0x8a8] sm:$0xf0]  ;;  %v7820_v39 = vor.u32 %v10823_v27, %v7819_v26  ;;  %v8280_v41 = vor.u32 %v10938_v32, %v8279_v30  ;;  %v8099_v43 = vld [vmem:[%s11905_s6 + $0x5f0] sm:$0xf] }
  0x42   : > { %5538 = vmatpush.bf16.msra.mxu1 %v7540_v5  ;;  %v8599_v37 = vld [vmem:[%s11905_s6 + $0x9d8] sm:$0xf]  ;;  %v11018_v38 = vld [vmem:[%s11905_s6 + $0x9e8] sm:$0xf0]  ;;  %v8440_v42 = vor.u32 %v10978_v34, %v8439_v33  ;;  %v10893_v44 = vld [vmem:[%s11905_s6 + $0x600] sm:$0xf0] }
  0x43   : > { %5551 = vmatpush.bf16.msra.mxu2 %v7700_v6  ;;  %v8259_v45 = vld [vmem:[%s11905_s6 + $0x730] sm:$0xf]  ;;  %v8600_v46 = vor.u32 %v11018_v38, %v8599_v37  ;;  %v10933_v47 = vld [vmem:[%s11905_s6 + $0x740] sm:$0xf0]  ;;  %v8100_v52 = vor.u32 %v10893_v44, %v8099_v43  ;;  %v8079_v53 = vld [vmem:[%s11905_s6 + $0x5c8] sm:$0xf] }
  0x44   : > { %5564 = vmatpush.bf16.msra.mxu3 %v7860_v10  ;;  %v8419_v48 = vld [vmem:[%s11905_s6 + $0x870] sm:$0xf]  ;;  %v10973_v49 = vld [vmem:[%s11905_s6 + $0x880] sm:$0xf0]  ;;  %v8260_v54 = vor.u32 %v10933_v47, %v8259_v45  ;;  %v10888_v56 = vld [vmem:[%s11905_s6 + $0x5d8] sm:$0xf0] }
  0x45   : > { %5526 = vmatpush.bf16.msra.mxu0 %v7360_v16  ;;  %v8579_v50 = vld [vmem:[%s11905_s6 + $0x9b0] sm:$0xf]  ;;  %v11013_v51 = vld [vmem:[%s11905_s6 + $0x9c0] sm:$0xf0]  ;;  %v8420_v55 = vor.u32 %v10973_v49, %v8419_v48  ;;  %v8239_v57 = vld [vmem:[%s11905_s6 + $0x708] sm:$0xf]  ;;  %v8080_v0 = vor.u32 %v10888_v56, %v8079_v53 }
  0x46   : > { %5539 = vmatpush.bf16.msra.mxu1 %v7520_v19  ;;  %v10928_v58 = vld [vmem:[%s11905_s6 + $0x718] sm:$0xf0]  ;;  %v8580_v59 = vor.u32 %v11013_v51, %v8579_v50  ;;  %v8399_v60 = vld [vmem:[%s11905_s6 + $0x848] sm:$0xf]  ;;  %v300_v3 = vld [vmem:[%s13838_s0] sm:$0xff]  ;;  %s1273_s15 = sand.u32 1, %s11766_s18 }
  0x47   : > { %5552 = vmatpush.bf16.msra.mxu2 %v7680_v20  ;;  %v10968_v61 = vld [vmem:[%s11905_s6 + $0x858] sm:$0xf0]  ;;  %v8559_v62 = vld [vmem:[%s11905_s6 + $0x988] sm:$0xf]  ;;  %v8240_v1 = vor.u32 %v10928_v58, %v8239_v57  ;;  %v8059_v5 = vld [vmem:[%s11905_s6 + $0x5a0] sm:$0xf]  ;;  %v1300_v9 = vunpack.c.l.b16 %v300_v3  ;;  %v1301_v15 = vunpack.c.h.b16 %v300_v3 }
  0x48   : > { %5565 = vmatpush.bf16.msra.mxu3 %v7840_v24  ;;  %v11008_v63 = vld [vmem:[%s11905_s6 + $0x998] sm:$0xf0]  ;;  %v301_v2 = vld [vmem:[%s13838_s0 + $0x8] sm:$0xff]  ;;  %v8400_v4 = vor.u32 %v10968_v61, %v8399_v60  ;;  %v10883_v6 = vld [vmem:[%s11905_s6 + $0x5b0] sm:$0xf0]  ;;  %s7336_s5 = smul.u32 10, %s1270_s28 }
  0x49   : > { %5527 = vmatpush.bf16.msra.mxu0 %v7340_v31  ;;  %v8219_v7 = vld [vmem:[%s11905_s6 + $0x6e0] sm:$0xf]  ;;  %v1302_v8 = vunpack.c.l.b16 %v301_v2  ;;  %v1303_v10 = vunpack.c.h.b16 %v301_v2  ;;  %v8560_v11 = vor.u32 %v11008_v63, %v8559_v62  ;;  %v10923_v12 = vld [vmem:[%s11905_s6 + $0x6f0] sm:$0xf0]  ;;  %v12025_v19 = vpack.c.b16 %v1300_v9, %v1300_v9  ;;  %v8039_v25 = vld [vmem:[%s11905_s6 + $0x578] sm:$0xf] }
  0x4a   : > { %5540 = vmatpush.bf16.msra.mxu1 %v7500_v35  ;;  %v8379_v13 = vld [vmem:[%s11905_s6 + $0x820] sm:$0xf]  ;;  %v10963_v14 = vld [vmem:[%s11905_s6 + $0x830] sm:$0xf0]  ;;  %v8060_v21 = vor.u32 %v10883_v6, %v8059_v5  ;;  %v12029_v22 = vpack.c.b16 %v1301_v15, %v1301_v15  ;;  %v8220_v23 = vor.u32 %v10923_v12, %v8219_v7  ;;  %v10878_v26 = vld [vmem:[%s11905_s6 + $0x588] sm:$0xf0]  ;;  %s1276_s9 = sadd.s32 %s7336_s5, %s1273_s15 }
  0x4b   : > { %5553 = vmatpush.bf16.msra.mxu2 %v7660_v36  ;;  %v8539_v16 = vld [vmem:[%s11905_s6 + $0x960] sm:$0xf]  ;;  %v11003_v17 = vld [vmem:[%s11905_s6 + $0x970] sm:$0xf0]  ;;  %v12023_v18 = vpack.c.b16 %v1302_v8, %v1302_v8  ;;  %v12027_v20 = vpack.c.b16 %v1303_v10, %v1303_v10  ;;  %v8380_v24 = vor.u32 %v10963_v14, %v8379_v13  ;;  %v8199_v27 = vld [vmem:[%s11905_s6 + $0x6b8] sm:$0xf]  ;;  %v8040_v34 = vor.u32 %v10878_v26, %v8039_v25 }
  0x4c   : > { %5566 = vmatpush.bf16.msra.mxu3 %v7820_v39  ;;  %v8540_v28 = vor.u32 %v11003_v17, %v8539_v16  ;;  %v10918_v29 = vld [vmem:[%s11905_s6 + $0x6c8] sm:$0xf0]  ;;  %v8359_v30 = vld [vmem:[%s11905_s6 + $0x7f8] sm:$0xf]  ;;  %5528 = vmatmul.bf16.vlgmr.msra.gmra.mxu0 %v12025_v19  ;;  %v8019_v37 = vld [vmem:[%s11905_s6 + $0x550] sm:$0xf] }
  0x4d   : > { %5572 = vmatpush.bf16.msrb.mxu0 %v8120_v40  ;;  %v10958_v31 = vld [vmem:[%s11905_s6 + $0x808] sm:$0xf0]  ;;  %v8519_v32 = vld [vmem:[%s11905_s6 + $0x938] sm:$0xf]  ;;  %5541 = vmatmul.bf16.vlgmr.msra.gmra.mxu1 %v12029_v22  ;;  %v8200_v35 = vor.u32 %v10918_v29, %v8199_v27  ;;  %v10873_v38 = vld [vmem:[%s11905_s6 + $0x560] sm:$0xf0] }
  0x4e   : > { %5585 = vmatpush.bf16.msrb.mxu1 %v8280_v41  ;;  %5554 = vmatmul.bf16.vlgmr.msra.gmra.mxu2 %v12023_v18  ;;  %v10998_v33 = vld [vmem:[%s11905_s6 + $0x948] sm:$0xf0]  ;;  %v8360_v36 = vor.u32 %v10958_v31, %v8359_v30  ;;  %v8179_v39 = vld [vmem:[%s11905_s6 + $0x690] sm:$0xf]  ;;  %v10913_v41 = vld [vmem:[%s11905_s6 + $0x6a0] sm:$0xf0] }
  0x4f   : > { %5598 = vmatpush.bf16.msrb.mxu2 %v8440_v42  ;;  %5567 = vmatmul.bf16.vlgmr.msra.gmra.mxu3 %v12027_v20  ;;  %v8520_v40 = vor.u32 %v10998_v33, %v8519_v32  ;;  %v8339_v42 = vld [vmem:[%s11905_s6 + $0x7d0] sm:$0xf]  ;;  %v10953_v43 = vld [vmem:[%s11905_s6 + $0x7e0] sm:$0xf0]  ;;  %v8180_v47 = vor.u32 %v10913_v41, %v8179_v39  ;;  %v7999_v49 = vld [vmem:[%s11905_s6 + $0x528] sm:$0xf] }
  0x50   : > { %5611 = vmatpush.bf16.msrb.mxu3 %v8600_v46  ;;  %v8499_v44 = vld [vmem:[%s11905_s6 + $0x910] sm:$0xf]  ;;  %v10993_v45 = vld [vmem:[%s11905_s6 + $0x920] sm:$0xf0]  ;;  %v8020_v46 = vor.u32 %v10873_v38, %v8019_v37  ;;  %v8340_v48 = vor.u32 %v10953_v43, %v8339_v42  ;;  %v10868_v50 = vld [vmem:[%s11905_s6 + $0x538] sm:$0xf0] }
  0x51   : > { %5573 = vmatpush.bf16.msrb.mxu0 %v8100_v52  ;;  %v8159_v51 = vld [vmem:[%s11905_s6 + $0x668] sm:$0xf]  ;;  %v8500_v52 = vor.u32 %v10993_v45, %v8499_v44  ;;  %v10908_v53 = vld [vmem:[%s11905_s6 + $0x678] sm:$0xf0]  ;;  %v7979_v58 = vld [vmem:[%s11905_s6 + $0x500] sm:$0xf] }
  0x52   : > { %5586 = vmatpush.bf16.msrb.mxu1 %v8260_v54  ;;  %v8319_v54 = vld [vmem:[%s11905_s6 + $0x7a8] sm:$0xf]  ;;  %v10988_v57 = vld [vmem:[%s11905_s6 + $0x8f8] sm:$0xf0]  ;;  %v10863_v60 = vld [vmem:[%s11905_s6 + $0x510] sm:$0xf0]  ;;  %v8160_v63 = vor.u32 %v10908_v53, %v8159_v51 }
  0x53   : > { %5599 = vmatpush.bf16.msrb.mxu2 %v8420_v55  ;;  %v10948_v55 = vld [vmem:[%s11905_s6 + $0x7b8] sm:$0xf0]  ;;  %v8479_v56 = vld [vmem:[%s11905_s6 + $0x8e8] sm:$0xf]  ;;  %v8139_v61 = vld [vmem:[%s11905_s6 + $0x640] sm:$0xf] }
  0x54   : > { %5612 = vmatpush.bf16.msrb.mxu3 %v8580_v59  ;;  %v8000_v59 = vor.u32 %v10868_v50, %v7999_v49  ;;  %v10903_v62 = vld [vmem:[%s11905_s6 + $0x650] sm:$0xf0]  ;;  %v303_v3 = vld [vmem:[%s13838_s0 + $0x18] sm:$0xff]  ;;  %v8459_v5 = vld [vmem:[%s11905_s6 + $0x8c0] sm:$0xf]  ;;  %s12371_s12 = scalar_lea.vmem [#allocation4], %s1276_s9 }
  0x55   : > { %5574 = vmatpush.bf16.msrb.mxu0 %v8080_v0  ;;  %v8320_v0 = vor.u32 %v10948_v55, %v8319_v54  ;;  %v10943_v2 = vld [vmem:[%s11905_s6 + $0x790] sm:$0xf0]  ;;  %v8759_v8 = vld [vmem:[%s11905_s6 + $0xb18] sm:$0xf]  ;;  %v11058_v9 = vld [vmem:[%s11905_s6 + $0xb28] sm:$0xf0]  ;;  %v1306_v15 = vunpack.c.l.b16 %v303_v3  ;;  %v8140_v16 = vor.u32 %v10903_v62, %v8139_v61  ;;  %v1307_v25 = vunpack.c.h.b16 %v303_v3 }
  0x56   : > { %5587 = vmatpush.bf16.msrb.mxu1 %v8240_v1  ;;  %v8299_v1 = vld [vmem:[%s11905_s6 + $0x780] sm:$0xf]  ;;  %v10983_v6 = vld [vmem:[%s11905_s6 + $0x8d0] sm:$0xf0]  ;;  %v8919_v10 = vld [vmem:[%s11905_s6 + $0xc58] sm:$0xf]  ;;  %v8760_v27 = vor.u32 %v11058_v9, %v8759_v8 }
  0x57   : > { %5600 = vmatpush.bf16.msrb.mxu2 %v8400_v4  ;;  %v8480_v4 = vor.u32 %v10988_v57, %v8479_v56  ;;  %v302_v7 = vld [vmem:[%s13838_s0 + $0x10] sm:$0xff]  ;;  %v11098_v12 = vld [vmem:[%s11905_s6 + $0xc68] sm:$0xf0]  ;;  %v9079_v13 = vld [vmem:[%s11905_s6 + $0xd98] sm:$0xf]  ;;  %v8300_v17 = vor.u32 %v10943_v2, %v8299_v1  ;;  %v8460_v26 = vor.u32 %v10983_v6, %v8459_v5  ;;  %v12087_v38 = vpack.c.b16 %v1306_v15, %v1306_v15  ;;  %p290_p1 = scmp.lt.s32.totalorder %s11766_s18, 1 }
  0x58   : > { %5613 = vmatpush.bf16.msrb.mxu3 %v8560_v11  ;;  %v7980_v11 = vor.u32 %v10863_v60, %v7979_v58  ;;  %v11138_v14 = vld [vmem:[%s11905_s6 + $0xda8] sm:$0xf0]  ;;  %v8920_v29 = vor.u32 %v11098_v12, %v8919_v10  ;;  %v8739_v31 = vld [vmem:[%s11905_s6 + $0xaf0] sm:$0xf]  ;;  %v11053_v32 = vld [vmem:[%s11905_s6 + $0xb00] sm:$0xf0]  ;;  %v12093_v42 = vpack.c.b16 %v1307_v25, %v1307_v25 }
  0x59   : > { %5575 = vmatpush.bf16.msrb.mxu0 %v8060_v21  ;;  %v9239_v21 = vld [vmem:[%s11905_s6 + $0xed8] sm:$0xf]  ;;  %v9080_v30 = vor.u32 %v11138_v14, %v9079_v13  ;;  %v8899_v33 = vld [vmem:[%s11905_s6 + $0xc30] sm:$0xf]  ;;  %v11133_v37 = vld [vmem:[%s11905_s6 + $0xd80] sm:$0xf0]  ;;  %v8740_v43 = vor.u32 %v11053_v32, %v8739_v31 }
  0x5a   : > { %5588 = vmatpush.bf16.msrb.mxu1 %v8220_v23  ;;  %v11178_v23 = vld [vmem:[%s11905_s6 + $0xee8] sm:$0xf0]  ;;  %v9219_v39 = vld [vmem:[%s11905_s6 + $0xeb0] sm:$0xf]  ;;  %v8879_v49 = vld [vmem:[%s11905_s6 + $0xc08] sm:$0xf] }
  0x5b   : > { %5601 = vmatpush.bf16.msrb.mxu2 %v8380_v24  ;;  %v1304_v24 = vunpack.c.l.b16 %v302_v7  ;;  %v11088_v51 = vld [vmem:[%s11905_s6 + $0xc18] sm:$0xf0]  ;;  %v9199_v54 = vld [vmem:[%s11905_s6 + $0xe88] sm:$0xf]  ;;  %v11043_v60 = vld [vmem:[%s11905_s6 + $0xab0] sm:$0xf0] }
  0x5c   : > { %5614 = vmatpush.bf16.msrb.mxu3 %v8540_v28  ;;  %v1305_v28 = vunpack.c.h.b16 %v302_v7  ;;  %v11128_v53 = vld [vmem:[%s11905_s6 + $0xd58] sm:$0xf0]  ;;  %v8880_v57 = vor.u32 %v11088_v51, %v8879_v49  ;;  %v8859_v61 = vld [vmem:[%s11905_s6 + $0xbe0] sm:$0xf]  ;;  %v11123_v1 = vld [vmem:[%s11905_s6 + $0xd30] sm:$0xf0] }
  0x5d   : > { %5576 = vmatpush.bf16.msrb.mxu0 %v8040_v34  ;;  %v9240_v34 = vor.u32 %v11178_v23, %v9239_v21  ;;  %v12091_v41 = vpack.c.b16 %v1304_v24, %v1304_v24  ;;  %v11168_v55 = vld [vmem:[%s11905_s6 + $0xe98] sm:$0xf0]  ;;  %v9179_v2 = vld [vmem:[%s11905_s6 + $0xe60] sm:$0xf]  ;;  %v11163_v3 = vld [vmem:[%s11905_s6 + $0xe70] sm:$0xf0] }
  0x5e   : > { %5589 = vmatpush.bf16.msrb.mxu1 %v8200_v35  ;;  %v11093_v35 = vld [vmem:[%s11905_s6 + $0xc40] sm:$0xf0]  ;;  %v12095_v44 = vpack.c.b16 %v1305_v28, %v1305_v28  ;;  %v9200_v62 = vor.u32 %v11168_v55, %v9199_v54  ;;  %v8679_v7 = vld [vmem:[%s11905_s6 + $0xa78] sm:$0xf]  ;;  %v11038_v8 = vld [vmem:[%s11905_s6 + $0xa88] sm:$0xf0]  ;;  %v9180_v10 = vor.u32 %v11163_v3, %v9179_v2 }
  0x5f   : > { %5602 = vmatpush.bf16.msrb.mxu2 %v8360_v36  ;;  %v9059_v36 = vld [vmem:[%s11905_s6 + $0xd70] sm:$0xf]  ;;  %v8900_v45 = vor.u32 %v11093_v35, %v8899_v33  ;;  %v8839_v9 = vld [vmem:[%s11905_s6 + $0xbb8] sm:$0xf]  ;;  %v11118_v13 = vld [vmem:[%s11905_s6 + $0xd08] sm:$0xf0] }
  0x60   : > { %5615 = vmatpush.bf16.msrb.mxu3 %v8520_v40  ;;  %v11173_v40 = vld [vmem:[%s11905_s6 + $0xec0] sm:$0xf0]  ;;  %v8999_v12 = vld [vmem:[%s11905_s6 + $0xcf8] sm:$0xf]  ;;  %v11158_v15 = vld [vmem:[%s11905_s6 + $0xe48] sm:$0xf0] }
  0x61   : > { %5577 = vmatpush.bf16.msrb.mxu0 %v8020_v46  ;;  %v9060_v46 = vor.u32 %v11133_v37, %v9059_v36  ;;  %v9220_v50 = vor.u32 %v11173_v40, %v9219_v39  ;;  %v9159_v14 = vld [vmem:[%s11905_s6 + $0xe38] sm:$0xf]  ;;  %v9000_v21 = vor.u32 %v11118_v13, %v8999_v12  ;;  %v8659_v23 = vld [vmem:[%s11905_s6 + $0xa50] sm:$0xf]  ;;  %v11033_v24 = vld [vmem:[%s11905_s6 + $0xa60] sm:$0xf0] }
  0x62   : > { %5590 = vmatpush.bf16.msrb.mxu1 %v8180_v47  ;;  %v8719_v47 = vld [vmem:[%s11905_s6 + $0xac8] sm:$0xf]  ;;  %v8819_v25 = vld [vmem:[%s11905_s6 + $0xb90] sm:$0xf]  ;;  %v11153_v31 = vld [vmem:[%s11905_s6 + $0xe20] sm:$0xf0]  ;;  %v8660_v32 = vor.u32 %v11033_v24, %v8659_v23 }
  0x63   : > { %5603 = vmatpush.bf16.msrb.mxu2 %v8340_v48  ;;  %v11048_v48 = vld [vmem:[%s11905_s6 + $0xad8] sm:$0xf0]  ;;  %v8979_v28 = vld [vmem:[%s11905_s6 + $0xcd0] sm:$0xf]  ;;  %v8639_v35 = vld [vmem:[%s11905_s6 + $0xa28] sm:$0xf] }
  0x64   : > { %5616 = vmatpush.bf16.msrb.mxu3 %v8500_v52  ;;  %v9039_v52 = vld [vmem:[%s11905_s6 + $0xd48] sm:$0xf]  ;;  %v8720_v56 = vor.u32 %v11048_v48, %v8719_v47  ;;  %v11028_v36 = vld [vmem:[%s11905_s6 + $0xa38] sm:$0xf0]  ;;  %v8619_v48 = vld [vmem:[%s11905_s6 + $0xa00] sm:$0xf] }
  0x65   : > { %5578 = vmatpush.bf16.msrb.mxu0 %v8000_v59  ;;  %v9040_v58 = vor.u32 %v11128_v53, %v9039_v52  ;;  %v8699_v59 = vld [vmem:[%s11905_s6 + $0xaa0] sm:$0xf]  ;;  %v8799_v37 = vld [vmem:[%s11905_s6 + $0xb68] sm:$0xf]  ;;  %v11068_v40 = vld [vmem:[%s11905_s6 + $0xb78] sm:$0xf0]  ;;  %v8640_v49 = vor.u32 %v11028_v36, %v8639_v35 }
  0x66   : > { %5591 = vmatpush.bf16.msrb.mxu1 %v8160_v63  ;;  %v11083_v63 = vld [vmem:[%s11905_s6 + $0xbf0] sm:$0xf0]  ;;  %v11148_v47 = vld [vmem:[%s11905_s6 + $0xdf8] sm:$0xf0]  ;;  %v8779_v51 = vld [vmem:[%s11905_s6 + $0xb40] sm:$0xf]  ;;  %v8800_v53 = vor.u32 %v11068_v40, %v8799_v37 }
  0x67   : > { %5604 = vmatpush.bf16.msrb.mxu2 %v8320_v0  ;;  %v9019_v0 = vld [vmem:[%s11905_s6 + $0xd20] sm:$0xf]  ;;  %v8860_v5 = vor.u32 %v11083_v63, %v8859_v61  ;;  %v11063_v52 = vld [vmem:[%s11905_s6 + $0xb50] sm:$0xf0]  ;;  %v305_v61 = vld [vmem:[%s13838_s0 + $0x28] sm:$0xff]  ;;  %s13855_s18 = smov (!%p290_p1, %s11766_s18), 1 }
  0x68   : > { %5617 = vmatpush.bf16.msrb.mxu3 %v8480_v4  ;;  %v8700_v4 = vor.u32 %v11043_v60, %v8699_v59  ;;  %v9020_v6 = vor.u32 %v11123_v1, %v9019_v0  ;;  %v8939_v55 = vld [vmem:[%s11905_s6 + $0xc80] sm:$0xf]  ;;  %v11143_v60 = vld [vmem:[%s11905_s6 + $0xdd0] sm:$0xf0]  ;;  %v11218_v63 = vld [vmem:[%s11905_s6 + $0x1028] sm:$0xf0] }
  0x69   : > { %5579 = vmatpush.bf16.msrb.mxu0 %v7980_v11  ;;  %v11078_v11 = vld [vmem:[%s11905_s6 + $0xbc8] sm:$0xf0]  ;;  %v9099_v59 = vld [vmem:[%s11905_s6 + $0xdc0] sm:$0xf]  ;;  %v9559_v0 = vld [vmem:[%s11905_s6 + $0x1158] sm:$0xf] }
  0x6a   : > { %5592 = vmatpush.bf16.msrb.mxu1 %v8140_v16  ;;  %v8680_v16 = vor.u32 %v11038_v8, %v8679_v7  ;;  %v11258_v2 = vld [vmem:[%s11905_s6 + $0x1168] sm:$0xf0]  ;;  %v9719_v3 = vld [vmem:[%s11905_s6 + $0x1298] sm:$0xf]  ;;  %v9100_v12 = vor.u32 %v11143_v60, %v9099_v59  ;;  %v9539_v23 = vld [vmem:[%s11905_s6 + $0x1130] sm:$0xf] }
  0x6b   : > { %5605 = vmatpush.bf16.msrb.mxu2 %v8300_v17  ;;  %v8840_v17 = vor.u32 %v11078_v11, %v8839_v9  ;;  %v9879_v8 = vld [vmem:[%s11905_s6 + $0x13d8] sm:$0xf]  ;;  %v11338_v9 = vld [vmem:[%s11905_s6 + $0x13e8] sm:$0xf0]  ;;  %v9359_v37 = vld [vmem:[%s11905_s6 + $0xfc8] sm:$0xf] }
  0x6c   : > { %5618 = vmatpush.bf16.msrb.mxu3 %v8460_v26  ;;  %5580 = vmatmul.bf16.vlgmr.msrb.gmra.mxu0 %v12091_v41  ;;  %v9160_v26 = vor.u32 %v11158_v15, %v9159_v14  ;;  %v1311_v14 = vunpack.c.h.b16 %v305_v61  ;;  %v9560_v15 = vor.u32 %v11258_v2, %v9559_v0  ;;  %v9880_v24 = vor.u32 %v11338_v9, %v9879_v8  ;;  %v9519_v40 = vld [vmem:[%s11905_s6 + $0x1108] sm:$0xf]  ;;  %v11283_v59 = vld [vmem:[%s11905_s6 + $0x1230] sm:$0xf0]  ;;  %v9819_v60 = vld [vmem:[%s11905_s6 + $0x1360] sm:$0xf] }
  0x6d   : > { %5624 = vmatpush.bf16.msra.mxu0 %v8760_v27  ;;  %5593 = vmatmul.bf16.vlgmr.msrb.gmra.mxu1 %v12095_v44  ;;  %v11073_v27 = vld [vmem:[%s11905_s6 + $0xba0] sm:$0xf0]  ;;  %v11198_v2 = vld [vmem:[%s11905_s6 + $0xf88] sm:$0xf0]  ;;  %v9799_v8 = vld [vmem:[%s11905_s6 + $0x1338] sm:$0xf] }
  0x6e   : > { %5637 = vmatpush.bf16.msra.mxu1 %v8920_v29  ;;  %5606 = vmatmul.bf16.vlgmr.msrb.gmra.mxu2 %v12087_v38  ;;  %v11113_v29 = vld [vmem:[%s11905_s6 + $0xce0] sm:$0xf0]  ;;  %v8820_v33 = vor.u32 %v11073_v27, %v8819_v25  ;;  %v9699_v27 = vld [vmem:[%s11905_s6 + $0x1270] sm:$0xf]  ;;  %v11318_v9 = vld [vmem:[%s11905_s6 + $0x1348] sm:$0xf0] }
  0x6f   : > { %5650 = vmatpush.bf16.msra.mxu2 %v9080_v30  ;;  %5619 = vmatmul.bf16.vlgmr.msrb.gmra.mxu3 %v12093_v42  ;;  %v9139_v30 = vld [vmem:[%s11905_s6 + $0xe10] sm:$0xf] }
  0x70   : > { %5663 = vmatpush.bf16.msra.mxu3 %v9240_v34  ;;  %v8980_v34 = vor.u32 %v11113_v29, %v8979_v28  ;;  %v9140_v39 = vor.u32 %v11153_v31, %v9139_v30  ;;  %v11293_v28 = vld [vmem:[%s11905_s6 + $0x1280] sm:$0xf0]  ;;  %v9859_v31 = vld [vmem:[%s11905_s6 + $0x13b0] sm:$0xf] }
  0x71   : > { %5625 = vmatpush.bf16.msra.mxu0 %v8740_v43  ;;  %v8959_v43 = vld [vmem:[%s11905_s6 + $0xca8] sm:$0xf]  ;;  %v9700_v36 = vor.u32 %v11293_v28, %v9699_v27 }
  0x72   : > { %5638 = vmatpush.bf16.msra.mxu1 %v8900_v45  ;;  %v11108_v45 = vld [vmem:[%s11905_s6 + $0xcb8] sm:$0xf0] }
  0x73   : > { %5651 = vmatpush.bf16.msra.mxu2 %v9060_v46  ;;  %v9119_v46 = vld [vmem:[%s11905_s6 + $0xde8] sm:$0xf]  ;;  %v8960_v54 = vor.u32 %v11108_v45, %v8959_v43  ;;  %v11248_v45 = vld [vmem:[%s11905_s6 + $0x1118] sm:$0xf0] }
  0x74   : > { %5664 = vmatpush.bf16.msra.mxu3 %v9220_v50  ;;  %v11023_v50 = vld [vmem:[%s11905_s6 + $0xa10] sm:$0xf0] }
  0x75   : > { %5626 = vmatpush.bf16.msra.mxu0 %v8720_v56  ;;  %v11103_v56 = vld [vmem:[%s11905_s6 + $0xc90] sm:$0xf0]  ;;  %v8620_v1 = vor.u32 %v11023_v50, %v8619_v48  ;;  %v9839_v48 = vld [vmem:[%s11905_s6 + $0x1388] sm:$0xf] }
  0x76   : > { %5639 = vmatpush.bf16.msra.mxu1 %v8880_v57  ;;  %v304_v57 = vld [vmem:[%s13838_s0 + $0x20] sm:$0xff]  ;;  %v8940_v7 = vor.u32 %v11103_v56, %v8939_v55 }
  0x77   : > { %5652 = vmatpush.bf16.msra.mxu2 %v9040_v58  ;;  %v9120_v58 = vor.u32 %v11148_v47, %v9119_v46  ;;  %v1309_v11 = vunpack.c.h.b16 %v304_v57  ;;  %v9679_v46 = vld [vmem:[%s11905_s6 + $0x1248] sm:$0xf]  ;;  %v11288_v47 = vld [vmem:[%s11905_s6 + $0x1258] sm:$0xf0]  ;;  %v9499_v55 = vld [vmem:[%s11905_s6 + $0x10e0] sm:$0xf] }
  0x78   : > { %5665 = vmatpush.bf16.msra.mxu3 %v9200_v62  ;;  %v9399_v62 = vld [vmem:[%s11905_s6 + $0x1018] sm:$0xf] }
  0x79   : > { %5627 = vmatpush.bf16.msra.mxu0 %v8700_v4  ;;  %v11298_v4 = vld [vmem:[%s11905_s6 + $0x12a8] sm:$0xf0]  ;;  %v9400_v13 = vor.u32 %v11218_v63, %v9399_v62  ;;  %v12173_v30 = vpack.c.b16 %v1309_v11, %v1309_v11 }
  0x7a   : > { %5640 = vmatpush.bf16.msra.mxu1 %v8860_v5  ;;  %v1308_v5 = vunpack.c.l.b16 %v304_v57  ;;  %v11243_v57 = vld [vmem:[%s11905_s6 + $0x10f0] sm:$0xf0] }
  0x7b   : > { %5653 = vmatpush.bf16.msra.mxu2 %v9020_v6  ;;  %v8780_v6 = vor.u32 %v11063_v52, %v8779_v51  ;;  %v9520_v51 = vor.u32 %v11248_v45, %v9519_v40  ;;  %v9680_v52 = vor.u32 %v11288_v47, %v9679_v46  ;;  %v9500_v63 = vor.u32 %v11243_v57, %v9499_v55  ;;  %v11268_v40 = vld [vmem:[%s11905_s6 + $0x11b8] sm:$0xf0]  ;;  %v9259_v46 = vld [vmem:[%s11905_s6 + $0xf00] sm:$0xf]  ;;  %v306_v55 = vld [vmem:[%s13838_s0 + $0x30] sm:$0xff] }
  0x7c   : > { %5666 = vmatpush.bf16.msra.mxu3 %v9180_v10  ;;  %v1310_v10 = vunpack.c.l.b16 %v305_v61  ;;  %v12166_v25 = vpack.c.b16 %v1308_v5, %v1308_v5  ;;  %v11323_v61 = vld [vmem:[%s11905_s6 + $0x1370] sm:$0xf0]  ;;  %v11238_v5 = vld [vmem:[%s11905_s6 + $0x10c8] sm:$0xf0]  ;;  %v11308_v45 = vld [vmem:[%s11905_s6 + $0x12f8] sm:$0xf0] }
  0x7d   : > { %5628 = vmatpush.bf16.msra.mxu0 %v8680_v16  ;;  %v9720_v16 = vor.u32 %v11298_v4, %v9719_v3  ;;  %v9479_v3 = vld [vmem:[%s11905_s6 + $0x10b8] sm:$0xf]  ;;  %v9820_v4 = vor.u32 %v11323_v61, %v9819_v60  ;;  %v9739_v57 = vld [vmem:[%s11905_s6 + $0x12c0] sm:$0xf]  ;;  %v11378_v61 = vld [vmem:[%s11905_s6 + $0x1528] sm:$0xf0] }
  0x7e   : > { %5641 = vmatpush.bf16.msra.mxu1 %v8840_v17  ;;  %v9379_v17 = vld [vmem:[%s11905_s6 + $0xff0] sm:$0xf]  ;;  %v12171_v29 = vpack.c.b16 %v1310_v10, %v1310_v10  ;;  %v9480_v11 = vor.u32 %v11238_v5, %v9479_v3  ;;  %v10039_v60 = vld [vmem:[%s11905_s6 + $0x1518] sm:$0xf]  ;;  %v1312_v3 = vunpack.c.l.b16 %v306_v55 }
  0x7f   : > { %5654 = vmatpush.bf16.msra.mxu2 %v9000_v21  ;;  %v11213_v21 = vld [vmem:[%s11905_s6 + $0x1000] sm:$0xf0] }
  0x80   : > { %5667 = vmatpush.bf16.msra.mxu3 %v9160_v26  ;;  %v11253_v26 = vld [vmem:[%s11905_s6 + $0x1140] sm:$0xf0] }
  0x81   : > { %5629 = vmatpush.bf16.msra.mxu0 %v8660_v32  ;;  %v11333_v32 = vld [vmem:[%s11905_s6 + $0x13c0] sm:$0xf0]  ;;  %v9540_v35 = vor.u32 %v11253_v26, %v9539_v23 }
  0x82   : > { %5642 = vmatpush.bf16.msra.mxu1 %v8820_v33  ;;  %v12177_v33 = vpack.c.b16 %v1311_v14, %v1311_v14  ;;  %v9860_v43 = vor.u32 %v11333_v32, %v9859_v31  ;;  %v11193_v14 = vld [vmem:[%s11905_s6 + $0xf60] sm:$0xf0]  ;;  %v9279_v32 = vld [vmem:[%s11905_s6 + $0xf28] sm:$0xf] }
  0x83   : > { %5655 = vmatpush.bf16.msra.mxu2 %v8980_v34  ;;  %v9380_v34 = vor.u32 %v11213_v21, %v9379_v17  ;;  %v11233_v17 = vld [vmem:[%s11905_s6 + $0x10a0] sm:$0xf0]  ;;  %v9619_v21 = vld [vmem:[%s11905_s6 + $0x11d0] sm:$0xf] }
  0x84   : > { %5668 = vmatpush.bf16.msra.mxu3 %v9140_v39  ;;  %v11208_v39 = vld [vmem:[%s11905_s6 + $0xfd8] sm:$0xf0]  ;;  %v11273_v23 = vld [vmem:[%s11905_s6 + $0x11e0] sm:$0xf0] }
  0x85   : > { %5630 = vmatpush.bf16.msra.mxu0 %v8640_v49  ;;  %v11328_v49 = vld [vmem:[%s11905_s6 + $0x1398] sm:$0xf0]  ;;  %v9360_v50 = vor.u32 %v11208_v39, %v9359_v37  ;;  %v11313_v26 = vld [vmem:[%s11905_s6 + $0x1320] sm:$0xf0]  ;;  %v9620_v31 = vor.u32 %v11273_v23, %v9619_v21  ;;  %v9599_v39 = vld [vmem:[%s11905_s6 + $0x11a8] sm:$0xf]  ;;  %v12248_v23 = vpack.c.b16 %v1312_v3, %v1312_v3 }
  0x86   : > { %5643 = vmatpush.bf16.msra.mxu1 %v8800_v53  ;;  %v9339_v53 = vld [vmem:[%s11905_s6 + $0xfa0] sm:$0xf]  ;;  %v9840_v56 = vor.u32 %v11328_v49, %v9839_v48  ;;  %v11228_v37 = vld [vmem:[%s11905_s6 + $0x1078] sm:$0xf0]  ;;  %v11183_v48 = vld [vmem:[%s11905_s6 + $0xf10] sm:$0xf0] }
  0x87   : > { %5656 = vmatpush.bf16.msra.mxu2 %v8960_v54  ;;  %v11203_v54 = vld [vmem:[%s11905_s6 + $0xfb0] sm:$0xf0]  ;;  %v9419_v49 = vld [vmem:[%s11905_s6 + $0x1040] sm:$0xf]  ;;  %v9959_v3 = vld [vmem:[%s11905_s6 + $0x1478] sm:$0xf] }
  0x88   : > { %5669 = vmatpush.bf16.msra.mxu3 %v9120_v58  ;;  %v9659_v58 = vld [vmem:[%s11905_s6 + $0x1220] sm:$0xf]  ;;  %v9340_v62 = vor.u32 %v11203_v54, %v9339_v53  ;;  %v11263_v54 = vld [vmem:[%s11905_s6 + $0x1190] sm:$0xf0] }
  0x89   : > { %5631 = vmatpush.bf16.msra.mxu0 %v8620_v1  ;;  %v9660_v0 = vor.u32 %v11283_v59, %v9659_v58  ;;  %v9319_v1 = vld [vmem:[%s11905_s6 + $0xf78] sm:$0xf]  ;;  %v9579_v53 = vld [vmem:[%s11905_s6 + $0x1180] sm:$0xf]  ;;  %v11303_v58 = vld [vmem:[%s11905_s6 + $0x12d0] sm:$0xf0] }
  0x8a   : > { %5644 = vmatpush.bf16.msra.mxu1 %v8780_v6  ;;  %v9639_v6 = vld [vmem:[%s11905_s6 + $0x11f8] sm:$0xf]  ;;  %v9320_v10 = vor.u32 %v11198_v2, %v9319_v1  ;;  %v11458_v2 = vld [vmem:[%s11905_s6 + $0x17a8] sm:$0xf0]  ;;  %v9580_v5 = vor.u32 %v11263_v54, %v9579_v53 }
  0x8b   : > { %5657 = vmatpush.bf16.msra.mxu2 %v8940_v7  ;;  %v11278_v7 = vld [vmem:[%s11905_s6 + $0x1208] sm:$0xf0]  ;;  %v307_v59 = vld [vmem:[%s13838_s0 + $0x38] sm:$0xff] }
  0x8c   : > { %5670 = vmatpush.bf16.msra.mxu3 %v9100_v12  ;;  %5632 = vmatmul.bf16.vlgmr.msra.gmra.mxu0 %v12166_v25  ;;  %v9640_v12 = vor.u32 %v11278_v7, %v9639_v6  ;;  %v10359_v1 = vld [vmem:[%s11905_s6 + $0x1798] sm:$0xf]  ;;  %v11498_v7 = vld [vmem:[%s11905_s6 + $0x18e8] sm:$0xf0] }
  0x8d   : > { %5676 = vmatpush.bf16.msrb.mxu0 %v9400_v13  ;;  %5645 = vmatmul.bf16.vlgmr.msra.gmra.mxu1 %v12173_v30  ;;  %v9299_v13 = vld [vmem:[%s11905_s6 + $0xf50] sm:$0xf]  ;;  %v10519_v6 = vld [vmem:[%s11905_s6 + $0x18d8] sm:$0xf] }
  0x8e   : > { %5689 = vmatpush.bf16.msrb.mxu1 %v9560_v15  ;;  %5658 = vmatmul.bf16.vlgmr.msra.gmra.mxu2 %v12171_v29  ;;  %v9459_v15 = vld [vmem:[%s11905_s6 + $0x1090] sm:$0xf]  ;;  %v9300_v27 = vor.u32 %v11193_v14, %v9299_v13  ;;  %v10360_v14 = vor.u32 %v11458_v2, %v10359_v1  ;;  %v10520_v21 = vor.u32 %v11498_v7, %v10519_v6  ;;  %v11398_v7 = vld [vmem:[%s11905_s6 + $0x15c8] sm:$0xf0] }
  0x8f   : > { %5702 = vmatpush.bf16.msrb.mxu2 %v9720_v16  ;;  %5671 = vmatmul.bf16.vlgmr.msra.gmra.mxu3 %v12177_v33  ;;  %v9800_v16 = vor.u32 %v11318_v9, %v9799_v8  ;;  %v9460_v28 = vor.u32 %v11233_v17, %v9459_v15  ;;  %v1314_v8 = vunpack.c.l.b16 %v307_v59  ;;  %v1313_v9 = vunpack.c.h.b16 %v306_v55  ;;  %v10019_v15 = vld [vmem:[%s11905_s6 + $0x14f0] sm:$0xf]  ;;  %v9979_v55 = vld [vmem:[%s11905_s6 + $0x14a0] sm:$0xf] }
  0x90   : > { %5715 = vmatpush.bf16.msrb.mxu3 %v9880_v24  ;;  %v9779_v24 = vld [vmem:[%s11905_s6 + $0x1310] sm:$0xf] }
  0x91   : > { %5677 = vmatpush.bf16.msrb.mxu0 %v9380_v34  ;;  %v11188_v34 = vld [vmem:[%s11905_s6 + $0xf38] sm:$0xf0]  ;;  %v10179_v17 = vld [vmem:[%s11905_s6 + $0x1630] sm:$0xf] }
  0x92   : > { %5690 = vmatpush.bf16.msrb.mxu1 %v9540_v35  ;;  %v9439_v35 = vld [vmem:[%s11905_s6 + $0x1068] sm:$0xf]  ;;  %v9280_v47 = vor.u32 %v11188_v34, %v9279_v32  ;;  %v10499_v32 = vld [vmem:[%s11905_s6 + $0x18b0] sm:$0xf]  ;;  %v11493_v34 = vld [vmem:[%s11905_s6 + $0x18c0] sm:$0xf0] }
  0x93   : > { %5703 = vmatpush.bf16.msrb.mxu2 %v9700_v36  ;;  %v9780_v36 = vor.u32 %v11313_v26, %v9779_v24  ;;  %v11413_v24 = vld [vmem:[%s11905_s6 + $0x1640] sm:$0xf0]  ;;  %v10339_v26 = vld [vmem:[%s11905_s6 + $0x1770] sm:$0xf] }
  0x94   : > { %5716 = vmatpush.bf16.msrb.mxu3 %v9860_v43  ;;  %v9759_v43 = vld [vmem:[%s11905_s6 + $0x12e8] sm:$0xf] }
  0x95   : > { %5678 = vmatpush.bf16.msrb.mxu0 %v9360_v50  ;;  %v11223_v50 = vld [vmem:[%s11905_s6 + $0x1050] sm:$0xf0] }
  0x96   : > { %5691 = vmatpush.bf16.msrb.mxu1 %v9520_v51  ;;  %v9440_v51 = vor.u32 %v11228_v37, %v9439_v35  ;;  %v10180_v37 = vor.u32 %v11413_v24, %v10179_v17  ;;  %v10099_v17 = vld [vmem:[%s11905_s6 + $0x1590] sm:$0xf]  ;;  %v11393_v24 = vld [vmem:[%s11905_s6 + $0x15a0] sm:$0xf0] }
  0x97   : > { %5704 = vmatpush.bf16.msrb.mxu2 %v9680_v52  ;;  %v9600_v52 = vor.u32 %v11268_v40, %v9599_v39  ;;  %v9999_v40 = vld [vmem:[%s11905_s6 + $0x14c8] sm:$0xf] }
  0x98   : > { %5717 = vmatpush.bf16.msrb.mxu3 %v9840_v56  ;;  %v9760_v56 = vor.u32 %v11308_v45, %v9759_v43  ;;  %v11368_v43 = vld [vmem:[%s11905_s6 + $0x14d8] sm:$0xf0]  ;;  %v10159_v45 = vld [vmem:[%s11905_s6 + $0x1608] sm:$0xf] }
  0x99   : > { %5679 = vmatpush.bf16.msrb.mxu0 %v9340_v62  ;;  %v10199_v62 = vld [vmem:[%s11905_s6 + $0x1658] sm:$0xf] }
  0x9a   : > { %5692 = vmatpush.bf16.msrb.mxu1 %v9500_v63  ;;  %v9260_v63 = vor.u32 %v11183_v48, %v9259_v46  ;;  %v10500_v46 = vor.u32 %v11493_v34, %v10499_v32  ;;  %v10319_v48 = vld [vmem:[%s11905_s6 + $0x1748] sm:$0xf]  ;;  %v10419_v32 = vld [vmem:[%s11905_s6 + $0x1810] sm:$0xf]  ;;  %v11473_v34 = vld [vmem:[%s11905_s6 + $0x1820] sm:$0xf0] }
  0x9b   : > { %5705 = vmatpush.bf16.msrb.mxu2 %v9660_v0  ;;  %v11418_v0 = vld [vmem:[%s11905_s6 + $0x1668] sm:$0xf0] }
  0x9c   : > { %5718 = vmatpush.bf16.msrb.mxu3 %v9820_v4  ;;  %v9420_v4 = vor.u32 %v11223_v50, %v9419_v49  ;;  %v10200_v13 = vor.u32 %v11418_v0, %v10199_v62  ;;  %v11448_v49 = vld [vmem:[%s11905_s6 + $0x1758] sm:$0xf0]  ;;  %v10479_v50 = vld [vmem:[%s11905_s6 + $0x1888] sm:$0xf]  ;;  %v10459_v62 = vld [vmem:[%s11905_s6 + $0x1860] sm:$0xf] }
  0x9d   : > { %5680 = vmatpush.bf16.msrb.mxu0 %v9320_v10  ;;  %v9740_v10 = vor.u32 %v11303_v58, %v9739_v57  ;;  %v10320_v54 = vor.u32 %v11448_v49, %v10319_v48  ;;  %v10139_v57 = vld [vmem:[%s11905_s6 + $0x15e0] sm:$0xf]  ;;  %v10239_v48 = vld [vmem:[%s11905_s6 + $0x16a8] sm:$0xf]  ;;  %v11428_v49 = vld [vmem:[%s11905_s6 + $0x16b8] sm:$0xf0] }
  0x9e   : > { %5693 = vmatpush.bf16.msrb.mxu1 %v9480_v11  ;;  %v10040_v11 = vor.u32 %v11378_v61, %v10039_v60  ;;  %v10299_v60 = vld [vmem:[%s11905_s6 + $0x1720] sm:$0xf]  ;;  %v11443_v61 = vld [vmem:[%s11905_s6 + $0x1730] sm:$0xf0] }
  0x9f   : > { %5706 = vmatpush.bf16.msrb.mxu2 %v9640_v12  ;;  %v1315_v12 = vunpack.c.h.b16 %v307_v59  ;;  %v11403_v59 = vld [vmem:[%s11905_s6 + $0x15f0] sm:$0xf0]  ;;  %v10300_v2 = vor.u32 %v11443_v61, %v10299_v60  ;;  %v308_v61 = vld [vmem:[%s13838_s0 + $0x40] sm:$0xff] }
  0xa0   : > { %5719 = vmatpush.bf16.msrb.mxu3 %v9800_v16  ;;  %v11373_v16 = vld [vmem:[%s11905_s6 + $0x1500] sm:$0xf0]  ;;  %v10140_v1 = vor.u32 %v11403_v59, %v10139_v57  ;;  %v10219_v59 = vld [vmem:[%s11905_s6 + $0x1680] sm:$0xf]  ;;  %v11423_v60 = vld [vmem:[%s11905_s6 + $0x1690] sm:$0xf0] }
  0xa1   : > { %5681 = vmatpush.bf16.msrb.mxu0 %v9300_v27  ;;  %v11453_v27 = vld [vmem:[%s11905_s6 + $0x1780] sm:$0xf0]  ;;  %v12259_v35 = vpack.c.b16 %v1315_v12, %v1315_v12 }
  0xa2   : > { %5694 = vmatpush.bf16.msrb.mxu1 %v9460_v28  ;;  %v12253_v28 = vpack.c.b16 %v1314_v8, %v1314_v8  ;;  %v10340_v39 = vor.u32 %v11453_v27, %v10339_v26  ;;  %v10279_v8 = vld [vmem:[%s11905_s6 + $0x16f8] sm:$0xf]  ;;  %v10259_v26 = vld [vmem:[%s11905_s6 + $0x16d0] sm:$0xf]  ;;  %v11433_v27 = vld [vmem:[%s11905_s6 + $0x16e0] sm:$0xf0] }
  0xa3   : > { %5707 = vmatpush.bf16.msrb.mxu2 %v9620_v31  ;;  %v12255_v31 = vpack.c.b16 %v1313_v9, %v1313_v9  ;;  %v11438_v9 = vld [vmem:[%s11905_s6 + $0x1708] sm:$0xf0] }
  0xa4   : > { %5720 = vmatpush.bf16.msrb.mxu3 %v9780_v36  ;;  %v10020_v36 = vor.u32 %v11373_v16, %v10019_v15  ;;  %v9939_v15 = vld [vmem:[%s11905_s6 + $0x1450] sm:$0xf]  ;;  %v11353_v16 = vld [vmem:[%s11905_s6 + $0x1460] sm:$0xf0] }
  0xa5   : > { %5682 = vmatpush.bf16.msrb.mxu0 %v9280_v47  ;;  %v11408_v47 = vld [vmem:[%s11905_s6 + $0x1618] sm:$0xf0] }
  0xa6   : > { %5695 = vmatpush.bf16.msrb.mxu1 %v9440_v51  ;;  %v11488_v51 = vld [vmem:[%s11905_s6 + $0x1898] sm:$0xf0]  ;;  %v10160_v53 = vor.u32 %v11408_v47, %v10159_v45  ;;  %v10079_v45 = vld [vmem:[%s11905_s6 + $0x1568] sm:$0xf] }
  0xa7   : > { %5708 = vmatpush.bf16.msrb.mxu2 %v9600_v52  ;;  %v10000_v52 = vor.u32 %v11368_v43, %v9999_v40  ;;  %v10480_v58 = vor.u32 %v11488_v51, %v10479_v50  ;;  %v9919_v40 = vld [vmem:[%s11905_s6 + $0x1428] sm:$0xf]  ;;  %v11348_v43 = vld [vmem:[%s11905_s6 + $0x1438] sm:$0xf0] }
  0xa8   : > { %5721 = vmatpush.bf16.msrb.mxu3 %v9760_v56  ;;  %v11363_v56 = vld [vmem:[%s11905_s6 + $0x14b0] sm:$0xf0]  ;;  %v11388_v47 = vld [vmem:[%s11905_s6 + $0x1578] sm:$0xf0]  ;;  %v10399_v50 = vld [vmem:[%s11905_s6 + $0x17e8] sm:$0xf] }
  0xa9   : > { %5683 = vmatpush.bf16.msrb.mxu0 %v9260_v63  ;;  %v11483_v63 = vld [vmem:[%s11905_s6 + $0x1870] sm:$0xf0]  ;;  %v9980_v0 = vor.u32 %v11363_v56, %v9979_v55  ;;  %v11468_v51 = vld [vmem:[%s11905_s6 + $0x17f8] sm:$0xf0]  ;;  %v10059_v55 = vld [vmem:[%s11905_s6 + $0x1540] sm:$0xf]  ;;  %v10080_v57 = vor.u32 %v11388_v47, %v10079_v45 }
  0xaa   : > { %5696 = vmatpush.bf16.msrb.mxu1 %v9420_v4  ;;  %v11358_v4 = vld [vmem:[%s11905_s6 + $0x1488] sm:$0xf0]  ;;  %v10460_v6 = vor.u32 %v11483_v63, %v10459_v62  ;;  %v11383_v56 = vld [vmem:[%s11905_s6 + $0x1550] sm:$0xf0]  ;;  %v10400_v62 = vor.u32 %v11468_v51, %v10399_v50  ;;  %v10379_v63 = vld [vmem:[%s11905_s6 + $0x17c0] sm:$0xf] }
  0xab   : > { %5709 = vmatpush.bf16.msrb.mxu2 %v9580_v5  ;;  %v10119_v5 = vld [vmem:[%s11905_s6 + $0x15b8] sm:$0xf]  ;;  %v9960_v12 = vor.u32 %v11358_v4, %v9959_v3  ;;  %v7481_v3 = vld [vmem:[%s11905_s6 + $0x12c] sm:$0xf0]  ;;  %v10776_v4 = vld [vmem:[%s11905_s6 + $0x25c] sm:$0xf] }
  0xac   : > { %5722 = vmatpush.bf16.msrb.mxu3 %v9740_v10  ;;  %5684 = vmatmul.bf16.vlgmr.msrb.gmra.mxu0 %v12248_v23  ;;  %v10439_v10 = vld [vmem:[%s11905_s6 + $0x1838] sm:$0xf]  ;;  %v10851_v47 = vld [vmem:[%s11905_s6 + $0x4b4] sm:$0xf] }
  0xad   : > { %5728 = vmatpush.bf16.msra.mxu0 %v10040_v11  ;;  %5697 = vmatmul.bf16.vlgmr.msrb.gmra.mxu1 %v12255_v31  ;;  %v11478_v11 = vld [vmem:[%s11905_s6 + $0x1848] sm:$0xf0] }
  0xae   : > { %5741 = vmatpush.bf16.msra.mxu1 %v10200_v13  ;;  %5710 = vmatmul.bf16.vlgmr.msrb.gmra.mxu2 %v12253_v28  ;;  %v10120_v13 = vor.u32 %v11398_v7, %v10119_v5  ;;  %v10816_v7 = vld [vmem:[%s11905_s6 + $0x39c] sm:$0xf] }
  0xaf   : > { %5754 = vmatpush.bf16.msra.mxu2 %v10360_v14  ;;  %5723 = vmatmul.bf16.vlgmr.msrb.gmra.mxu3 %v12259_v35  ;;  %v10280_v14 = vor.u32 %v11438_v9, %v10279_v8  ;;  %v7801_v8 = vld [vmem:[%s11905_s6 + $0x3ac] sm:$0xf0]  ;;  %v1316_v9 = vunpack.c.l.b16 %v308_v61 }
  0xb0   : > { %5767 = vmatpush.bf16.msra.mxu3 %v10520_v21  ;;  %v10440_v21 = vor.u32 %v11478_v11, %v10439_v10  ;;  %v10060_v10 = vor.u32 %v11383_v56, %v10059_v55  ;;  %v10220_v11 = vor.u32 %v11423_v60, %v10219_v59  ;;  %v10766_v55 = vld [vmem:[%s11905_s6 + $0x20c] sm:$0xf]  ;;  %v7761_v59 = vld [vmem:[%s11905_s6 + $0x35c] sm:$0xf0] }
  0xb1   : > { %5729 = vmatpush.bf16.msra.mxu0 %v10020_v36  ;;  %v9940_v36 = vor.u32 %v11353_v16, %v9939_v15  ;;  %v1317_v15 = vunpack.c.h.b16 %v308_v61  ;;  %v10846_v60 = vld [vmem:[%s11905_s6 + $0x48c] sm:$0xf]  ;;  %v7921_v61 = vld [vmem:[%s11905_s6 + $0x49c] sm:$0xf0] }
  0xb2   : > { %5742 = vmatpush.bf16.msra.mxu1 %v10180_v37  ;;  %v10100_v37 = vor.u32 %v11393_v24, %v10099_v17 }
  0xb3   : > { %5755 = vmatpush.bf16.msra.mxu2 %v10340_v39  ;;  %v10260_v39 = vor.u32 %v11433_v27, %v10259_v26  ;;  %v7804_v26 = vor.u32 %v10816_v7, %v7801_v8  ;;  %v10731_v27 = vld [vmem:[%s11905_s6 + $0xf4] sm:$0xf]  ;;  %v7741_v7 = vld [vmem:[%s11905_s6 + $0x334] sm:$0xf0]  ;;  %v10841_v8 = vld [vmem:[%s11905_s6 + $0x464] sm:$0xf] }
  0xb4   : > { %5768 = vmatpush.bf16.msra.mxu3 %v10500_v46  ;;  %v10420_v46 = vor.u32 %v11473_v34, %v10419_v32  ;;  %v7461_v32 = vld [vmem:[%s11905_s6 + $0x104] sm:$0xf0]  ;;  %v10771_v34 = vld [vmem:[%s11905_s6 + $0x234] sm:$0xf] }
  0xb5   : > { %5730 = vmatpush.bf16.msra.mxu0 %v10000_v52  ;;  %v9899_v52 = vld [vmem:[%s11905_s6 + $0x1400] sm:$0xf]  ;;  %v7464_v50 = vor.u32 %v10731_v27, %v7461_v32  ;;  %v10836_v27 = vld [vmem:[%s11905_s6 + $0x43c] sm:$0xf]  ;;  %v7881_v32 = vld [vmem:[%s11905_s6 + $0x44c] sm:$0xf0] }
  0xb6   : > { %5743 = vmatpush.bf16.msra.mxu1 %v10160_v53  ;;  %v9920_v53 = vor.u32 %v11348_v43, %v9919_v40  ;;  %v10811_v40 = vld [vmem:[%s11905_s6 + $0x374] sm:$0xf]  ;;  %v7781_v43 = vld [vmem:[%s11905_s6 + $0x384] sm:$0xf0] }
  0xb7   : > { %5756 = vmatpush.bf16.msra.mxu2 %v10320_v54  ;;  %v11343_v54 = vld [vmem:[%s11905_s6 + $0x1410] sm:$0xf0] }
  0xb8   : > { %5769 = vmatpush.bf16.msra.mxu3 %v10480_v58  ;;  %v10240_v58 = vor.u32 %v11428_v49, %v10239_v48  ;;  %v9900_v5 = vor.u32 %v11343_v54, %v9899_v52  ;;  %v7941_v48 = vld [vmem:[%s11905_s6 + $0x4c4] sm:$0xf0]  ;;  %v7784_v52 = vor.u32 %v10811_v40, %v7781_v43  ;;  %v7441_v54 = vld [vmem:[%s11905_s6 + $0xdc] sm:$0xf0] }
  0xb9   : > { %5731 = vmatpush.bf16.msra.mxu0 %v9980_v0  ;;  %v11463_v0 = vld [vmem:[%s11905_s6 + $0x17d0] sm:$0xf0]  ;;  %v7944_v56 = vor.u32 %v10851_v47, %v7941_v48  ;;  %v7381_v43 = vld [vmem:[%s11905_s6 + $0x64] sm:$0xf0] }
  0xba   : > { %5744 = vmatpush.bf16.msra.mxu1 %v10140_v1  ;;  %v309_v1 = vld [vmem:[%s13838_s0 + $0x48] sm:$0xff]  ;;  %v10380_v16 = vor.u32 %v11463_v0, %v10379_v63  ;;  %v10751_v47 = vld [vmem:[%s11905_s6 + $0x194] sm:$0xf] }
  0xbb   : > { %5757 = vmatpush.bf16.msra.mxu2 %v10300_v2  ;;  %v10736_v2 = vld [vmem:[%s11905_s6 + $0x11c] sm:$0xf] }
  0xbc   : > { %5770 = vmatpush.bf16.msra.mxu3 %v10460_v6  ;;  %v7641_v6 = vld [vmem:[%s11905_s6 + $0x26c] sm:$0xf0]  ;;  %v7484_v17 = vor.u32 %v10736_v2, %v7481_v3  ;;  %v7421_v2 = vld [vmem:[%s11905_s6 + $0xb4] sm:$0xf0]  ;;  %v10761_v3 = vld [vmem:[%s11905_s6 + $0x1e4] sm:$0xf] }
  0xbd   : > { %5732 = vmatpush.bf16.msra.mxu0 %v9960_v12  ;;  %v10856_v12 = vld [vmem:[%s11905_s6 + $0x4dc] sm:$0xf]  ;;  %v7644_v24 = vor.u32 %v10776_v4, %v7641_v6  ;;  %v7924_v4 = vor.u32 %v10846_v60, %v7921_v61  ;;  %v10801_v6 = vld [vmem:[%s11905_s6 + $0x324] sm:$0xf]  ;;  %v10706_v60 = vld [vmem:[%s11905_s6 + $0x2c] sm:$0xf] }
  0xbe   : > { %5745 = vmatpush.bf16.msra.mxu1 %v10120_v13  ;;  %v7961_v13 = vld [vmem:[%s11905_s6 + $0x4ec] sm:$0xf0]  ;;  %v7361_v61 = vld [vmem:[%s11905_s6 + $0x3c] sm:$0xf0] }
  0xbf   : > { %5758 = vmatpush.bf16.msra.mxu2 %v10280_v14  ;;  %v1318_v14 = vunpack.c.l.b16 %v309_v1 }
  0xc0   : > { %5771 = vmatpush.bf16.msra.mxu3 %v10440_v21  ;;  %v1319_v21 = vunpack.c.h.b16 %v309_v1  ;;  %v10721_v1 = vld [vmem:[%s11905_s6 + $0xa4] sm:$0xf] }
  0xc1   : > { %5733 = vmatpush.bf16.msra.mxu0 %v9940_v36  ;;  %v7964_v36 = vor.u32 %v10856_v12, %v7961_v13  ;;  %v12336_v45 = vpack.c.b16 %v1318_v14, %v1318_v14  ;;  %v7401_v12 = vld [vmem:[%s11905_s6 + $0x8c] sm:$0xf0]  ;;  %v7744_v14 = vor.u32 %v10801_v6, %v7741_v7  ;;  %v7841_v6 = vld [vmem:[%s11905_s6 + $0x3fc] sm:$0xf0] }
  0xc2   : > { %5746 = vmatpush.bf16.msra.mxu1 %v10100_v37  ;;  %v12331_v37 = vpack.c.b16 %v1316_v9, %v1316_v9  ;;  %v12342_v49 = vpack.c.b16 %v1319_v21, %v1319_v21  ;;  %v7901_v9 = vld [vmem:[%s11905_s6 + $0x474] sm:$0xf0] }
  0xc3   : > { %5759 = vmatpush.bf16.msra.mxu2 %v10260_v39  ;;  %v7621_v39 = vld [vmem:[%s11905_s6 + $0x244] sm:$0xf0]  ;;  %v7904_v21 = vor.u32 %v10841_v8, %v7901_v9  ;;  %v7364_v8 = vor.u32 %v10706_v60, %v7361_v61  ;;  %v10701_v9 = vld [vmem:[%s11905_s6 + $0x4] sm:$0xf]  ;;  %v10891_v61 = vld [vmem:[%s11905_s6 + $0x5f4] sm:$0xf] }
  0xc4   : > { %5772 = vmatpush.bf16.msra.mxu3 %v10420_v46  ;;  %v12338_v46 = vpack.c.b16 %v1317_v15, %v1317_v15  ;;  %v7624_v51 = vor.u32 %v10771_v34, %v7621_v39  ;;  %v10756_v15 = vld [vmem:[%s11905_s6 + $0x1bc] sm:$0xf] }
  0xc5   : > { %5734 = vmatpush.bf16.msra.mxu0 %v9920_v53  ;;  %v10726_v53 = vld [vmem:[%s11905_s6 + $0xcc] sm:$0xf] }
  0xc6   : > { %5747 = vmatpush.bf16.msra.mxu1 %v10080_v57  ;;  %v7601_v57 = vld [vmem:[%s11905_s6 + $0x21c] sm:$0xf0] }
  0xc7   : > { %5760 = vmatpush.bf16.msra.mxu2 %v10240_v58  ;;  %v10806_v58 = vld [vmem:[%s11905_s6 + $0x34c] sm:$0xf]  ;;  %v7604_v63 = vor.u32 %v10766_v55, %v7601_v57  ;;  %v7861_v55 = vld [vmem:[%s11905_s6 + $0x424] sm:$0xf0] }
  0xc8   : > { %5773 = vmatpush.bf16.msra.mxu3 %v10400_v62  ;;  %v7444_v62 = vor.u32 %v10726_v53, %v7441_v54  ;;  %v7764_v0 = vor.u32 %v10806_v58, %v7761_v59  ;;  %v7701_v53 = vld [vmem:[%s11905_s6 + $0x2e4] sm:$0xf0]  ;;  %v10831_v54 = vld [vmem:[%s11905_s6 + $0x414] sm:$0xf] }
  0xc9   : > { %5735 = vmatpush.bf16.msra.mxu0 %v9900_v5  ;;  %v7581_v5 = vld [vmem:[%s11905_s6 + $0x1f4] sm:$0xf0]  ;;  %v5529_v57 = vpop.f32.mrf.mxu0 }
  0xca   : > { %5748 = vmatpush.bf16.msra.mxu1 %v10060_v10  ;;  %v7424_v10 = vor.u32 %v10721_v1, %v7421_v2  ;;  %v7584_v13 = vor.u32 %v10761_v3, %v7581_v5  ;;  %v7864_v1 = vor.u32 %v10831_v54, %v7861_v55  ;;  %v7521_v2 = vld [vmem:[%s11905_s6 + $0x17c] sm:$0xf0]  ;;  %v10786_v3 = vld [vmem:[%s11905_s6 + $0x2ac] sm:$0xf]  ;;  %v11016_v54 = vld [vmem:[%s11905_s6 + $0x9dc] sm:$0xf] }
  0xcb   : > { %5761 = vmatpush.bf16.msra.mxu2 %v10220_v11  ;;  %v10716_v11 = vld [vmem:[%s11905_s6 + $0x7c] sm:$0xf]  ;;  %v10826_v5 = vld [vmem:[%s11905_s6 + $0x3ec] sm:$0xf]  ;;  %v8601_v55 = vld [vmem:[%s11905_s6 + $0x9ec] sm:$0xf0] }
  0xcc   : > { %5774 = vmatpush.bf16.msra.mxu3 %v10380_v16  ;;  %5736 = vmatmul.bf16.vlgmr.msra.gmra.mxu0 %v12331_v37  ;;  %v7561_v16 = vld [vmem:[%s11905_s6 + $0x1cc] sm:$0xf0]  ;;  %v7404_v34 = vor.u32 %v10716_v11, %v7401_v12 }
  0xcd   : > { %5780 = vmatpush.bf16.msrb.mxu0 %v7484_v17  ;;  %5749 = vmatmul.bf16.vlgmr.msra.gmra.mxu1 %v12338_v46  ;;  %v10796_v17 = vld [vmem:[%s11905_s6 + $0x2fc] sm:$0xf]  ;;  %v7564_v39 = vor.u32 %v10756_v15, %v7561_v16  ;;  %v10781_v15 = vld [vmem:[%s11905_s6 + $0x284] sm:$0xf] }
  0xce   : > { %5793 = vmatpush.bf16.msrb.mxu1 %v7644_v24  ;;  %5762 = vmatmul.bf16.vlgmr.msra.gmra.mxu2 %v12336_v45  ;;  %v7721_v24 = vld [vmem:[%s11905_s6 + $0x30c] sm:$0xf0] }
  0xcf   : > { %5806 = vmatpush.bf16.msrb.mxu2 %v7804_v26  ;;  %5775 = vmatmul.bf16.vlgmr.msra.gmra.mxu3 %v12342_v49  ;;  %v1278_v26 = vld [vmem:[%s12371_s12] ss:$2 sm:$0x1f]  ;;  %v7724_v40 = vor.u32 %v10796_v17, %v7721_v24  ;;  %v7844_v17 = vor.u32 %v10826_v5, %v7841_v6 }
  0xd0   : > { %5819 = vmatpush.bf16.msrb.mxu3 %v7964_v36  ;;  %v10711_v36 = vld [vmem:[%s11905_s6 + $0x54] sm:$0xf]  ;;  %v1280_v48 = vperm.slane %v1278_v26, 0  ;;  %v10821_v24 = vld [vmem:[%s11905_s6 + $0x3c4] sm:$0xf] }
  0xd1   : > { %5781 = vmatpush.bf16.msrb.mxu0 %v7464_v50  ;;  %v7884_v50 = vor.u32 %v10836_v27, %v7881_v32  ;;  %v5555_v16 = vpop.f32.mrf.mxu2  ;;  %v7821_v26 = vld [vmem:[%s11905_s6 + $0x3d4] sm:$0xf0]  ;;  %v8581_v5 = vld [vmem:[%s11905_s6 + $0x9c4] sm:$0xf0] }
  0xd2   : > { %5794 = vmatpush.bf16.msrb.mxu1 %v7624_v51  ;;  %v7541_v51 = vld [vmem:[%s11905_s6 + $0x1a4] sm:$0xf0]  ;;  %v5568_v32 = vpop.f32.mrf.mxu3 }
  0xd3   : > { %5807 = vmatpush.bf16.msrb.mxu2 %v7784_v52  ;;  %v10791_v52 = vld [vmem:[%s11905_s6 + $0x2d4] sm:$0xf]  ;;  %v7544_v58 = vor.u32 %v10751_v47, %v7541_v51  ;;  %v10976_v47 = vld [vmem:[%s11905_s6 + $0x89c] sm:$0xf]  ;;  %v5531_v51 = vpop.f32.mrf.mxu0 }
  0xd4   : > { %5820 = vmatpush.bf16.msrb.mxu3 %v7944_v56  ;;  %v7384_v56 = vor.u32 %v10711_v36, %v7381_v43  ;;  %v7704_v59 = vor.u32 %v10791_v52, %v7701_v53  ;;  %v8121_v36 = vld [vmem:[%s11905_s6 + $0x62c] sm:$0xf0]  ;;  %v11001_v51 = vld [vmem:[%s11905_s6 + $0x964] sm:$0xf] }
  0xd5   : > { %5782 = vmatpush.bf16.msrb.mxu0 %v7444_v62  ;;  %v10746_v62 = vld [vmem:[%s11905_s6 + $0x16c] sm:$0xf]  ;;  %v8281_v43 = vld [vmem:[%s11905_s6 + $0x76c] sm:$0xf0] }
  0xd6   : > { %5795 = vmatpush.bf16.msrb.mxu1 %v7604_v63  ;;  %v5530_v63 = vadd.f32 %v5529_v57, %v1280_v48  ;;  %v7524_v11 = vor.u32 %v10746_v62, %v7521_v2  ;;  %v8441_v48 = vld [vmem:[%s11905_s6 + $0x8ac] sm:$0xf0]  ;;  %v7824_v57 = vor.u32 %v10821_v24, %v7821_v26  ;;  %v8101_v62 = vld [vmem:[%s11905_s6 + $0x604] sm:$0xf0]  ;;  %v10971_v2 = vld [vmem:[%s11905_s6 + $0x874] sm:$0xf] }
  0xd7   : > { %5808 = vmatpush.bf16.msrb.mxu2 %v7764_v0  ;;  %v5542_v0 = vpop.f32.mrf.mxu1  ;;  %v8444_v60 = vor.u32 %v10976_v47, %v8441_v48  ;;  %v8561_v24 = vld [vmem:[%s11905_s6 + $0x99c] sm:$0xf0]  ;;  %v10961_v47 = vld [vmem:[%s11905_s6 + $0x824] sm:$0xf]  ;;  %v8381_v48 = vld [vmem:[%s11905_s6 + $0x834] sm:$0xf0] }
  0xd8   : > { %5821 = vmatpush.bf16.msrb.mxu3 %v7924_v4  ;;  %v7681_v4 = vld [vmem:[%s11905_s6 + $0x2bc] sm:$0xf0]  ;;  %v5543_v7 = vadd.f32 %v5542_v0, %v5530_v63  ;;  %v10931_v63 = vld [vmem:[%s11905_s6 + $0x734] sm:$0xf]  ;;  %v8604_v0 = vor.u32 %v11016_v54, %v8601_v55 }
  0xd9   : > { %5783 = vmatpush.bf16.msrb.mxu0 %v7424_v10  ;;  %v7341_v10 = vld [vmem:[%s11905_s6 + $0x14] sm:$0xf0]  ;;  %v7684_v12 = vor.u32 %v10786_v3, %v7681_v4  ;;  %v8421_v3 = vld [vmem:[%s11905_s6 + $0x884] sm:$0xf0]  ;;  %v11011_v4 = vld [vmem:[%s11905_s6 + $0x9b4] sm:$0xf]  ;;  %v5557_v6 = vpop.f32.mrf.mxu2 }
  0xda   : > { %5796 = vmatpush.bf16.msrb.mxu1 %v7584_v13  ;;  %v10741_v13 = vld [vmem:[%s11905_s6 + $0x144] sm:$0xf]  ;;  %v5556_v27 = vadd.f32 %v5555_v16, %v5543_v7  ;;  %v8104_v7 = vor.u32 %v10891_v61, %v8101_v62  ;;  %v10966_v16 = vld [vmem:[%s11905_s6 + $0x84c] sm:$0xf] }
  0xdb   : > { %5809 = vmatpush.bf16.msrb.mxu2 %v7744_v14  ;;  %v7501_v14 = vld [vmem:[%s11905_s6 + $0x154] sm:$0xf0] }
  0xdc   : > { %5822 = vmatpush.bf16.msrb.mxu3 %v7904_v21  ;;  %v7661_v21 = vld [vmem:[%s11905_s6 + $0x294] sm:$0xf0]  ;;  %v7504_v52 = vor.u32 %v10741_v13, %v7501_v14  ;;  %v10926_v13 = vld [vmem:[%s11905_s6 + $0x70c] sm:$0xf]  ;;  %v8584_v14 = vor.u32 %v11011_v4, %v8581_v5 }
  0xdd   : > { %5784 = vmatpush.bf16.msrb.mxu0 %v7404_v34  ;;  %v10896_v34 = vld [vmem:[%s11905_s6 + $0x61c] sm:$0xf]  ;;  %v7664_v53 = vor.u32 %v10781_v15, %v7661_v21  ;;  %v8241_v15 = vld [vmem:[%s11905_s6 + $0x71c] sm:$0xf0]  ;;  %v11006_v21 = vld [vmem:[%s11905_s6 + $0x98c] sm:$0xf] }
  0xde   : > { %5797 = vmatpush.bf16.msrb.mxu1 %v7564_v39  ;;  %v10936_v39 = vld [vmem:[%s11905_s6 + $0x75c] sm:$0xf] }
  0xdf   : > { %5810 = vmatpush.bf16.msrb.mxu2 %v7724_v40  ;;  %v7344_v40 = vor.u32 %v10701_v9, %v7341_v10  ;;  %v8424_v10 = vor.u32 %v10971_v2, %v8421_v3  ;;  %v10996_v2 = vld [vmem:[%s11905_s6 + $0x93c] sm:$0xf]  ;;  %v8521_v3 = vld [vmem:[%s11905_s6 + $0x94c] sm:$0xf0] }
  0xe0   : > { %5823 = vmatpush.bf16.msrb.mxu3 %v7884_v50  ;;  %v12406_v50 = vadd.f32 %v5568_v32, %v5556_v27  ;;  %v8244_v27 = vor.u32 %v10926_v13, %v8241_v15  ;;  %v10951_v13 = vld [vmem:[%s11905_s6 + $0x7d4] sm:$0xf] }
  0xe1   : > { %5785 = vmatpush.bf16.msrb.mxu0 %v7384_v56  ;;  %v5544_v56 = vpop.f32.mrf.mxu1 }
  0xe2   : > { %5798 = vmatpush.bf16.msrb.mxu1 %v7544_v58  ;;  %v8124_v58 = vor.u32 %v10896_v34, %v8121_v36  ;;  %v10881_v34 = vld [vmem:[%s11905_s6 + $0x5a4] sm:$0xf]  ;;  %v8061_v36 = vld [vmem:[%s11905_s6 + $0x5b4] sm:$0xf0]  ;;  %v8384_v56 = vor.u32 %v10961_v47, %v8381_v48  ;;  %v8161_v48 = vld [vmem:[%s11905_s6 + $0x67c] sm:$0xf0] }
  0xe3   : > { %5811 = vmatpush.bf16.msrb.mxu2 %v7704_v59  ;;  %v8284_v59 = vor.u32 %v10936_v39, %v8281_v43  ;;  %v10921_v39 = vld [vmem:[%s11905_s6 + $0x6e4] sm:$0xf]  ;;  %v8221_v43 = vld [vmem:[%s11905_s6 + $0x6f4] sm:$0xf0] }
  0xe4   : > { %5824 = vmatpush.bf16.msrb.mxu3 %v7864_v1  ;;  %v8261_v1 = vld [vmem:[%s11905_s6 + $0x744] sm:$0xf0]  ;;  %v8224_v55 = vor.u32 %v10921_v39, %v8221_v43  ;;  %v8001_v39 = vld [vmem:[%s11905_s6 + $0x53c] sm:$0xf0] }
  0xe5   : > { %5786 = vmatpush.bf16.msrb.mxu0 %v7364_v8  ;;  %v5570_v8 = vpop.f32.mrf.mxu3  ;;  %v8264_v9 = vor.u32 %v10931_v63, %v8261_v1  ;;  %v8201_v63 = vld [vmem:[%s11905_s6 + $0x6cc] sm:$0xf0] }
  0xe6   : > { %5799 = vmatpush.bf16.msrb.mxu1 %v7524_v11  ;;  %v10886_v11 = vld [vmem:[%s11905_s6 + $0x5cc] sm:$0xf]  ;;  %v8361_v1 = vld [vmem:[%s11905_s6 + $0x80c] sm:$0xf0]  ;;  %v8021_v8 = vld [vmem:[%s11905_s6 + $0x564] sm:$0xf0] }
  0xe7   : > { %5812 = vmatpush.bf16.msrb.mxu2 %v7684_v12  ;;  %v8081_v12 = vld [vmem:[%s11905_s6 + $0x5dc] sm:$0xf0] }
  0xe8   : > { %5825 = vmatpush.bf16.msrb.mxu3 %v7844_v17  ;;  %v8401_v17 = vld [vmem:[%s11905_s6 + $0x85c] sm:$0xf0]  ;;  %v8084_v26 = vor.u32 %v10886_v11, %v8081_v12  ;;  %v8524_v11 = vor.u32 %v10996_v2, %v8521_v3  ;;  %v8181_v12 = vld [vmem:[%s11905_s6 + $0x6a4] sm:$0xf0]  ;;  %v10981_v2 = vld [vmem:[%s11905_s6 + $0x8c4] sm:$0xf] }
  0xe9   : > { %5787 = vmatpush.bf16.msrb.mxu0 %v7344_v40  ;;  %v8404_v32 = vor.u32 %v10966_v16, %v8401_v17  ;;  %v8564_v40 = vor.u32 %v11006_v21, %v8561_v24  ;;  %v5581_v54 = vpop.f32.mrf.mxu0  ;;  %v10991_v17 = vld [vmem:[%s11905_s6 + $0x914] sm:$0xf]  ;;  %v8501_v21 = vld [vmem:[%s11905_s6 + $0x924] sm:$0xf0]  ;;  %v8461_v3 = vld [vmem:[%s11905_s6 + $0x8d4] sm:$0xf0] }
  0xea   : > { %5800 = vmatpush.bf16.msrb.mxu1 %v7504_v52  ;;  %v8541_v52 = vld [vmem:[%s11905_s6 + $0x974] sm:$0xf0]  ;;  %v5594_v61 = vpop.f32.mrf.mxu1  ;;  %v8504_v47 = vor.u32 %v10991_v17, %v8501_v21 }
  0xeb   : > { %5813 = vmatpush.bf16.msrb.mxu2 %v7664_v53  ;;  %v8064_v53 = vor.u32 %v10881_v34, %v8061_v36  ;;  %v8544_v62 = vor.u32 %v11001_v51, %v8541_v52  ;;  %v10866_v36 = vld [vmem:[%s11905_s6 + $0x52c] sm:$0xf]  ;;  %v8321_v52 = vld [vmem:[%s11905_s6 + $0x7bc] sm:$0xf0] }
  0xec   : > { %5826 = vmatpush.bf16.msrb.mxu3 %v7824_v57  ;;  %5788 = vmatmul.bf16.vlgmr.msrb.gmra.mxu0 %v12025_v19  ;;  %v10876_v57 = vld [vmem:[%s11905_s6 + $0x57c] sm:$0xf]  ;;  %v10946_v51 = vld [vmem:[%s11905_s6 + $0x7ac] sm:$0xf] }
  0xed   : > { %5832 = vmatpush.bf16.msra.mxu0 %v8124_v58  ;;  %5801 = vmatmul.bf16.vlgmr.msrb.gmra.mxu1 %v12029_v22  ;;  %v8041_v58 = vld [vmem:[%s11905_s6 + $0x58c] sm:$0xf0] }
  0xee   : > { %5845 = vmatpush.bf16.msra.mxu1 %v8284_v59  ;;  %5814 = vmatmul.bf16.vlgmr.msrb.gmra.mxu2 %v12023_v18  ;;  %v10916_v59 = vld [vmem:[%s11905_s6 + $0x6bc] sm:$0xf]  ;;  %v8044_v5 = vor.u32 %v10876_v57, %v8041_v58  ;;  %v7981_v57 = vld [vmem:[%s11905_s6 + $0x514] sm:$0xf0] }
  0xef   : > { %5858 = vmatpush.bf16.msra.mxu2 %v8444_v60  ;;  %5827 = vmatmul.bf16.vlgmr.msrb.gmra.mxu3 %v12027_v20  ;;  %v5582_v60 = vadd.f32 %v5581_v54, %v12406_v50  ;;  %v8204_v50 = vor.u32 %v10916_v59, %v8201_v63  ;;  %v8481_v54 = vld [vmem:[%s11905_s6 + $0x8fc] sm:$0xf0]  ;;  %v8324_v59 = vor.u32 %v10946_v51, %v8321_v52 }
  0xf0   : > { %5871 = vmatpush.bf16.msra.mxu3 %v8604_v0  ;;  %v10956_v0 = vld [vmem:[%s11905_s6 + $0x7fc] sm:$0xf] }
  0xf1   : > { %5833 = vmatpush.bf16.msra.mxu0 %v8104_v7  ;;  %v5595_v4 = vadd.f32 %v5594_v61, %v5582_v60  ;;  %v8364_v6 = vor.u32 %v10956_v0, %v8361_v1  ;;  %v10871_v7 = vld [vmem:[%s11905_s6 + $0x554] sm:$0xf]  ;;  %v10901_v60 = vld [vmem:[%s11905_s6 + $0x644] sm:$0xf]  ;;  %v8141_v61 = vld [vmem:[%s11905_s6 + $0x654] sm:$0xf0] }
  0xf2   : > { %5846 = vmatpush.bf16.msra.mxu1 %v8264_v9  ;;  %v10911_v9 = vld [vmem:[%s11905_s6 + $0x694] sm:$0xf]  ;;  %v5620_v16 = vpop.f32.mrf.mxu3  ;;  %v8024_v24 = vor.u32 %v10871_v7, %v8021_v8  ;;  %v5596_v43 = vpop.f32.mrf.mxu1  ;;  %v8301_v1 = vld [vmem:[%s11905_s6 + $0x794] sm:$0xf0]  ;;  %v8921_v8 = vld [vmem:[%s11905_s6 + $0xc6c] sm:$0xf0] }
  0xf3   : > { %5859 = vmatpush.bf16.msra.mxu2 %v8424_v10  ;;  %v5607_v10 = vpop.f32.mrf.mxu2  ;;  %v11171_v43 = vld [vmem:[%s11905_s6 + $0xeb4] sm:$0xf] }
  0xf4   : > { %5872 = vmatpush.bf16.msra.mxu3 %v8584_v14  ;;  %v8341_v14 = vld [vmem:[%s11905_s6 + $0x7e4] sm:$0xf0]  ;;  %v5608_v15 = vadd.f32 %v5607_v10, %v5595_v4  ;;  %v9081_v10 = vld [vmem:[%s11905_s6 + $0xdac] sm:$0xf0] }
  0xf5   : > { %5834 = vmatpush.bf16.msra.mxu0 %v8084_v26  ;;  %v8344_v34 = vor.u32 %v10951_v13, %v8341_v14  ;;  %v11176_v13 = vld [vmem:[%s11905_s6 + $0xedc] sm:$0xf]  ;;  %v9241_v14 = vld [vmem:[%s11905_s6 + $0xeec] sm:$0xf0] }
  0xf6   : > { %5847 = vmatpush.bf16.msra.mxu1 %v8244_v27  ;;  %v12455_v26 = vadd.f32 %v5620_v16, %v5608_v15  ;;  %v5583_v27 = vpop.f32.mrf.mxu0  ;;  %v8464_v15 = vor.u32 %v10981_v2, %v8461_v3  ;;  %v8701_v2 = vld [vmem:[%s11905_s6 + $0xab4] sm:$0xf0]  ;;  %v11081_v3 = vld [vmem:[%s11905_s6 + $0xbe4] sm:$0xf] }
  0xf7   : > { %5860 = vmatpush.bf16.msra.mxu2 %v8404_v32  ;;  %v8184_v32 = vor.u32 %v10911_v9, %v8181_v12  ;;  %v11136_v9 = vld [vmem:[%s11905_s6 + $0xd9c] sm:$0xf]  ;;  %v8741_v27 = vld [vmem:[%s11905_s6 + $0xb04] sm:$0xf0] }
  0xf8   : > { %5873 = vmatpush.bf16.msra.mxu3 %v8564_v40  ;;  %v10906_v40 = vld [vmem:[%s11905_s6 + $0x66c] sm:$0xf]  ;;  %v9084_v21 = vor.u32 %v11136_v9, %v9081_v10  ;;  %v9181_v9 = vld [vmem:[%s11905_s6 + $0xe74] sm:$0xf0] }
  0xf9   : > { %5835 = vmatpush.bf16.msra.mxu0 %v8064_v53  ;;  %v10986_v53 = vld [vmem:[%s11905_s6 + $0x8ec] sm:$0xf]  ;;  %v8164_v58 = vor.u32 %v10906_v40, %v8161_v48  ;;  %v9061_v40 = vld [vmem:[%s11905_s6 + $0xd84] sm:$0xf0] }
  0xfa   : > { %5848 = vmatpush.bf16.msra.mxu1 %v8224_v55  ;;  %v8004_v55 = vor.u32 %v10866_v36, %v8001_v39  ;;  %v8484_v0 = vor.u32 %v10986_v53, %v8481_v54  ;;  %v5622_v4 = vpop.f32.mrf.mxu3  ;;  %v8901_v36 = vld [vmem:[%s11905_s6 + $0xc44] sm:$0xf0]  ;;  %v11131_v39 = vld [vmem:[%s11905_s6 + $0xd74] sm:$0xf]  ;;  %v11046_v53 = vld [vmem:[%s11905_s6 + $0xacc] sm:$0xf] }
  0xfb   : > { %5861 = vmatpush.bf16.msra.mxu2 %v8384_v56  ;;  %v10861_v56 = vld [vmem:[%s11905_s6 + $0x504] sm:$0xf]  ;;  %v5609_v63 = vpop.f32.mrf.mxu2  ;;  %v9064_v52 = vor.u32 %v11131_v39, %v9061_v40  ;;  %v8721_v54 = vld [vmem:[%s11905_s6 + $0xadc] sm:$0xf0] }
  0xfc   : > { %5874 = vmatpush.bf16.msra.mxu3 %v8544_v62  ;;  %v10941_v62 = vld [vmem:[%s11905_s6 + $0x784] sm:$0xf]  ;;  %v7984_v7 = vor.u32 %v10861_v56, %v7981_v57  ;;  %v8881_v57 = vld [vmem:[%s11905_s6 + $0xc1c] sm:$0xf0] }
  0xfd   : > { %5836 = vmatpush.bf16.msra.mxu0 %v8044_v5  ;;  %v11056_v5 = vld [vmem:[%s11905_s6 + $0xb1c] sm:$0xf]  ;;  %v8304_v12 = vor.u32 %v10941_v62, %v8301_v1  ;;  %v8724_v62 = vor.u32 %v11046_v53, %v8721_v54  ;;  %v11041_v1 = vld [vmem:[%s11905_s6 + $0xaa4] sm:$0xf]  ;;  %v8821_v54 = vld [vmem:[%s11905_s6 + $0xba4] sm:$0xf0] }
  0xfe   : > { %5849 = vmatpush.bf16.msra.mxu1 %v8204_v50  ;;  %v8761_v50 = vld [vmem:[%s11905_s6 + $0xb2c] sm:$0xf0] }
  0xff   : > { %5862 = vmatpush.bf16.msra.mxu2 %v8364_v6  ;;  %v11096_v6 = vld [vmem:[%s11905_s6 + $0xc5c] sm:$0xf]  ;;  %v8764_v16 = vor.u32 %v11056_v5, %v8761_v50  ;;  %v8861_v5 = vld [vmem:[%s11905_s6 + $0xbf4] sm:$0xf0]  ;;  %v11121_v50 = vld [vmem:[%s11905_s6 + $0xd24] sm:$0xf] }
 0x100   : > { %5875 = vmatpush.bf16.msra.mxu3 %v8524_v11  ;;  %v8144_v11 = vor.u32 %v10901_v60, %v8141_v61  ;;  %v8924_v17 = vor.u32 %v11096_v6, %v8921_v8  ;;  %v11166_v60 = vld [vmem:[%s11905_s6 + $0xe8c] sm:$0xf]  ;;  %v9201_v61 = vld [vmem:[%s11905_s6 + $0xe9c] sm:$0xf0]  ;;  %v9021_v6 = vld [vmem:[%s11905_s6 + $0xd34] sm:$0xf0] }
 0x101   : > { %5837 = vmatpush.bf16.msra.mxu0 %v8024_v24  ;;  %v11051_v24 = vld [vmem:[%s11905_s6 + $0xaf4] sm:$0xf]  ;;  %v9204_v4 = vor.u32 %v11166_v60, %v9201_v61  ;;  %v11161_v8 = vld [vmem:[%s11905_s6 + $0xe64] sm:$0xf]  ;;  %v9141_v60 = vld [vmem:[%s11905_s6 + $0xe24] sm:$0xf0] }
 0x102   : > { %5850 = vmatpush.bf16.msra.mxu1 %v8184_v32  ;;  %v11091_v32 = vld [vmem:[%s11905_s6 + $0xc34] sm:$0xf]  ;;  %v8744_v48 = vor.u32 %v11051_v24, %v8741_v27  ;;  %v8841_v27 = vld [vmem:[%s11905_s6 + $0xbcc] sm:$0xf0] }
 0x103   : > { %5863 = vmatpush.bf16.msra.mxu2 %v8344_v34  ;;  %v9244_v34 = vor.u32 %v11176_v13, %v9241_v14  ;;  %v8904_v51 = vor.u32 %v11091_v32, %v8901_v36  ;;  %v8864_v13 = vor.u32 %v11081_v3, %v8861_v5  ;;  %v9024_v14 = vor.u32 %v11121_v50, %v9021_v6  ;;  %v11116_v32 = vld [vmem:[%s11905_s6 + $0xcfc] sm:$0xf]  ;;  %v9161_v36 = vld [vmem:[%s11905_s6 + $0xe4c] sm:$0xf0]  ;;  %v11026_v3 = vld [vmem:[%s11905_s6 + $0xa2c] sm:$0xf] }
 0x104   : > { %5876 = vmatpush.bf16.msra.mxu3 %v8504_v47  ;;  %v9221_v47 = vld [vmem:[%s11905_s6 + $0xec4] sm:$0xf0]  ;;  %v11066_v5 = vld [vmem:[%s11905_s6 + $0xb6c] sm:$0xf]  ;;  %v8801_v6 = vld [vmem:[%s11905_s6 + $0xb7c] sm:$0xf0] }
 0x105   : > { %5838 = vmatpush.bf16.msra.mxu0 %v8004_v55  ;;  %v11086_v55 = vld [vmem:[%s11905_s6 + $0xc0c] sm:$0xf]  ;;  %v9224_v56 = vor.u32 %v11171_v43, %v9221_v47  ;;  %v11031_v47 = vld [vmem:[%s11905_s6 + $0xa54] sm:$0xf] }
 0x106   : > { %5851 = vmatpush.bf16.msra.mxu1 %v8164_v58  ;;  %v11126_v58 = vld [vmem:[%s11905_s6 + $0xd4c] sm:$0xf]  ;;  %v8884_v63 = vor.u32 %v11086_v55, %v8881_v57  ;;  %v11111_v55 = vld [vmem:[%s11905_s6 + $0xcd4] sm:$0xf] }
 0x107   : > { %5864 = vmatpush.bf16.msra.mxu2 %v8324_v59  ;;  %v9041_v59 = vld [vmem:[%s11905_s6 + $0xd5c] sm:$0xf0] }
 0x108   : > { %5877 = vmatpush.bf16.msra.mxu3 %v8484_v0  ;;  %v9044_v0 = vor.u32 %v11126_v58, %v9041_v59  ;;  %v11151_v59 = vld [vmem:[%s11905_s6 + $0xe14] sm:$0xf] }
 0x109   : > { %5839 = vmatpush.bf16.msra.mxu0 %v7984_v7  ;;  %v5633_v7 = vpop.f32.mrf.mxu0  ;;  %v9144_v50 = vor.u32 %v11151_v59, %v9141_v60 }
 0x10a   : > { %5852 = vmatpush.bf16.msra.mxu1 %v8144_v11  ;;  %v5634_v10 = vadd.f32 %v5633_v7, %v12455_v26  ;;  %v8704_v11 = vor.u32 %v11041_v1, %v8701_v2  ;;  %v9001_v26 = vld [vmem:[%s11905_s6 + $0xd0c] sm:$0xf0]  ;;  %v11106_v7 = vld [vmem:[%s11905_s6 + $0xcac] sm:$0xf] }
 0x10b   : > { %5865 = vmatpush.bf16.msra.mxu2 %v8304_v12  ;;  %v5646_v12 = vpop.f32.mrf.mxu1  ;;  %v9004_v43 = vor.u32 %v11116_v32, %v9001_v26  ;;  %v11141_v32 = vld [vmem:[%s11905_s6 + $0xdc4] sm:$0xf]  ;;  %v9101_v26 = vld [vmem:[%s11905_s6 + $0xdd4] sm:$0xf0] }
 0x10c   : > { %5878 = vmatpush.bf16.msra.mxu3 %v8464_v15  ;;  %5840 = vmatmul.bf16.vlgmr.msra.gmra.mxu0 %v12091_v41  ;;  %v11036_v15 = vld [vmem:[%s11905_s6 + $0xa7c] sm:$0xf]  ;;  %v5647_v24 = vadd.f32 %v5646_v12, %v5634_v10  ;;  %v9121_v10 = vld [vmem:[%s11905_s6 + $0xdfc] sm:$0xf0]  ;;  %v11021_v12 = vld [vmem:[%s11905_s6 + $0xa04] sm:$0xf] }
 0x10d   : > { %5884 = vmatpush.bf16.msrb.mxu0 %v8764_v16  ;;  %5853 = vmatmul.bf16.vlgmr.msra.gmra.mxu1 %v12095_v44  ;;  %v8681_v16 = vld [vmem:[%s11905_s6 + $0xa8c] sm:$0xf0] }
 0x10e   : > { %5897 = vmatpush.bf16.msrb.mxu1 %v8924_v17  ;;  %5866 = vmatmul.bf16.vlgmr.msra.gmra.mxu2 %v12087_v38  ;;  %v11076_v17 = vld [vmem:[%s11905_s6 + $0xbbc] sm:$0xf]  ;;  %v8684_v39 = vor.u32 %v11036_v15, %v8681_v16  ;;  %v11061_v16 = vld [vmem:[%s11905_s6 + $0xb44] sm:$0xf] }
 0x10f   : > { %5910 = vmatpush.bf16.msrb.mxu2 %v9084_v21  ;;  %5879 = vmatmul.bf16.vlgmr.msra.gmra.mxu3 %v12093_v42  ;;  %v9184_v21 = vor.u32 %v11161_v8, %v9181_v9  ;;  %v8844_v40 = vor.u32 %v11076_v17, %v8841_v27  ;;  %v8961_v8 = vld [vmem:[%s11905_s6 + $0xcbc] sm:$0xf0]  ;;  %v11146_v9 = vld [vmem:[%s11905_s6 + $0xdec] sm:$0xf]  ;;  %v8781_v17 = vld [vmem:[%s11905_s6 + $0xb54] sm:$0xf0] }
 0x110   : > { %5923 = vmatpush.bf16.msrb.mxu3 %v9244_v34  ;;  %v11156_v34 = vld [vmem:[%s11905_s6 + $0xe3c] sm:$0xf]  ;;  %v8964_v15 = vor.u32 %v11106_v7, %v8961_v8  ;;  %v8941_v27 = vld [vmem:[%s11905_s6 + $0xc94] sm:$0xf0] }
 0x111   : > { %5885 = vmatpush.bf16.msrb.mxu0 %v8744_v48  ;;  %v8661_v48 = vld [vmem:[%s11905_s6 + $0xa64] sm:$0xf0]  ;;  %v5659_v53 = vpop.f32.mrf.mxu2  ;;  %v5635_v61 = vpop.f32.mrf.mxu0 }
 0x112   : > { %5898 = vmatpush.bf16.msrb.mxu1 %v8904_v51  ;;  %v11071_v51 = vld [vmem:[%s11905_s6 + $0xb94] sm:$0xf]  ;;  %v5660_v57 = vadd.f32 %v5659_v53, %v5647_v24  ;;  %v5672_v58 = vpop.f32.mrf.mxu3  ;;  %v9124_v24 = vor.u32 %v11146_v9, %v9121_v10  ;;  %v8784_v53 = vor.u32 %v11061_v16, %v8781_v17  ;;  %v11206_v9 = vld [vmem:[%s11905_s6 + $0xfcc] sm:$0xf]  ;;  %v9361_v10 = vld [vmem:[%s11905_s6 + $0xfdc] sm:$0xf0] }
 0x113   : > { %5911 = vmatpush.bf16.msrb.mxu2 %v9064_v52  ;;  %v9164_v52 = vor.u32 %v11156_v34, %v9161_v36  ;;  %v8824_v1 = vor.u32 %v11071_v51, %v8821_v54  ;;  %v11216_v36 = vld [vmem:[%s11905_s6 + $0x101c] sm:$0xf]  ;;  %v11211_v61 = vld [vmem:[%s11905_s6 + $0xff4] sm:$0xf]  ;;  %v11326_v16 = vld [vmem:[%s11905_s6 + $0x138c] sm:$0xf] }
 0x114   : > { %5924 = vmatpush.bf16.msrb.mxu3 %v9224_v56  ;;  %v8981_v56 = vld [vmem:[%s11905_s6 + $0xce4] sm:$0xf0]  ;;  %v11296_v51 = vld [vmem:[%s11905_s6 + $0x129c] sm:$0xf]  ;;  %v9841_v17 = vld [vmem:[%s11905_s6 + $0x139c] sm:$0xf0] }
 0x115   : > { %5886 = vmatpush.bf16.msrb.mxu0 %v8724_v62  ;;  %v8664_v62 = vor.u32 %v11031_v47, %v8661_v48  ;;  %v8984_v2 = vor.u32 %v11111_v55, %v8981_v56  ;;  %v9561_v48 = vld [vmem:[%s11905_s6 + $0x116c] sm:$0xf0]  ;;  %v11336_v55 = vld [vmem:[%s11905_s6 + $0x13dc] sm:$0xf] }
 0x116   : > { %5899 = vmatpush.bf16.msrb.mxu1 %v8884_v63  ;;  %v5648_v63 = vpop.f32.mrf.mxu1  ;;  %v9881_v56 = vld [vmem:[%s11905_s6 + $0x13ec] sm:$0xf0] }
 0x117   : > { %5912 = vmatpush.bf16.msrb.mxu2 %v9044_v0  ;;  %v12526_v0 = vadd.f32 %v5672_v58, %v5660_v57  ;;  %v9104_v57 = vor.u32 %v11141_v32, %v9101_v26  ;;  %v11251_v63 = vld [vmem:[%s11905_s6 + $0x1134] sm:$0xf]  ;;  %v11201_v32 = vld [vmem:[%s11905_s6 + $0xfa4] sm:$0xf]  ;;  %v9341_v26 = vld [vmem:[%s11905_s6 + $0xfb4] sm:$0xf0] }
 0x118   : > { %5925 = vmatpush.bf16.msrb.mxu3 %v9204_v4  ;;  %v8641_v4 = vld [vmem:[%s11905_s6 + $0xa3c] sm:$0xf0] }
 0x119   : > { %5887 = vmatpush.bf16.msrb.mxu0 %v8704_v11  ;;  %v8644_v11 = vor.u32 %v11026_v3, %v8641_v4  ;;  %v5661_v34 = vpop.f32.mrf.mxu2  ;;  %v11291_v3 = vld [vmem:[%s11905_s6 + $0x1274] sm:$0xf]  ;;  %v9701_v4 = vld [vmem:[%s11905_s6 + $0x1284] sm:$0xf0] }
 0x11a   : > { %5900 = vmatpush.bf16.msrb.mxu1 %v8864_v13  ;;  %v8621_v13 = vld [vmem:[%s11905_s6 + $0xa14] sm:$0xf0]  ;;  %v9704_v8 = vor.u32 %v11291_v3, %v9701_v4  ;;  %v11241_v34 = vld [vmem:[%s11905_s6 + $0x10e4] sm:$0xf] }
 0x11b   : > { %5913 = vmatpush.bf16.msrb.mxu2 %v9024_v14  ;;  %v8804_v14 = vor.u32 %v11066_v5, %v8801_v6  ;;  %v8624_v47 = vor.u32 %v11021_v12, %v8621_v13  ;;  %v11331_v5 = vld [vmem:[%s11905_s6 + $0x13b4] sm:$0xf]  ;;  %v9521_v13 = vld [vmem:[%s11905_s6 + $0x111c] sm:$0xf0] }
 0x11c   : > { %5926 = vmatpush.bf16.msrb.mxu3 %v9184_v21  ;;  %v11101_v21 = vld [vmem:[%s11905_s6 + $0xc84] sm:$0xf] }
 0x11d   : > { %5888 = vmatpush.bf16.msrb.mxu0 %v8684_v39  ;;  %v9401_v39 = vld [vmem:[%s11905_s6 + $0x102c] sm:$0xf0]  ;;  %v8944_v54 = vor.u32 %v11101_v21, %v8941_v27  ;;  %v9364_v21 = vor.u32 %v11206_v9, %v9361_v10  ;;  %v9461_v10 = vld [vmem:[%s11905_s6 + $0x10a4] sm:$0xf0] }
 0x11e   : > { %5901 = vmatpush.bf16.msrb.mxu1 %v8844_v40  ;;  %v11256_v40 = vld [vmem:[%s11905_s6 + $0x115c] sm:$0xf]  ;;  %v9404_v58 = vor.u32 %v11216_v36, %v9401_v39  ;;  %v9844_v36 = vor.u32 %v11326_v16, %v9841_v17  ;;  %v9501_v39 = vld [vmem:[%s11905_s6 + $0x10f4] sm:$0xf0]  ;;  %v9781_v16 = vld [vmem:[%s11905_s6 + $0x1324] sm:$0xf0] }
 0x11f   : > { %5914 = vmatpush.bf16.msrb.mxu2 %v9004_v43  ;;  %v5674_v43 = vpop.f32.mrf.mxu3  ;;  %v9564_v59 = vor.u32 %v11256_v40, %v9561_v48  ;;  %v11281_v40 = vld [vmem:[%s11905_s6 + $0x1224] sm:$0xf] }
 0x120   : > { %5927 = vmatpush.bf16.msrb.mxu3 %v9164_v52  ;;  %v9721_v52 = vld [vmem:[%s11905_s6 + $0x12ac] sm:$0xf0]  ;;  %v9661_v43 = vld [vmem:[%s11905_s6 + $0x1234] sm:$0xf0]  ;;  %v11321_v48 = vld [vmem:[%s11905_s6 + $0x1364] sm:$0xf] }
 0x121   : > { %5889 = vmatpush.bf16.msrb.mxu0 %v8664_v62  ;;  %v9724_v60 = vor.u32 %v11296_v51, %v9721_v52  ;;  %v9381_v62 = vld [vmem:[%s11905_s6 + $0x1004] sm:$0xf0]  ;;  %v9821_v51 = vld [vmem:[%s11905_s6 + $0x1374] sm:$0xf0] }
 0x122   : > { %5902 = vmatpush.bf16.msrb.mxu1 %v8824_v1  ;;  %v9884_v1 = vor.u32 %v11336_v55, %v9881_v56  ;;  %v9384_v6 = vor.u32 %v11211_v61, %v9381_v62  ;;  %v9504_v55 = vor.u32 %v11241_v34, %v9501_v39  ;;  %v9664_v56 = vor.u32 %v11281_v40, %v9661_v43  ;;  %v9481_v62 = vld [vmem:[%s11905_s6 + $0x10cc] sm:$0xf0]  ;;  %v11186_v34 = vld [vmem:[%s11905_s6 + $0xf2c] sm:$0xf]  ;;  %v9441_v43 = vld [vmem:[%s11905_s6 + $0x107c] sm:$0xf0] }
 0x123   : > { %5915 = vmatpush.bf16.msrb.mxu2 %v8984_v2  ;;  %v9541_v2 = vld [vmem:[%s11905_s6 + $0x1144] sm:$0xf0]  ;;  %v11226_v39 = vld [vmem:[%s11905_s6 + $0x106c] sm:$0xf] }
 0x124   : > { %5928 = vmatpush.bf16.msrb.mxu3 %v9144_v50  ;;  %v9861_v50 = vld [vmem:[%s11905_s6 + $0x13c4] sm:$0xf0]  ;;  %v9544_v7 = vor.u32 %v11251_v63, %v9541_v2  ;;  %v11276_v63 = vld [vmem:[%s11905_s6 + $0x11fc] sm:$0xf]  ;;  %v9801_v2 = vld [vmem:[%s11905_s6 + $0x134c] sm:$0xf0] }
 0x125   : > { %5890 = vmatpush.bf16.msrb.mxu0 %v8644_v11  ;;  %v11246_v11 = vld [vmem:[%s11905_s6 + $0x110c] sm:$0xf]  ;;  %v9864_v12 = vor.u32 %v11331_v5, %v9861_v50  ;;  %v11191_v50 = vld [vmem:[%s11905_s6 + $0xf54] sm:$0xf] }
 0x126   : > { %5903 = vmatpush.bf16.msrb.mxu1 %v8804_v14  ;;  %v11286_v14 = vld [vmem:[%s11905_s6 + $0x124c] sm:$0xf] }
 0x127   : > { %5916 = vmatpush.bf16.msrb.mxu2 %v8964_v15  ;;  %v9681_v15 = vld [vmem:[%s11905_s6 + $0x125c] sm:$0xf0] }
 0x128   : > { %5929 = vmatpush.bf16.msrb.mxu3 %v9124_v24  ;;  %v9524_v24 = vor.u32 %v11246_v11, %v9521_v13  ;;  %v9684_v27 = vor.u32 %v11286_v14, %v9681_v15  ;;  %v11271_v11 = vld [vmem:[%s11905_s6 + $0x11d4] sm:$0xf] }
 0x129   : > { %5891 = vmatpush.bf16.msrb.mxu0 %v8624_v47  ;;  %v5685_v47 = vpop.f32.mrf.mxu0  ;;  %v11311_v15 = vld [vmem:[%s11905_s6 + $0x1314] sm:$0xf] }
 0x12a   : > { %5904 = vmatpush.bf16.msrb.mxu1 %v8784_v53  ;;  %v5686_v52 = vadd.f32 %v5685_v47, %v12526_v0  ;;  %v9344_v53 = vor.u32 %v11201_v32, %v9341_v26  ;;  %v9641_v0 = vld [vmem:[%s11905_s6 + $0x120c] sm:$0xf0]  ;;  %v9784_v40 = vor.u32 %v11311_v15, %v9781_v16  ;;  %v11266_v47 = vld [vmem:[%s11905_s6 + $0x11ac] sm:$0xf] }
 0x12b   : > { %5917 = vmatpush.bf16.msrb.mxu2 %v8944_v54  ;;  %v5698_v54 = vpop.f32.mrf.mxu1  ;;  %v9644_v5 = vor.u32 %v11276_v63, %v9641_v0  ;;  %v11301_v63 = vld [vmem:[%s11905_s6 + $0x12c4] sm:$0xf]  ;;  %v9741_v0 = vld [vmem:[%s11905_s6 + $0x12d4] sm:$0xf0] }
 0x12c   : > { %5930 = vmatpush.bf16.msrb.mxu3 %v9104_v57  ;;  %5892 = vmatmul.bf16.vlgmr.msrb.gmra.mxu0 %v12166_v25  ;;  %v11196_v57 = vld [vmem:[%s11905_s6 + $0xf7c] sm:$0xf]  ;;  %v5699_v61 = vadd.f32 %v5698_v54, %v5686_v52  ;;  %v9761_v52 = vld [vmem:[%s11905_s6 + $0x12fc] sm:$0xf0]  ;;  %v11181_v54 = vld [vmem:[%s11905_s6 + $0xf04] sm:$0xf] }
 0x12d   : > { %5936 = vmatpush.bf16.msra.mxu0 %v9404_v58  ;;  %5905 = vmatmul.bf16.vlgmr.msrb.gmra.mxu1 %v12173_v30  ;;  %v9321_v58 = vld [vmem:[%s11905_s6 + $0xf8c] sm:$0xf0] }
 0x12e   : > { %5949 = vmatpush.bf16.msra.mxu1 %v9564_v59  ;;  %5918 = vmatmul.bf16.vlgmr.msrb.gmra.mxu2 %v12171_v29  ;;  %v11236_v59 = vld [vmem:[%s11905_s6 + $0x10bc] sm:$0xf]  ;;  %v9324_v3 = vor.u32 %v11196_v57, %v9321_v58  ;;  %v11221_v58 = vld [vmem:[%s11905_s6 + $0x1044] sm:$0xf] }
 0x12f   : > { %5962 = vmatpush.bf16.msra.mxu2 %v9724_v60  ;;  %5931 = vmatmul.bf16.vlgmr.msrb.gmra.mxu3 %v12177_v33  ;;  %v9824_v60 = vor.u32 %v11321_v48, %v9821_v51  ;;  %v9484_v4 = vor.u32 %v11236_v59, %v9481_v62  ;;  %v9601_v48 = vld [vmem:[%s11905_s6 + $0x11bc] sm:$0xf0]  ;;  %v11306_v51 = vld [vmem:[%s11905_s6 + $0x12ec] sm:$0xf]  ;;  %v9421_v59 = vld [vmem:[%s11905_s6 + $0x1054] sm:$0xf0] }
 0x130   : > { %5975 = vmatpush.bf16.msra.mxu3 %v9884_v1  ;;  %v11316_v1 = vld [vmem:[%s11905_s6 + $0x133c] sm:$0xf]  ;;  %v9604_v57 = vor.u32 %v11266_v47, %v9601_v48  ;;  %v9581_v62 = vld [vmem:[%s11905_s6 + $0x1194] sm:$0xf0] }
 0x131   : > { %5937 = vmatpush.bf16.msra.mxu0 %v9384_v6  ;;  %v9301_v6 = vld [vmem:[%s11905_s6 + $0xf64] sm:$0xf0]  ;;  %v5711_v9 = vpop.f32.mrf.mxu2  ;;  %v5687_v17 = vpop.f32.mrf.mxu0 }
 0x132   : > { %5950 = vmatpush.bf16.msra.mxu1 %v9544_v7  ;;  %v11231_v7 = vld [vmem:[%s11905_s6 + $0x1094] sm:$0xf]  ;;  %v5712_v13 = vadd.f32 %v5711_v9, %v5699_v61  ;;  %v5724_v14 = vpop.f32.mrf.mxu3  ;;  %v9764_v61 = vor.u32 %v11306_v51, %v9761_v52  ;;  %v9424_v9 = vor.u32 %v11221_v58, %v9421_v59  ;;  %v11366_v51 = vld [vmem:[%s11905_s6 + $0x14cc] sm:$0xf]  ;;  %v10001_v52 = vld [vmem:[%s11905_s6 + $0x14dc] sm:$0xf0] }
 0x133   : > { %5963 = vmatpush.bf16.msra.mxu2 %v9704_v8  ;;  %v9804_v8 = vor.u32 %v11316_v1, %v9801_v2  ;;  %v9464_v32 = vor.u32 %v11231_v7, %v9461_v10  ;;  %v11376_v2 = vld [vmem:[%s11905_s6 + $0x151c] sm:$0xf]  ;;  %v11371_v17 = vld [vmem:[%s11905_s6 + $0x14f4] sm:$0xf]  ;;  %v11486_v58 = vld [vmem:[%s11905_s6 + $0x188c] sm:$0xf] }
 0x134   : > { %5976 = vmatpush.bf16.msra.mxu3 %v9864_v12  ;;  %v9621_v12 = vld [vmem:[%s11905_s6 + $0x11e4] sm:$0xf0]  ;;  %v11456_v7 = vld [vmem:[%s11905_s6 + $0x179c] sm:$0xf]  ;;  %v10481_v59 = vld [vmem:[%s11905_s6 + $0x189c] sm:$0xf0] }
 0x135   : > { %5938 = vmatpush.bf16.msra.mxu0 %v9364_v21  ;;  %v9304_v21 = vor.u32 %v11191_v50, %v9301_v6  ;;  %v9624_v26 = vor.u32 %v11271_v11, %v9621_v12  ;;  %v10201_v6 = vld [vmem:[%s11905_s6 + $0x166c] sm:$0xf0]  ;;  %v11496_v11 = vld [vmem:[%s11905_s6 + $0x18dc] sm:$0xf] }
 0x136   : > { %5951 = vmatpush.bf16.msra.mxu1 %v9524_v24  ;;  %v5700_v24 = vpop.f32.mrf.mxu1  ;;  %v10521_v12 = vld [vmem:[%s11905_s6 + $0x18ec] sm:$0xf0] }
 0x137   : > { %5964 = vmatpush.bf16.msra.mxu2 %v9684_v27  ;;  %v12597_v27 = vadd.f32 %v5724_v14, %v5712_v13  ;;  %v9744_v13 = vor.u32 %v11301_v63, %v9741_v0  ;;  %v11411_v24 = vld [vmem:[%s11905_s6 + $0x1634] sm:$0xf]  ;;  %v11361_v63 = vld [vmem:[%s11905_s6 + $0x14a4] sm:$0xf]  ;;  %v9981_v0 = vld [vmem:[%s11905_s6 + $0x14b4] sm:$0xf0] }
 0x138   : > { %5977 = vmatpush.bf16.msra.mxu3 %v9844_v36  ;;  %v9281_v36 = vld [vmem:[%s11905_s6 + $0xf3c] sm:$0xf0] }
 0x139   : > { %5939 = vmatpush.bf16.msra.mxu0 %v9344_v53  ;;  %v9284_v53 = vor.u32 %v11186_v34, %v9281_v36  ;;  %v5713_v1 = vpop.f32.mrf.mxu2  ;;  %v11451_v34 = vld [vmem:[%s11905_s6 + $0x1774] sm:$0xf]  ;;  %v10341_v36 = vld [vmem:[%s11905_s6 + $0x1784] sm:$0xf0] }
 0x13a   : > { %5952 = vmatpush.bf16.msra.mxu1 %v9504_v55  ;;  %v9261_v55 = vld [vmem:[%s11905_s6 + $0xf14] sm:$0xf0]  ;;  %v10344_v48 = vor.u32 %v11451_v34, %v10341_v36  ;;  %v11401_v1 = vld [vmem:[%s11905_s6 + $0x15e4] sm:$0xf] }
 0x13b   : > { %5965 = vmatpush.bf16.msra.mxu2 %v9664_v56  ;;  %v9444_v56 = vor.u32 %v11226_v39, %v9441_v43  ;;  %v9264_v50 = vor.u32 %v11181_v54, %v9261_v55  ;;  %v11491_v39 = vld [vmem:[%s11905_s6 + $0x18b4] sm:$0xf]  ;;  %v10161_v55 = vld [vmem:[%s11905_s6 + $0x161c] sm:$0xf0] }
 0x13c   : > { %5978 = vmatpush.bf16.msra.mxu3 %v9824_v60  ;;  %v11261_v60 = vld [vmem:[%s11905_s6 + $0x1184] sm:$0xf] }
 0x13d   : > { %5940 = vmatpush.bf16.msra.mxu0 %v9324_v3  ;;  %v10041_v3 = vld [vmem:[%s11905_s6 + $0x152c] sm:$0xf0]  ;;  %v9584_v10 = vor.u32 %v11261_v60, %v9581_v62  ;;  %v10004_v60 = vor.u32 %v11366_v51, %v10001_v52  ;;  %v10101_v52 = vld [vmem:[%s11905_s6 + $0x15a4] sm:$0xf0] }
 0x13e   : > { %5953 = vmatpush.bf16.msra.mxu1 %v9484_v4  ;;  %v11416_v4 = vld [vmem:[%s11905_s6 + $0x165c] sm:$0xf]  ;;  %v10044_v14 = vor.u32 %v11376_v2, %v10041_v3  ;;  %v10484_v2 = vor.u32 %v11486_v58, %v10481_v59  ;;  %v10141_v3 = vld [vmem:[%s11905_s6 + $0x15f4] sm:$0xf0]  ;;  %v10421_v58 = vld [vmem:[%s11905_s6 + $0x1824] sm:$0xf0] }
 0x13f   : > { %5966 = vmatpush.bf16.msra.mxu2 %v9644_v5  ;;  %v5726_v5 = vpop.f32.mrf.mxu3  ;;  %v10204_v15 = vor.u32 %v11416_v4, %v10201_v6  ;;  %v11441_v4 = vld [vmem:[%s11905_s6 + $0x1724] sm:$0xf] }
 0x140   : > { %5979 = vmatpush.bf16.msra.mxu3 %v9804_v8  ;;  %v10361_v8 = vld [vmem:[%s11905_s6 + $0x17ac] sm:$0xf0]  ;;  %v10301_v5 = vld [vmem:[%s11905_s6 + $0x1734] sm:$0xf0]  ;;  %v11481_v6 = vld [vmem:[%s11905_s6 + $0x1864] sm:$0xf] }
 0x141   : > { %5941 = vmatpush.bf16.msra.mxu0 %v9304_v21  ;;  %v10364_v16 = vor.u32 %v11456_v7, %v10361_v8  ;;  %v10021_v21 = vld [vmem:[%s11905_s6 + $0x1504] sm:$0xf0]  ;;  %v10461_v7 = vld [vmem:[%s11905_s6 + $0x1874] sm:$0xf0] }
 0x142   : > { %5954 = vmatpush.bf16.msra.mxu1 %v9464_v32  ;;  %v10524_v32 = vor.u32 %v11496_v11, %v10521_v12  ;;  %v10024_v43 = vor.u32 %v11371_v17, %v10021_v21  ;;  %v10144_v11 = vor.u32 %v11401_v1, %v10141_v3  ;;  %v10304_v12 = vor.u32 %v11441_v4, %v10301_v5  ;;  %v10121_v21 = vld [vmem:[%s11905_s6 + $0x15cc] sm:$0xf0]  ;;  %v11346_v1 = vld [vmem:[%s11905_s6 + $0x142c] sm:$0xf]  ;;  %v10081_v5 = vld [vmem:[%s11905_s6 + $0x157c] sm:$0xf0] }
 0x143   : > { %5967 = vmatpush.bf16.msra.mxu2 %v9624_v26  ;;  %v10181_v26 = vld [vmem:[%s11905_s6 + $0x1644] sm:$0xf0]  ;;  %v11386_v3 = vld [vmem:[%s11905_s6 + $0x156c] sm:$0xf] }
 0x144   : > { %5980 = vmatpush.bf16.msra.mxu3 %v9784_v40  ;;  %v10501_v40 = vld [vmem:[%s11905_s6 + $0x18c4] sm:$0xf0]  ;;  %v10184_v47 = vor.u32 %v11411_v24, %v10181_v26  ;;  %v11436_v24 = vld [vmem:[%s11905_s6 + $0x16fc] sm:$0xf]  ;;  %v10441_v26 = vld [vmem:[%s11905_s6 + $0x184c] sm:$0xf0] }
 0x145   : > { %5942 = vmatpush.bf16.msra.mxu0 %v9284_v53  ;;  %v11406_v53 = vld [vmem:[%s11905_s6 + $0x160c] sm:$0xf]  ;;  %v10504_v54 = vor.u32 %v11491_v39, %v10501_v40  ;;  %v11351_v40 = vld [vmem:[%s11905_s6 + $0x1454] sm:$0xf] }
 0x146   : > { %5955 = vmatpush.bf16.msra.mxu1 %v9444_v56  ;;  %v11446_v56 = vld [vmem:[%s11905_s6 + $0x174c] sm:$0xf] }
 0x147   : > { %5968 = vmatpush.bf16.msra.mxu2 %v9604_v57  ;;  %v10321_v57 = vld [vmem:[%s11905_s6 + $0x175c] sm:$0xf0] }
 0x148   : > { %5981 = vmatpush.bf16.msra.mxu3 %v9764_v61  ;;  %v10164_v61 = vor.u32 %v11406_v53, %v10161_v55  ;;  %v10324_v62 = vor.u32 %v11446_v56, %v10321_v57  ;;  %v11431_v53 = vld [vmem:[%s11905_s6 + $0x16d4] sm:$0xf] }
 0x149   : > { %5943 = vmatpush.bf16.msra.mxu0 %v9264_v50  ;;  %v5737_v50 = vpop.f32.mrf.mxu0  ;;  %v11471_v57 = vld [vmem:[%s11905_s6 + $0x1814] sm:$0xf] }
 0x14a   : > { %5956 = vmatpush.bf16.msra.mxu1 %v9424_v9  ;;  %v5738_v8 = vadd.f32 %v5737_v50, %v12597_v27  ;;  %v9984_v9 = vor.u32 %v11361_v63, %v9981_v0  ;;  %v10281_v27 = vld [vmem:[%s11905_s6 + $0x170c] sm:$0xf0]  ;;  %v10424_v4 = vor.u32 %v11471_v57, %v10421_v58  ;;  %v11426_v50 = vld [vmem:[%s11905_s6 + $0x16ac] sm:$0xf] }
 0x14b   : > { %5969 = vmatpush.bf16.msra.mxu2 %v9584_v10  ;;  %v5750_v10 = vpop.f32.mrf.mxu1  ;;  %v10284_v39 = vor.u32 %v11436_v24, %v10281_v27  ;;  %v11461_v24 = vld [vmem:[%s11905_s6 + $0x17c4] sm:$0xf]  ;;  %v10381_v27 = vld [vmem:[%s11905_s6 + $0x17d4] sm:$0xf0] }
 0x14c   : > { %5982 = vmatpush.bf16.msra.mxu3 %v9744_v13  ;;  %5944 = vmatmul.bf16.vlgmr.msra.gmra.mxu0 %v12248_v23  ;;  %v11356_v13 = vld [vmem:[%s11905_s6 + $0x147c] sm:$0xf]  ;;  %v5751_v17 = vadd.f32 %v5750_v10, %v5738_v8  ;;  %v10401_v8 = vld [vmem:[%s11905_s6 + $0x17fc] sm:$0xf0]  ;;  %v11341_v10 = vld [vmem:[%s11905_s6 + $0x1404] sm:$0xf] }
 0x14d   : > { %5988 = vmatpush.bf16.msrb.mxu0 %v10044_v14  ;;  %5957 = vmatmul.bf16.vlgmr.msra.gmra.mxu1 %v12255_v31  ;;  %v9961_v14 = vld [vmem:[%s11905_s6 + $0x148c] sm:$0xf0] }
 0x14e   : > { %6001 = vmatpush.bf16.msrb.mxu1 %v10204_v15  ;;  %5970 = vmatmul.bf16.vlgmr.msra.gmra.mxu2 %v12253_v28  ;;  %v11396_v15 = vld [vmem:[%s11905_s6 + $0x15bc] sm:$0xf]  ;;  %v9964_v34 = vor.u32 %v11356_v13, %v9961_v14  ;;  %v11381_v14 = vld [vmem:[%s11905_s6 + $0x1544] sm:$0xf] }
 0x14f   : > { %6014 = vmatpush.bf16.msrb.mxu2 %v10364_v16  ;;  %5983 = vmatmul.bf16.vlgmr.msra.gmra.mxu3 %v12259_v35  ;;  %v10464_v16 = vor.u32 %v11481_v6, %v10461_v7  ;;  %v10124_v36 = vor.u32 %v11396_v15, %v10121_v21  ;;  %v10241_v6 = vld [vmem:[%s11905_s6 + $0x16bc] sm:$0xf0]  ;;  %v11466_v7 = vld [vmem:[%s11905_s6 + $0x17ec] sm:$0xf]  ;;  %v10061_v15 = vld [vmem:[%s11905_s6 + $0x1554] sm:$0xf0] }
 0x150   : > { %6027 = vmatpush.bf16.msrb.mxu3 %v10524_v32  ;;  %v11476_v32 = vld [vmem:[%s11905_s6 + $0x183c] sm:$0xf]  ;;  %v10244_v13 = vor.u32 %v11426_v50, %v10241_v6  ;;  %v10221_v21 = vld [vmem:[%s11905_s6 + $0x1694] sm:$0xf0] }
 0x151   : > { %5989 = vmatpush.bf16.msrb.mxu0 %v10024_v43  ;;  %v9941_v43 = vld [vmem:[%s11905_s6 + $0x1464] sm:$0xf0]  ;;  %v5763_v51 = vpop.f32.mrf.mxu2  ;;  %v5739_v59 = vpop.f32.mrf.mxu0 }
 0x152   : > { %6002 = vmatpush.bf16.msrb.mxu1 %v10184_v47  ;;  %v11391_v47 = vld [vmem:[%s11905_s6 + $0x1594] sm:$0xf]  ;;  %v5764_v55 = vadd.f32 %v5763_v51, %v5751_v17  ;;  %v5776_v56 = vpop.f32.mrf.mxu3  ;;  %v10404_v17 = vor.u32 %v11466_v7, %v10401_v8  ;;  %v10064_v51 = vor.u32 %v11381_v14, %v10061_v15  ;;  %v7467_v59 = vld [vmem:[%s11905_s6 + $0xf8] sm:$0xf]  ;;  %v7447_v7 = vld [vmem:[%s11905_s6 + $0xd0] sm:$0xf] }
 0x153   : > { %6015 = vmatpush.bf16.msrb.mxu2 %v10344_v48  ;;  %v10444_v48 = vor.u32 %v11476_v32, %v10441_v26  ;;  %v10104_v63 = vor.u32 %v11391_v47, %v10101_v52  ;;  %v7487_v26 = vld [vmem:[%s11905_s6 + $0x120] sm:$0xf]  ;;  %v10729_v8 = vld [vmem:[%s11905_s6 + $0xe0] sm:$0xf0]  ;;  %v7927_v14 = vld [vmem:[%s11905_s6 + $0x490] sm:$0xf] }
 0x154   : > { %6028 = vmatpush.bf16.msrb.mxu3 %v10504_v54  ;;  %v10261_v54 = vld [vmem:[%s11905_s6 + $0x16e4] sm:$0xf0]  ;;  %v7807_v47 = vld [vmem:[%s11905_s6 + $0x3a0] sm:$0xf]  ;;  %v10849_v15 = vld [vmem:[%s11905_s6 + $0x4a0] sm:$0xf0] }
 0x155   : > { %5990 = vmatpush.bf16.msrb.mxu0 %v10004_v60  ;;  %v9944_v60 = vor.u32 %v11351_v40, %v9941_v43  ;;  %v10264_v0 = vor.u32 %v11431_v53, %v10261_v54  ;;  %v10779_v43 = vld [vmem:[%s11905_s6 + $0x270] sm:$0xf0]  ;;  %v7967_v53 = vld [vmem:[%s11905_s6 + $0x4e0] sm:$0xf] }
 0x156   : > { %6003 = vmatpush.bf16.msrb.mxu1 %v10164_v61  ;;  %v5752_v61 = vpop.f32.mrf.mxu1  ;;  %v10859_v54 = vld [vmem:[%s11905_s6 + $0x4f0] sm:$0xf0] }
 0x157   : > { %6016 = vmatpush.bf16.msrb.mxu2 %v10324_v62  ;;  %v12668_v62 = vadd.f32 %v5776_v56, %v5764_v55  ;;  %v10384_v55 = vor.u32 %v11461_v24, %v10381_v27  ;;  %v7627_v61 = vld [vmem:[%s11905_s6 + $0x238] sm:$0xf]  ;;  %v10724_v27 = vld [vmem:[%s11905_s6 + $0xb8] sm:$0xf0] }
 0x158   : > { %6029 = vmatpush.bf16.msrb.mxu3 %v10484_v2  ;;  %v9921_v2 = vld [vmem:[%s11905_s6 + $0x143c] sm:$0xf0] }
 0x159   : > { %5991 = vmatpush.bf16.msrb.mxu0 %v9984_v9  ;;  %v9924_v9 = vor.u32 %v11346_v1, %v9921_v2  ;;  %v5765_v32 = vpop.f32.mrf.mxu2  ;;  %v7787_v1 = vld [vmem:[%s11905_s6 + $0x378] sm:$0xf]  ;;  %v10814_v2 = vld [vmem:[%s11905_s6 + $0x388] sm:$0xf0] }
 0x15a   : > { %6004 = vmatpush.bf16.msrb.mxu1 %v10144_v11  ;;  %v9901_v11 = vld [vmem:[%s11905_s6 + $0x1414] sm:$0xf0]  ;;  %v7788_v6 = vor.u32 %v10814_v2, %v7787_v1  ;;  %v7587_v32 = vld [vmem:[%s11905_s6 + $0x1e8] sm:$0xf]  ;;  %v7887_v1 = vld [vmem:[%s11905_s6 + $0x440] sm:$0xf] }
 0x15b   : > { %6017 = vmatpush.bf16.msrb.mxu2 %v10304_v12  ;;  %v10084_v12 = vor.u32 %v11386_v3, %v10081_v5  ;;  %v9904_v40 = vor.u32 %v11341_v10, %v9901_v11  ;;  %v7947_v3 = vld [vmem:[%s11905_s6 + $0x4b8] sm:$0xf]  ;;  %v10769_v11 = vld [vmem:[%s11905_s6 + $0x220] sm:$0xf0]  ;;  %v10839_v2 = vld [vmem:[%s11905_s6 + $0x450] sm:$0xf0] }
 0x15c   : > { %6030 = vmatpush.bf16.msrb.mxu3 %v10464_v16  ;;  %v11421_v16 = vld [vmem:[%s11905_s6 + $0x1684] sm:$0xf] }
 0x15d   : > { %5992 = vmatpush.bf16.msrb.mxu0 %v9964_v34  ;;  %v10739_v34 = vld [vmem:[%s11905_s6 + $0x130] sm:$0xf0]  ;;  %v10224_v52 = vor.u32 %v11421_v16, %v10221_v21  ;;  %v7448_v16 = vor.u32 %v10729_v8, %v7447_v7  ;;  %v10714_v7 = vld [vmem:[%s11905_s6 + $0x68] sm:$0xf0]  ;;  %v7547_v8 = vld [vmem:[%s11905_s6 + $0x198] sm:$0xf] }
 0x15e   : > { %6005 = vmatpush.bf16.msrb.mxu1 %v10124_v36  ;;  %v7647_v36 = vld [vmem:[%s11905_s6 + $0x260] sm:$0xf]  ;;  %v7488_v56 = vor.u32 %v10739_v34, %v7487_v26 }
 0x15f   : > { %6018 = vmatpush.bf16.msrb.mxu2 %v10284_v39  ;;  %v5778_v39 = vpop.f32.mrf.mxu3  ;;  %v7648_v57 = vor.u32 %v10779_v43, %v7647_v36  ;;  %v11622_v26 = vld [vmem:[%s12371_s12] ss:$2 sm:$0x1f]  ;;  %v7928_v36 = vor.u32 %v10849_v15, %v7927_v14  ;;  %v10804_v43 = vld [vmem:[%s11905_s6 + $0x338] sm:$0xf0] }
 0x160   : > { %6031 = vmatpush.bf16.msrb.mxu3 %v10444_v48  ;;  %v10819_v48 = vld [vmem:[%s11905_s6 + $0x3b0] sm:$0xf0]  ;;  %v1281_v34 = vperm.slane %v11622_v26, 1  ;;  %v10764_v39 = vld [vmem:[%s11905_s6 + $0x1f8] sm:$0xf0] }
 0x161   : > { %5993 = vmatpush.bf16.msrb.mxu0 %v9944_v60  ;;  %v7808_v58 = vor.u32 %v10819_v48, %v7807_v47  ;;  %v10734_v60 = vld [vmem:[%s11905_s6 + $0x108] sm:$0xf0]  ;;  %v7907_v47 = vld [vmem:[%s11905_s6 + $0x468] sm:$0xf]  ;;  %v10844_v48 = vld [vmem:[%s11905_s6 + $0x478] sm:$0xf0] }
 0x162   : > { %6006 = vmatpush.bf16.msrb.mxu1 %v10104_v63  ;;  %v7968_v63 = vor.u32 %v10859_v54, %v7967_v53  ;;  %v7468_v5 = vor.u32 %v10734_v60, %v7467_v59  ;;  %v7588_v53 = vor.u32 %v10764_v39, %v7587_v32  ;;  %v7908_v60 = vor.u32 %v10844_v48, %v7907_v47  ;;  %v7527_v39 = vld [vmem:[%s11905_s6 + $0x170] sm:$0xf]  ;;  %v10749_v47 = vld [vmem:[%s11905_s6 + $0x180] sm:$0xf0] }
 0x163   : > { %6019 = vmatpush.bf16.msrb.mxu2 %v10264_v0  ;;  %v10774_v0 = vld [vmem:[%s11905_s6 + $0x248] sm:$0xf0]  ;;  %v7687_v48 = vld [vmem:[%s11905_s6 + $0x2b0] sm:$0xf] }
 0x164   : > { %6032 = vmatpush.bf16.msrb.mxu3 %v10424_v4  ;;  %v10854_v4 = vld [vmem:[%s11905_s6 + $0x4c8] sm:$0xf0]  ;;  %v7628_v50 = vor.u32 %v10774_v0, %v7627_v61  ;;  %v10759_v61 = vld [vmem:[%s11905_s6 + $0x1d0] sm:$0xf0] }
 0x165   : > { %5994 = vmatpush.bf16.msrb.mxu0 %v9924_v9  ;;  %v7607_v9 = vld [vmem:[%s11905_s6 + $0x210] sm:$0xf]  ;;  %v7948_v10 = vor.u32 %v10854_v4, %v7947_v3  ;;  %v10799_v0 = vld [vmem:[%s11905_s6 + $0x310] sm:$0xf0] }
 0x166   : > { %6007 = vmatpush.bf16.msrb.mxu1 %v10084_v12  ;;  %v7767_v12 = vld [vmem:[%s11905_s6 + $0x350] sm:$0xf]  ;;  %v7608_v21 = vor.u32 %v10769_v11, %v7607_v9  ;;  %v10754_v11 = vld [vmem:[%s11905_s6 + $0x1a8] sm:$0xf0] }
 0x167   : > { %6020 = vmatpush.bf16.msrb.mxu2 %v10244_v13  ;;  %v10809_v13 = vld [vmem:[%s11905_s6 + $0x360] sm:$0xf0]  ;;  %v7548_v32 = vor.u32 %v10754_v11, %v7547_v8  ;;  %v10939_v8 = vld [vmem:[%s11905_s6 + $0x770] sm:$0xf0] }
 0x168   : > { %6033 = vmatpush.bf16.msrb.mxu3 %v10404_v17  ;;  %v7427_v17 = vld [vmem:[%s11905_s6 + $0xa8] sm:$0xf]  ;;  %v7768_v24 = vor.u32 %v10809_v13, %v7767_v12  ;;  %v7707_v12 = vld [vmem:[%s11905_s6 + $0x2d8] sm:$0xf]  ;;  %v10794_v13 = vld [vmem:[%s11905_s6 + $0x2e8] sm:$0xf0] }
 0x169   : > { %5995 = vmatpush.bf16.msrb.mxu0 %v9904_v40  ;;  %v7747_v40 = vld [vmem:[%s11905_s6 + $0x328] sm:$0xf]  ;;  %v7708_v26 = vor.u32 %v10794_v13, %v7707_v12  ;;  %v8607_v13 = vld [vmem:[%s11905_s6 + $0x9e0] sm:$0xf] }
 0x16a   : > { %6008 = vmatpush.bf16.msrb.mxu1 %v10064_v51  ;;  %v7428_v51 = vor.u32 %v10724_v27, %v7427_v17  ;;  %v7748_v54 = vor.u32 %v10804_v43, %v7747_v40  ;;  %v5802_v59 = vpop.f32.mrf.mxu1  ;;  %v10834_v17 = vld [vmem:[%s11905_s6 + $0x428] sm:$0xf0] }
 0x16b   : > { %6021 = vmatpush.bf16.msrb.mxu2 %v10224_v52  ;;  %v5789_v52 = vpop.f32.mrf.mxu0 }
 0x16c   : > { %6034 = vmatpush.bf16.msrb.mxu3 %v10384_v55  ;;  %5996 = vmatmul.bf16.vlgmr.msrb.gmra.mxu0 %v12331_v37  ;;  %v7407_v55 = vld [vmem:[%s11905_s6 + $0x80] sm:$0xf] }
 0x16d   : > { %6040 = vmatpush.bf16.msra.mxu0 %v7488_v56  ;;  %6009 = vmatmul.bf16.vlgmr.msrb.gmra.mxu1 %v12338_v46  ;;  %v10719_v56 = vld [vmem:[%s11905_s6 + $0x90] sm:$0xf0] }
 0x16e   : > { %6053 = vmatpush.bf16.msra.mxu1 %v7648_v57  ;;  %6022 = vmatmul.bf16.vlgmr.msrb.gmra.mxu2 %v12336_v45  ;;  %v7567_v57 = vld [vmem:[%s11905_s6 + $0x1c0] sm:$0xf]  ;;  %v7408_v4 = vor.u32 %v10719_v56, %v7407_v55  ;;  %v7347_v55 = vld [vmem:[%s11905_s6 + $0x8] sm:$0xf]  ;;  %v10704_v56 = vld [vmem:[%s11905_s6 + $0x18] sm:$0xf0] }
 0x16f   : > { %6066 = vmatpush.bf16.msra.mxu2 %v7808_v58  ;;  %6035 = vmatmul.bf16.vlgmr.msrb.gmra.mxu3 %v12342_v49  ;;  %v5790_v58 = vadd.f32 %v5789_v52, %v1281_v34  ;;  %v7367_v34 = vld [vmem:[%s11905_s6 + $0x30] sm:$0xf] }
 0x170   : > { %6079 = vmatpush.bf16.msra.mxu3 %v7968_v63  ;;  %v7727_v63 = vld [vmem:[%s11905_s6 + $0x300] sm:$0xf]  ;;  %v7847_v52 = vld [vmem:[%s11905_s6 + $0x3f0] sm:$0xf] }
 0x171   : > { %6041 = vmatpush.bf16.msra.mxu0 %v7468_v5  ;;  %v5803_v3 = vadd.f32 %v5802_v59, %v5790_v58  ;;  %v7568_v5 = vor.u32 %v10759_v61, %v7567_v57  ;;  %v5815_v9 = vpop.f32.mrf.mxu2  ;;  %v7528_v57 = vor.u32 %v10749_v47, %v7527_v39  ;;  %v7507_v59 = vld [vmem:[%s11905_s6 + $0x148] sm:$0xf]  ;;  %v8427_v39 = vld [vmem:[%s11905_s6 + $0x878] sm:$0xf]  ;;  %v11014_v47 = vld [vmem:[%s11905_s6 + $0x9c8] sm:$0xf0] }
 0x172   : > { %6054 = vmatpush.bf16.msra.mxu1 %v7628_v50  ;;  %v7728_v50 = vor.u32 %v10799_v0, %v7727_v63  ;;  %v5828_v15 = vpop.f32.mrf.mxu3  ;;  %v5804_v40 = vpop.f32.mrf.mxu1  ;;  %v7667_v61 = vld [vmem:[%s11905_s6 + $0x288] sm:$0xf] }
 0x173   : > { %6067 = vmatpush.bf16.msra.mxu2 %v7788_v6  ;;  %v7387_v6 = vld [vmem:[%s11905_s6 + $0x58] sm:$0xf]  ;;  %v5816_v14 = vadd.f32 %v5815_v9, %v5803_v3  ;;  %v5791_v27 = vpop.f32.mrf.mxu0  ;;  %v10824_v3 = vld [vmem:[%s11905_s6 + $0x3d8] sm:$0xf0]  ;;  %v8447_v9 = vld [vmem:[%s11905_s6 + $0x8a0] sm:$0xf] }
 0x174   : > { %6080 = vmatpush.bf16.msra.mxu3 %v7948_v10  ;;  %v7888_v10 = vor.u32 %v10839_v2, %v7887_v1  ;;  %v10784_v1 = vld [vmem:[%s11905_s6 + $0x298] sm:$0xf0]  ;;  %v7827_v2 = vld [vmem:[%s11905_s6 + $0x3c8] sm:$0xf]  ;;  %v8107_v27 = vld [vmem:[%s11905_s6 + $0x5f8] sm:$0xf] }
 0x175   : > { %6042 = vmatpush.bf16.msra.mxu0 %v7448_v16  ;;  %v7867_v16 = vld [vmem:[%s11905_s6 + $0x418] sm:$0xf]  ;;  %v7668_v12 = vor.u32 %v10784_v1, %v7667_v61  ;;  %v10974_v40 = vld [vmem:[%s11905_s6 + $0x888] sm:$0xf0]  ;;  %v11009_v61 = vld [vmem:[%s11905_s6 + $0x9a0] sm:$0xf0] }
 0x176   : > { %6055 = vmatpush.bf16.msra.mxu1 %v7608_v21  ;;  %v7388_v21 = vor.u32 %v10714_v7, %v7387_v6  ;;  %v7868_v43 = vor.u32 %v10834_v17, %v7867_v16  ;;  %v8287_v6 = vld [vmem:[%s11905_s6 + $0x760] sm:$0xf]  ;;  %v7348_v7 = vor.u32 %v10704_v56, %v7347_v55  ;;  %v8247_v55 = vld [vmem:[%s11905_s6 + $0x710] sm:$0xf] }
 0x177   : > { %6068 = vmatpush.bf16.msra.mxu2 %v7768_v24  ;;  %v12739_v24 = vadd.f32 %v5828_v15, %v5816_v14  ;;  %v11019_v14 = vld [vmem:[%s11905_s6 + $0x9f0] sm:$0xf0]  ;;  %v7828_v15 = vor.u32 %v10824_v3, %v7827_v2  ;;  %v8288_v17 = vor.u32 %v10939_v8, %v8287_v6  ;;  %v8067_v2 = vld [vmem:[%s11905_s6 + $0x5a8] sm:$0xf]  ;;  %v10884_v3 = vld [vmem:[%s11905_s6 + $0x5b8] sm:$0xf0] }
 0x178   : > { %6081 = vmatpush.bf16.msra.mxu3 %v7928_v36  ;;  %v10709_v36 = vld [vmem:[%s11905_s6 + $0x40] sm:$0xf0]  ;;  %v8387_v6 = vld [vmem:[%s11905_s6 + $0x828] sm:$0xf] }
 0x179   : > { %6043 = vmatpush.bf16.msra.mxu0 %v7428_v51  ;;  %v10789_v51 = vld [vmem:[%s11905_s6 + $0x2c0] sm:$0xf0]  ;;  %v5817_v63 = vpop.f32.mrf.mxu2  ;;  %v8547_v8 = vld [vmem:[%s11905_s6 + $0x968] sm:$0xf] }
 0x17a   : > { %6056 = vmatpush.bf16.msra.mxu1 %v7588_v53  ;;  %v10829_v53 = vld [vmem:[%s11905_s6 + $0x400] sm:$0xf0]  ;;  %v7688_v58 = vor.u32 %v10789_v51, %v7687_v48 }
 0x17b   : > { %6069 = vmatpush.bf16.msra.mxu2 %v7748_v54  ;;  %v7368_v54 = vor.u32 %v10709_v36, %v7367_v34  ;;  %v7848_v0 = vor.u32 %v10829_v53, %v7847_v52  ;;  %v8608_v34 = vor.u32 %v11019_v14, %v8607_v13  ;;  %v10934_v36 = vld [vmem:[%s11905_s6 + $0x748] sm:$0xf0]  ;;  %v8428_v52 = vor.u32 %v10974_v40, %v8427_v39  ;;  %v8087_v53 = vld [vmem:[%s11905_s6 + $0x5d0] sm:$0xf]  ;;  %v8047_v14 = vld [vmem:[%s11905_s6 + $0x580] sm:$0xf] }
 0x17c   : > { %6082 = vmatpush.bf16.msra.mxu3 %v7908_v60  ;;  %v10744_v60 = vld [vmem:[%s11905_s6 + $0x158] sm:$0xf0]  ;;  %v10999_v39 = vld [vmem:[%s11905_s6 + $0x950] sm:$0xf0] }
 0x17d   : > { %6044 = vmatpush.bf16.msra.mxu0 %v7408_v4  ;;  %v5830_v4 = vpop.f32.mrf.mxu3  ;;  %v7508_v11 = vor.u32 %v10744_v60, %v7507_v59  ;;  %v10969_v59 = vld [vmem:[%s11905_s6 + $0x860] sm:$0xf0]  ;;  %v8567_v60 = vld [vmem:[%s11905_s6 + $0x990] sm:$0xf] }
 0x17e   : > { %6057 = vmatpush.bf16.msra.mxu1 %v7568_v5  ;;  %v8127_v5 = vld [vmem:[%s11905_s6 + $0x620] sm:$0xf]  ;;  %v8227_v4 = vld [vmem:[%s11905_s6 + $0x6e8] sm:$0xf] }
 0x17f   : > { %6070 = vmatpush.bf16.msra.mxu2 %v7728_v50  ;;  %v10899_v50 = vld [vmem:[%s11905_s6 + $0x630] sm:$0xf0] }
 0x180   : > { %6083 = vmatpush.bf16.msra.mxu3 %v7888_v10  ;;  %v10979_v10 = vld [vmem:[%s11905_s6 + $0x8b0] sm:$0xf0]  ;;  %v8128_v16 = vor.u32 %v10899_v50, %v8127_v5  ;;  %v8568_v5 = vor.u32 %v11009_v61, %v8567_v60  ;;  %v10924_v50 = vld [vmem:[%s11905_s6 + $0x6f8] sm:$0xf0]  ;;  %v8507_v60 = vld [vmem:[%s11905_s6 + $0x918] sm:$0xf] }
 0x181   : > { %6045 = vmatpush.bf16.msra.mxu0 %v7388_v21  ;;  %v8448_v21 = vor.u32 %v10979_v10, %v8447_v9  ;;  %v11004_v9 = vld [vmem:[%s11905_s6 + $0x978] sm:$0xf0]  ;;  %v8068_v10 = vor.u32 %v10884_v3, %v8067_v2  ;;  %v10994_v61 = vld [vmem:[%s11905_s6 + $0x928] sm:$0xf0] }
 0x182   : > { %6058 = vmatpush.bf16.msra.mxu1 %v7548_v32  ;;  %v10894_v32 = vld [vmem:[%s11905_s6 + $0x608] sm:$0xf0] }
 0x183   : > { %6071 = vmatpush.bf16.msra.mxu2 %v7708_v26  ;;  %v8267_v26 = vld [vmem:[%s11905_s6 + $0x738] sm:$0xf]  ;;  %v8108_v48 = vor.u32 %v10894_v32, %v8107_v27  ;;  %v8548_v27 = vor.u32 %v11004_v9, %v8547_v8  ;;  %v10919_v32 = vld [vmem:[%s11905_s6 + $0x6d0] sm:$0xf0]  ;;  %v10909_v8 = vld [vmem:[%s11905_s6 + $0x680] sm:$0xf0] }
 0x184   : > { %6084 = vmatpush.bf16.msra.mxu3 %v7868_v43  ;;  %v8587_v43 = vld [vmem:[%s11905_s6 + $0x9b8] sm:$0xf]  ;;  %v8268_v51 = vor.u32 %v10934_v36, %v8267_v26  ;;  %v8367_v26 = vld [vmem:[%s11905_s6 + $0x800] sm:$0xf]  ;;  %v8327_v9 = vld [vmem:[%s11905_s6 + $0x7b0] sm:$0xf] }
 0x185   : > { %6046 = vmatpush.bf16.msra.mxu0 %v7368_v54  ;;  %v10889_v54 = vld [vmem:[%s11905_s6 + $0x5e0] sm:$0xf0]  ;;  %v8588_v56 = vor.u32 %v11014_v47, %v8587_v43  ;;  %v8527_v36 = vld [vmem:[%s11905_s6 + $0x940] sm:$0xf] }
 0x186   : > { %6059 = vmatpush.bf16.msra.mxu1 %v7528_v57  ;;  %v10929_v57 = vld [vmem:[%s11905_s6 + $0x720] sm:$0xf0]  ;;  %v8088_v63 = vor.u32 %v10889_v54, %v8087_v53  ;;  %v8528_v54 = vor.u32 %v10999_v39, %v8527_v36  ;;  %v10944_v36 = vld [vmem:[%s11905_s6 + $0x798] sm:$0xf0]  ;;  %v8467_v39 = vld [vmem:[%s11905_s6 + $0x8c8] sm:$0xf] }
 0x187   : > { %6072 = vmatpush.bf16.msra.mxu2 %v7688_v58  ;;  %v8407_v58 = vld [vmem:[%s11905_s6 + $0x850] sm:$0xf] }
 0x188   : > { %6085 = vmatpush.bf16.msra.mxu3 %v7848_v0  ;;  %v8248_v0 = vor.u32 %v10929_v57, %v8247_v55  ;;  %v8408_v1 = vor.u32 %v10969_v59, %v8407_v58  ;;  %v10914_v55 = vld [vmem:[%s11905_s6 + $0x6a8] sm:$0xf0] }
 0x189   : > { %6047 = vmatpush.bf16.msra.mxu0 %v7348_v7  ;;  %v10964_v7 = vld [vmem:[%s11905_s6 + $0x838] sm:$0xf0]  ;;  %v10954_v57 = vld [vmem:[%s11905_s6 + $0x7e8] sm:$0xf0] }
 0x18a   : > { %6060 = vmatpush.bf16.msra.mxu1 %v7508_v11  ;;  %v5841_v11 = vpop.f32.mrf.mxu0  ;;  %v8388_v13 = vor.u32 %v10964_v7, %v8387_v6  ;;  %v8508_v7 = vor.u32 %v10994_v61, %v8507_v60 }
 0x18b   : > { %6073 = vmatpush.bf16.msra.mxu2 %v7668_v12  ;;  %v8228_v12 = vor.u32 %v10924_v50, %v8227_v4  ;;  %v8007_v4 = vld [vmem:[%s11905_s6 + $0x530] sm:$0xf] }
 0x18c   : > { %6086 = vmatpush.bf16.msra.mxu3 %v7828_v15  ;;  %6048 = vmatmul.bf16.vlgmr.msra.gmra.mxu0 %v12025_v19  ;;  %v10879_v15 = vld [vmem:[%s11905_s6 + $0x590] sm:$0xf0]  ;;  %v8167_v50 = vld [vmem:[%s11905_s6 + $0x670] sm:$0xf] }
 0x18d   : > { %6092 = vmatpush.bf16.msrb.mxu0 %v8128_v16  ;;  %6061 = vmatmul.bf16.vlgmr.msra.gmra.mxu1 %v12029_v22  ;;  %v8207_v16 = vld [vmem:[%s11905_s6 + $0x6c0] sm:$0xf]  ;;  %v8048_v43 = vor.u32 %v10879_v15, %v8047_v14  ;;  %v7987_v14 = vld [vmem:[%s11905_s6 + $0x508] sm:$0xf]  ;;  %v10864_v15 = vld [vmem:[%s11905_s6 + $0x518] sm:$0xf0] }
 0x18e   : > { %6105 = vmatpush.bf16.msrb.mxu1 %v8288_v17  ;;  %6074 = vmatmul.bf16.vlgmr.msra.gmra.mxu2 %v12023_v18  ;;  %v5842_v17 = vadd.f32 %v5841_v11, %v12739_v24  ;;  %v8208_v24 = vor.u32 %v10919_v32, %v8207_v16  ;;  %v8487_v11 = vld [vmem:[%s11905_s6 + $0x8f0] sm:$0xf]  ;;  %v8168_v16 = vor.u32 %v10909_v8, %v8167_v50  ;;  %v8307_v32 = vld [vmem:[%s11905_s6 + $0x788] sm:$0xf]  ;;  %v9067_v50 = vld [vmem:[%s11905_s6 + $0xd78] sm:$0xf] }
 0x18f   : > { %6118 = vmatpush.bf16.msrb.mxu2 %v8448_v21  ;;  %6087 = vmatmul.bf16.vlgmr.msra.gmra.mxu3 %v12027_v20  ;;  %v5854_v21 = vpop.f32.mrf.mxu1  ;;  %v11174_v8 = vld [vmem:[%s11905_s6 + $0xec8] sm:$0xf0] }
 0x190   : > { %6131 = vmatpush.bf16.msrb.mxu3 %v8608_v34  ;;  %v10959_v34 = vld [vmem:[%s11905_s6 + $0x810] sm:$0xf0]  ;;  %v5855_v40 = vadd.f32 %v5854_v21, %v5842_v17  ;;  %v8147_v21 = vld [vmem:[%s11905_s6 + $0x648] sm:$0xf] }
 0x191   : > { %6093 = vmatpush.bf16.msrb.mxu0 %v8108_v48  ;;  %v8368_v47 = vor.u32 %v10959_v34, %v8367_v26  ;;  %v8027_v48 = vld [vmem:[%s11905_s6 + $0x558] sm:$0xf]  ;;  %v5867_v53 = vpop.f32.mrf.mxu2 }
 0x192   : > { %6106 = vmatpush.bf16.msrb.mxu1 %v8268_v51  ;;  %v10874_v51 = vld [vmem:[%s11905_s6 + $0x568] sm:$0xf0]  ;;  %v5868_v58 = vadd.f32 %v5867_v53, %v5855_v40  ;;  %v5880_v59 = vpop.f32.mrf.mxu3  ;;  %v10984_v40 = vld [vmem:[%s11905_s6 + $0x8d8] sm:$0xf0]  ;;  %v9087_v53 = vld [vmem:[%s11905_s6 + $0xda0] sm:$0xf] }
 0x193   : > { %6119 = vmatpush.bf16.msrb.mxu2 %v8428_v52  ;;  %v8187_v52 = vld [vmem:[%s11905_s6 + $0x698] sm:$0xf] }
 0x194   : > { %6132 = vmatpush.bf16.msrb.mxu3 %v8588_v56  ;;  %v8347_v56 = vld [vmem:[%s11905_s6 + $0x7d8] sm:$0xf]  ;;  %v8188_v2 = vor.u32 %v10914_v55, %v8187_v52  ;;  %v11099_v52 = vld [vmem:[%s11905_s6 + $0xc70] sm:$0xf0] }
 0x195   : > { %6094 = vmatpush.bf16.msrb.mxu0 %v8088_v63  ;;  %v8028_v63 = vor.u32 %v10874_v51, %v8027_v48  ;;  %v8348_v3 = vor.u32 %v10954_v57, %v8347_v56  ;;  %v8927_v48 = vld [vmem:[%s11905_s6 + $0xc60] sm:$0xf]  ;;  %v7988_v51 = vor.u32 %v10864_v15, %v7987_v14  ;;  %v8308_v56 = vor.u32 %v10944_v36, %v8307_v32  ;;  %v8887_v14 = vld [vmem:[%s11905_s6 + $0xc10] sm:$0xf]  ;;  %v11169_v32 = vld [vmem:[%s11905_s6 + $0xea0] sm:$0xf0] }
 0x196   : > { %6107 = vmatpush.bf16.msrb.mxu1 %v8248_v0  ;;  %v12810_v0 = vadd.f32 %v5880_v59, %v5868_v58  ;;  %v9247_v57 = vld [vmem:[%s11905_s6 + $0xee0] sm:$0xf]  ;;  %v11179_v58 = vld [vmem:[%s11905_s6 + $0xef0] sm:$0xf0]  ;;  %v8468_v59 = vor.u32 %v10984_v40, %v8467_v39  ;;  %v8928_v61 = vor.u32 %v11099_v52, %v8927_v48  ;;  %v8707_v39 = vld [vmem:[%s11905_s6 + $0xaa8] sm:$0xf] }
 0x197   : > { %6120 = vmatpush.bf16.msrb.mxu2 %v8408_v1  ;;  %v5843_v1 = vpop.f32.mrf.mxu0  ;;  %v5856_v6 = vpop.f32.mrf.mxu1  ;;  %v11044_v40 = vld [vmem:[%s11905_s6 + $0xab8] sm:$0xf0]  ;;  %v9027_v48 = vld [vmem:[%s11905_s6 + $0xd28] sm:$0xf] }
 0x198   : > { %6133 = vmatpush.bf16.msrb.mxu3 %v8568_v5  ;;  %v10869_v5 = vld [vmem:[%s11905_s6 + $0x540] sm:$0xf0]  ;;  %v8747_v1 = vld [vmem:[%s11905_s6 + $0xaf8] sm:$0xf]  ;;  %v11134_v6 = vld [vmem:[%s11905_s6 + $0xd88] sm:$0xf0] }
 0x199   : > { %6095 = vmatpush.bf16.msrb.mxu0 %v8068_v10  ;;  %v10949_v10 = vld [vmem:[%s11905_s6 + $0x7c0] sm:$0xf0]  ;;  %v5869_v26 = vpop.f32.mrf.mxu2 }
 0x19a   : > { %6108 = vmatpush.bf16.msrb.mxu1 %v8228_v12  ;;  %v10989_v12 = vld [vmem:[%s11905_s6 + $0x900] sm:$0xf0]  ;;  %v8328_v17 = vor.u32 %v10949_v10, %v8327_v9 }
 0x19b   : > { %6121 = vmatpush.bf16.msrb.mxu2 %v8388_v13  ;;  %v8008_v13 = vor.u32 %v10869_v5, %v8007_v4  ;;  %v8488_v34 = vor.u32 %v10989_v12, %v8487_v11  ;;  %v9248_v4 = vor.u32 %v11179_v58, %v9247_v57  ;;  %v11094_v5 = vld [vmem:[%s11905_s6 + $0xc48] sm:$0xf0]  ;;  %v9068_v11 = vor.u32 %v11134_v6, %v9067_v50  ;;  %v8727_v12 = vld [vmem:[%s11905_s6 + $0xad0] sm:$0xf]  ;;  %v11159_v50 = vld [vmem:[%s11905_s6 + $0xe50] sm:$0xf0] }
 0x19c   : > { %6134 = vmatpush.bf16.msrb.mxu3 %v8548_v27  ;;  %v10904_v27 = vld [vmem:[%s11905_s6 + $0x658] sm:$0xf0] }
 0x19d   : > { %6096 = vmatpush.bf16.msrb.mxu0 %v8048_v43  ;;  %v5882_v43 = vpop.f32.mrf.mxu3  ;;  %v8148_v55 = vor.u32 %v10904_v27, %v8147_v21  ;;  %v11129_v21 = vld [vmem:[%s11905_s6 + $0xd60] sm:$0xf0]  ;;  %v9207_v27 = vld [vmem:[%s11905_s6 + $0xe90] sm:$0xf] }
 0x19e   : > { %6109 = vmatpush.bf16.msrb.mxu1 %v8208_v24  ;;  %v8767_v24 = vld [vmem:[%s11905_s6 + $0xb20] sm:$0xf]  ;;  %v8867_v43 = vld [vmem:[%s11905_s6 + $0xbe8] sm:$0xf] }
 0x19f   : > { %6122 = vmatpush.bf16.msrb.mxu2 %v8368_v47  ;;  %v11059_v47 = vld [vmem:[%s11905_s6 + $0xb30] sm:$0xf0] }
 0x1a0   : > { %6135 = vmatpush.bf16.msrb.mxu3 %v8528_v54  ;;  %v11139_v54 = vld [vmem:[%s11905_s6 + $0xdb0] sm:$0xf0]  ;;  %v8768_v60 = vor.u32 %v11059_v47, %v8767_v24  ;;  %v9208_v24 = vor.u32 %v11169_v32, %v9207_v27  ;;  %v11084_v47 = vld [vmem:[%s11905_s6 + $0xbf8] sm:$0xf0]  ;;  %v9147_v27 = vld [vmem:[%s11905_s6 + $0xe18] sm:$0xf] }
 0x1a1   : > { %6097 = vmatpush.bf16.msrb.mxu0 %v8028_v63  ;;  %v9088_v63 = vor.u32 %v11139_v54, %v9087_v53  ;;  %v9187_v53 = vld [vmem:[%s11905_s6 + $0xe68] sm:$0xf]  ;;  %v11164_v54 = vld [vmem:[%s11905_s6 + $0xe78] sm:$0xf0]  ;;  %v8868_v58 = vor.u32 %v11084_v47, %v8867_v43  ;;  %v11154_v32 = vld [vmem:[%s11905_s6 + $0xe28] sm:$0xf0] }
 0x1a2   : > { %6110 = vmatpush.bf16.msrb.mxu1 %v8188_v2  ;;  %v11054_v2 = vld [vmem:[%s11905_s6 + $0xb08] sm:$0xf0]  ;;  %v11029_v47 = vld [vmem:[%s11905_s6 + $0xa40] sm:$0xf0] }
 0x1a3   : > { %6123 = vmatpush.bf16.msrb.mxu2 %v8348_v3  ;;  %v8907_v3 = vld [vmem:[%s11905_s6 + $0xc38] sm:$0xf]  ;;  %v8748_v9 = vor.u32 %v11054_v2, %v8747_v1  ;;  %v9188_v1 = vor.u32 %v11164_v54, %v9187_v53  ;;  %v8967_v53 = vld [vmem:[%s11905_s6 + $0xcb0] sm:$0xf]  ;;  %v11109_v54 = vld [vmem:[%s11905_s6 + $0xcc0] sm:$0xf0] }
 0x1a4   : > { %6136 = vmatpush.bf16.msrb.mxu3 %v8508_v7  ;;  %v9227_v7 = vld [vmem:[%s11905_s6 + $0xeb8] sm:$0xf]  ;;  %v8908_v10 = vor.u32 %v11094_v5, %v8907_v3  ;;  %v11079_v3 = vld [vmem:[%s11905_s6 + $0xbd0] sm:$0xf0]  ;;  %v9167_v5 = vld [vmem:[%s11905_s6 + $0xe40] sm:$0xf] }
 0x1a5   : > { %6098 = vmatpush.bf16.msrb.mxu0 %v8008_v13  ;;  %v11049_v13 = vld [vmem:[%s11905_s6 + $0xae0] sm:$0xf0]  ;;  %v9228_v15 = vor.u32 %v11174_v8, %v9227_v7 }
 0x1a6   : > { %6111 = vmatpush.bf16.msrb.mxu1 %v8168_v16  ;;  %v11089_v16 = vld [vmem:[%s11905_s6 + $0xc20] sm:$0xf0]  ;;  %v8728_v26 = vor.u32 %v11049_v13, %v8727_v12  ;;  %v9168_v12 = vor.u32 %v11159_v50, %v9167_v5  ;;  %v11144_v5 = vld [vmem:[%s11905_s6 + $0xdd8] sm:$0xf0] }
 0x1a7   : > { %6124 = vmatpush.bf16.msrb.mxu2 %v8328_v17  ;;  %v9047_v17 = vld [vmem:[%s11905_s6 + $0xd50] sm:$0xf] }
 0x1a8   : > { %6137 = vmatpush.bf16.msrb.mxu3 %v8488_v34  ;;  %v8888_v34 = vor.u32 %v11089_v16, %v8887_v14  ;;  %v9048_v36 = vor.u32 %v11129_v21, %v9047_v17  ;;  %v11074_v14 = vld [vmem:[%s11905_s6 + $0xba8] sm:$0xf0] }
 0x1a9   : > { %6099 = vmatpush.bf16.msrb.mxu0 %v7988_v51  ;;  %v11124_v51 = vld [vmem:[%s11905_s6 + $0xd38] sm:$0xf0]  ;;  %v5893_v52 = vpop.f32.mrf.mxu0  ;;  %v11114_v16 = vld [vmem:[%s11905_s6 + $0xce8] sm:$0xf0] }
 0x1aa   : > { %6112 = vmatpush.bf16.msrb.mxu1 %v8148_v55  ;;  %v5894_v55 = vadd.f32 %v5893_v52, %v12810_v0  ;;  %v5906_v57 = vpop.f32.mrf.mxu1  ;;  %v11119_v0 = vld [vmem:[%s11905_s6 + $0xd10] sm:$0xf0]  ;;  %v11069_v52 = vld [vmem:[%s11905_s6 + $0xb80] sm:$0xf0] }
 0x1ab   : > { %6125 = vmatpush.bf16.msrb.mxu2 %v8308_v56  ;;  %v8708_v56 = vor.u32 %v11044_v40, %v8707_v39 }
 0x1ac   : > { %6138 = vmatpush.bf16.msrb.mxu3 %v8468_v59  ;;  %6100 = vmatmul.bf16.vlgmr.msrb.gmra.mxu0 %v12091_v41  ;;  %v9028_v59 = vor.u32 %v11124_v51, %v9027_v48  ;;  %v5907_v2 = vadd.f32 %v5906_v57, %v5894_v55  ;;  %v8807_v48 = vld [vmem:[%s11905_s6 + $0xb70] sm:$0xf]  ;;  %v9148_v51 = vor.u32 %v11154_v32, %v9147_v27 }
 0x1ad   : > { %6144 = vmatpush.bf16.msra.mxu0 %v8768_v60  ;;  %6113 = vmatmul.bf16.vlgmr.msrb.gmra.mxu1 %v12095_v44  ;;  %v8687_v60 = vld [vmem:[%s11905_s6 + $0xa80] sm:$0xf]  ;;  %v9127_v55 = vld [vmem:[%s11905_s6 + $0xdf0] sm:$0xf] }
 0x1ae   : > { %6157 = vmatpush.bf16.msra.mxu1 %v8928_v61  ;;  %6126 = vmatmul.bf16.vlgmr.msrb.gmra.mxu2 %v12087_v38  ;;  %v11039_v61 = vld [vmem:[%s11905_s6 + $0xa90] sm:$0xf0] }
 0x1af   : > { %6170 = vmatpush.bf16.msra.mxu2 %v9088_v63  ;;  %6139 = vmatmul.bf16.vlgmr.msrb.gmra.mxu3 %v12093_v42  ;;  %v8847_v63 = vld [vmem:[%s11905_s6 + $0xbc0] sm:$0xf]  ;;  %v8688_v6 = vor.u32 %v11039_v61, %v8687_v60  ;;  %v8808_v60 = vor.u32 %v11069_v52, %v8807_v48  ;;  %v8968_v61 = vor.u32 %v11109_v54, %v8967_v53  ;;  %v11294_v48 = vld [vmem:[%s11905_s6 + $0x1288] sm:$0xf0] }
 0x1b0   : > { %6183 = vmatpush.bf16.msra.mxu3 %v9248_v4  ;;  %v9007_v4 = vld [vmem:[%s11905_s6 + $0xd00] sm:$0xf]  ;;  %v8848_v7 = vor.u32 %v11079_v3, %v8847_v63  ;;  %v8787_v63 = vld [vmem:[%s11905_s6 + $0xb48] sm:$0xf]  ;;  %v11334_v52 = vld [vmem:[%s11905_s6 + $0x13c8] sm:$0xf0] }
 0x1b1   : > { %6145 = vmatpush.bf16.msra.mxu0 %v8748_v9  ;;  %v9008_v8 = vor.u32 %v11119_v0, %v9007_v4  ;;  %v8667_v9 = vld [vmem:[%s11905_s6 + $0xa58] sm:$0xf]  ;;  %v5919_v13 = vpop.f32.mrf.mxu2  ;;  %v11104_v4 = vld [vmem:[%s11905_s6 + $0xc98] sm:$0xf0]  ;;  %v9107_v0 = vld [vmem:[%s11905_s6 + $0xdc8] sm:$0xf] }
 0x1b2   : > { %6158 = vmatpush.bf16.msra.mxu1 %v8908_v10  ;;  %v11034_v10 = vld [vmem:[%s11905_s6 + $0xa68] sm:$0xf0]  ;;  %v5920_v17 = vadd.f32 %v5919_v13, %v5907_v2  ;;  %v5932_v21 = vpop.f32.mrf.mxu3  ;;  %v8947_v2 = vld [vmem:[%s11905_s6 + $0xc88] sm:$0xf]  ;;  %v11299_v13 = vld [vmem:[%s11905_s6 + $0x12b0] sm:$0xf0] }
 0x1b3   : > { %6171 = vmatpush.bf16.msra.mxu2 %v9068_v11  ;;  %v8827_v11 = vld [vmem:[%s11905_s6 + $0xb98] sm:$0xf] }
 0x1b4   : > { %6184 = vmatpush.bf16.msra.mxu3 %v9228_v15  ;;  %v8987_v15 = vld [vmem:[%s11905_s6 + $0xcd8] sm:$0xf]  ;;  %v12881_v39 = vadd.f32 %v5932_v21, %v5920_v17  ;;  %v8828_v40 = vor.u32 %v11074_v14, %v8827_v11  ;;  %v11259_v11 = vld [vmem:[%s11905_s6 + $0x1170] sm:$0xf0]  ;;  %v9108_v21 = vor.u32 %v11144_v5, %v9107_v0  ;;  %v9347_v5 = vld [vmem:[%s11905_s6 + $0xfa8] sm:$0xf] }
 0x1b5   : > { %6146 = vmatpush.bf16.msra.mxu0 %v8728_v26  ;;  %v5895_v26 = vpop.f32.mrf.mxu0  ;;  %v8988_v43 = vor.u32 %v11114_v16, %v8987_v15  ;;  %v8948_v15 = vor.u32 %v11104_v4, %v8947_v2  ;;  %v9887_v16 = vld [vmem:[%s11905_s6 + $0x13e0] sm:$0xf]  ;;  %v11339_v17 = vld [vmem:[%s11905_s6 + $0x13f0] sm:$0xf0]  ;;  %v11329_v2 = vld [vmem:[%s11905_s6 + $0x13a0] sm:$0xf0] }
 0x1b6   : > { %6159 = vmatpush.bf16.msra.mxu1 %v8888_v34  ;;  %v8668_v34 = vor.u32 %v11034_v10, %v8667_v9 }
 0x1b7   : > { %6172 = vmatpush.bf16.msra.mxu2 %v9048_v36  ;;  %v5908_v36 = vpop.f32.mrf.mxu1 }
 0x1b8   : > { %6185 = vmatpush.bf16.msra.mxu3 %v9208_v24  ;;  %v8647_v24 = vld [vmem:[%s11905_s6 + $0xa30] sm:$0xf]  ;;  %v11214_v36 = vld [vmem:[%s11905_s6 + $0x1008] sm:$0xf0] }
 0x1b9   : > { %6147 = vmatpush.bf16.msra.mxu0 %v8708_v56  ;;  %v11149_v56 = vld [vmem:[%s11905_s6 + $0xe00] sm:$0xf0]  ;;  %v8648_v57 = vor.u32 %v11029_v47, %v8647_v24  ;;  %v5921_v50 = vpop.f32.mrf.mxu2  ;;  %v11254_v24 = vld [vmem:[%s11905_s6 + $0x1148] sm:$0xf0]  ;;  %v9707_v47 = vld [vmem:[%s11905_s6 + $0x1278] sm:$0xf] }
 0x1ba   : > { %6160 = vmatpush.bf16.msra.mxu1 %v8868_v58  ;;  %v8627_v58 = vld [vmem:[%s11905_s6 + $0xa08] sm:$0xf]  ;;  %v9128_v3 = vor.u32 %v11149_v56, %v9127_v55  ;;  %v5934_v9 = vpop.f32.mrf.mxu3  ;;  %v9708_v55 = vor.u32 %v11294_v48, %v9707_v47  ;;  %v9367_v56 = vld [vmem:[%s11905_s6 + $0xfd0] sm:$0xf]  ;;  %v11204_v50 = vld [vmem:[%s11905_s6 + $0xfb8] sm:$0xf0] }
 0x1bb   : > { %6173 = vmatpush.bf16.msra.mxu2 %v9028_v59  ;;  %v11024_v59 = vld [vmem:[%s11905_s6 + $0xa18] sm:$0xf0]  ;;  %v9667_v9 = vld [vmem:[%s11905_s6 + $0x1228] sm:$0xf]  ;;  %v11319_v47 = vld [vmem:[%s11905_s6 + $0x1350] sm:$0xf0] }
 0x1bc   : > { %6186 = vmatpush.bf16.msra.mxu3 %v9188_v1  ;;  %v11064_v1 = vld [vmem:[%s11905_s6 + $0xb58] sm:$0xf0]  ;;  %v8628_v10 = vor.u32 %v11024_v59, %v8627_v58  ;;  %v9527_v58 = vld [vmem:[%s11905_s6 + $0x1110] sm:$0xf] }
 0x1bd   : > { %6148 = vmatpush.bf16.msra.mxu0 %v8688_v6  ;;  %v9407_v6 = vld [vmem:[%s11905_s6 + $0x1020] sm:$0xf]  ;;  %v8788_v14 = vor.u32 %v11064_v1, %v8787_v63  ;;  %v11289_v63 = vld [vmem:[%s11905_s6 + $0x1260] sm:$0xf0]  ;;  %v9847_v1 = vld [vmem:[%s11905_s6 + $0x1390] sm:$0xf] }
 0x1be   : > { %6161 = vmatpush.bf16.msra.mxu1 %v8848_v7  ;;  %v11219_v7 = vld [vmem:[%s11905_s6 + $0x1030] sm:$0xf0] }
 0x1bf   : > { %6174 = vmatpush.bf16.msra.mxu2 %v9008_v8  ;;  %v9567_v8 = vld [vmem:[%s11905_s6 + $0x1160] sm:$0xf]  ;;  %v9408_v27 = vor.u32 %v11219_v7, %v9407_v6  ;;  %v9507_v6 = vld [vmem:[%s11905_s6 + $0x10e8] sm:$0xf]  ;;  %v9848_v7 = vor.u32 %v11329_v2, %v9847_v1  ;;  %v9787_v1 = vld [vmem:[%s11905_s6 + $0x1318] sm:$0xf] }
 0x1c0   : > { %6187 = vmatpush.bf16.msra.mxu3 %v9168_v12  ;;  %v9727_v12 = vld [vmem:[%s11905_s6 + $0x12a0] sm:$0xf]  ;;  %v9568_v32 = vor.u32 %v11259_v11, %v9567_v8  ;;  %v11244_v8 = vld [vmem:[%s11905_s6 + $0x10f8] sm:$0xf0]  ;;  %v11314_v2 = vld [vmem:[%s11905_s6 + $0x1328] sm:$0xf0] }
 0x1c1   : > { %6149 = vmatpush.bf16.msra.mxu0 %v8668_v34  ;;  %v9728_v26 = vor.u32 %v11299_v13, %v9727_v12  ;;  %v9387_v34 = vld [vmem:[%s11905_s6 + $0xff8] sm:$0xf]  ;;  %v9827_v12 = vld [vmem:[%s11905_s6 + $0x1368] sm:$0xf]  ;;  %v11324_v13 = vld [vmem:[%s11905_s6 + $0x1378] sm:$0xf0] }
 0x1c2   : > { %6162 = vmatpush.bf16.msra.mxu1 %v8828_v40  ;;  %v9547_v40 = vld [vmem:[%s11905_s6 + $0x1138] sm:$0xf]  ;;  %v9388_v53 = vor.u32 %v11214_v36, %v9387_v34  ;;  %v9828_v34 = vor.u32 %v11324_v13, %v9827_v12  ;;  %v9607_v12 = vld [vmem:[%s11905_s6 + $0x11b0] sm:$0xf]  ;;  %v11269_v13 = vld [vmem:[%s11905_s6 + $0x11c0] sm:$0xf0] }
 0x1c3   : > { %6175 = vmatpush.bf16.msra.mxu2 %v8988_v43  ;;  %v9888_v43 = vor.u32 %v11339_v17, %v9887_v16  ;;  %v9548_v54 = vor.u32 %v11254_v24, %v9547_v40  ;;  %v9508_v17 = vor.u32 %v11244_v8, %v9507_v6  ;;  %v11239_v40 = vld [vmem:[%s11905_s6 + $0x10d0] sm:$0xf0]  ;;  %v9807_v24 = vld [vmem:[%s11905_s6 + $0x1340] sm:$0xf]  ;;  %v11189_v8 = vld [vmem:[%s11905_s6 + $0xf40] sm:$0xf0] }
 0x1c4   : > { %6188 = vmatpush.bf16.msra.mxu3 %v9148_v51  ;;  %v9867_v51 = vld [vmem:[%s11905_s6 + $0x13b8] sm:$0xf] }
 0x1c5   : > { %6150 = vmatpush.bf16.msra.mxu0 %v8648_v57  ;;  %v11209_v57 = vld [vmem:[%s11905_s6 + $0xfe0] sm:$0xf0]  ;;  %v9868_v59 = vor.u32 %v11334_v52, %v9867_v51 }
 0x1c6   : > { %6163 = vmatpush.bf16.msra.mxu1 %v8808_v60  ;;  %v11249_v60 = vld [vmem:[%s11905_s6 + $0x1120] sm:$0xf0] }
 0x1c7   : > { %6176 = vmatpush.bf16.msra.mxu2 %v8968_v61  ;;  %v9687_v61 = vld [vmem:[%s11905_s6 + $0x1250] sm:$0xf]  ;;  %v9528_v4 = vor.u32 %v11249_v60, %v9527_v58  ;;  %v11234_v58 = vld [vmem:[%s11905_s6 + $0x10a8] sm:$0xf0] }
 0x1c8   : > { %6189 = vmatpush.bf16.msra.mxu3 %v9128_v3  ;;  %v9368_v3 = vor.u32 %v11209_v57, %v9367_v56  ;;  %v9688_v0 = vor.u32 %v11289_v63, %v9687_v61  ;;  %v9808_v56 = vor.u32 %v11319_v47, %v9807_v24  ;;  %v11274_v60 = vld [vmem:[%s11905_s6 + $0x11e8] sm:$0xf0]  ;;  %v11304_v24 = vld [vmem:[%s11905_s6 + $0x12d8] sm:$0xf0] }
 0x1c9   : > { %6151 = vmatpush.bf16.msra.mxu0 %v8628_v10  ;;  %v11284_v10 = vld [vmem:[%s11905_s6 + $0x1238] sm:$0xf0]  ;;  %v5945_v11 = vpop.f32.mrf.mxu0 }
 0x1ca   : > { %6164 = vmatpush.bf16.msra.mxu1 %v8788_v14  ;;  %v5946_v14 = vadd.f32 %v5945_v11, %v12881_v39  ;;  %v5958_v16 = vpop.f32.mrf.mxu1  ;;  %v11279_v39 = vld [vmem:[%s11905_s6 + $0x1210] sm:$0xf0]  ;;  %v11229_v11 = vld [vmem:[%s11905_s6 + $0x1080] sm:$0xf0] }
 0x1cb   : > { %6177 = vmatpush.bf16.msra.mxu2 %v8948_v15  ;;  %v9348_v15 = vor.u32 %v11204_v50, %v9347_v5 }
 0x1cc   : > { %6190 = vmatpush.bf16.msra.mxu3 %v9108_v21  ;;  %6152 = vmatmul.bf16.vlgmr.msra.gmra.mxu0 %v12166_v25  ;;  %v9668_v21 = vor.u32 %v11284_v10, %v9667_v9  ;;  %v5959_v36 = vadd.f32 %v5958_v16, %v5946_v14  ;;  %v9447_v9 = vld [vmem:[%s11905_s6 + $0x1070] sm:$0xf]  ;;  %v9788_v10 = vor.u32 %v11314_v2, %v9787_v1 }
 0x1cd   : > { %6196 = vmatpush.bf16.msrb.mxu0 %v9408_v27  ;;  %6165 = vmatmul.bf16.vlgmr.msra.gmra.mxu1 %v12173_v30  ;;  %v9327_v27 = vld [vmem:[%s11905_s6 + $0xf80] sm:$0xf]  ;;  %v9767_v14 = vld [vmem:[%s11905_s6 + $0x12f0] sm:$0xf] }
 0x1ce   : > { %6209 = vmatpush.bf16.msrb.mxu1 %v9568_v32  ;;  %6178 = vmatmul.bf16.vlgmr.msra.gmra.mxu2 %v12171_v29  ;;  %v11199_v32 = vld [vmem:[%s11905_s6 + $0xf90] sm:$0xf0] }
 0x1cf   : > { %6222 = vmatpush.bf16.msrb.mxu2 %v9728_v26  ;;  %6191 = vmatmul.bf16.vlgmr.msra.gmra.mxu3 %v12177_v33  ;;  %v9487_v26 = vld [vmem:[%s11905_s6 + $0x10c0] sm:$0xf]  ;;  %v9328_v48 = vor.u32 %v11199_v32, %v9327_v27  ;;  %v9448_v27 = vor.u32 %v11229_v11, %v9447_v9  ;;  %v9608_v32 = vor.u32 %v11269_v13, %v9607_v12  ;;  %v11454_v9 = vld [vmem:[%s11905_s6 + $0x1788] sm:$0xf0] }
 0x1d0   : > { %6235 = vmatpush.bf16.msrb.mxu3 %v9888_v43  ;;  %v9647_v43 = vld [vmem:[%s11905_s6 + $0x1200] sm:$0xf]  ;;  %v9488_v51 = vor.u32 %v11239_v40, %v9487_v26  ;;  %v9427_v26 = vld [vmem:[%s11905_s6 + $0x1048] sm:$0xf]  ;;  %v11494_v11 = vld [vmem:[%s11905_s6 + $0x18c8] sm:$0xf0] }
 0x1d1   : > { %6197 = vmatpush.bf16.msrb.mxu0 %v9388_v53  ;;  %v9648_v52 = vor.u32 %v11279_v39, %v9647_v43  ;;  %v9307_v53 = vld [vmem:[%s11905_s6 + $0xf58] sm:$0xf]  ;;  %v5971_v57 = vpop.f32.mrf.mxu2  ;;  %v11264_v43 = vld [vmem:[%s11905_s6 + $0x1198] sm:$0xf0]  ;;  %v9747_v39 = vld [vmem:[%s11905_s6 + $0x12c8] sm:$0xf] }
 0x1d2   : > { %6210 = vmatpush.bf16.msrb.mxu1 %v9548_v54  ;;  %v11194_v54 = vld [vmem:[%s11905_s6 + $0xf68] sm:$0xf0]  ;;  %v5972_v61 = vadd.f32 %v5971_v57, %v5959_v36  ;;  %v5984_v63 = vpop.f32.mrf.mxu3  ;;  %v9587_v36 = vld [vmem:[%s11905_s6 + $0x1188] sm:$0xf]  ;;  %v11459_v57 = vld [vmem:[%s11905_s6 + $0x17b0] sm:$0xf0] }
 0x1d3   : > { %6223 = vmatpush.bf16.msrb.mxu2 %v9708_v55  ;;  %v9467_v55 = vld [vmem:[%s11905_s6 + $0x1098] sm:$0xf] }
 0x1d4   : > { %6236 = vmatpush.bf16.msrb.mxu3 %v9868_v59  ;;  %v9627_v59 = vld [vmem:[%s11905_s6 + $0x11d8] sm:$0xf]  ;;  %v12952_v5 = vadd.f32 %v5984_v63, %v5972_v61  ;;  %v9468_v50 = vor.u32 %v11234_v58, %v9467_v55  ;;  %v11419_v55 = vld [vmem:[%s11905_s6 + $0x1670] sm:$0xf0]  ;;  %v9748_v63 = vor.u32 %v11304_v24, %v9747_v39  ;;  %v9987_v24 = vld [vmem:[%s11905_s6 + $0x14a8] sm:$0xf] }
 0x1d5   : > { %6198 = vmatpush.bf16.msrb.mxu0 %v9368_v3  ;;  %v5947_v3 = vpop.f32.mrf.mxu0  ;;  %v9628_v6 = vor.u32 %v11274_v60, %v9627_v59  ;;  %v9588_v59 = vor.u32 %v11264_v43, %v9587_v36  ;;  %v10527_v60 = vld [vmem:[%s11905_s6 + $0x18e0] sm:$0xf]  ;;  %v11499_v61 = vld [vmem:[%s11905_s6 + $0x18f0] sm:$0xf0]  ;;  %v11489_v36 = vld [vmem:[%s11905_s6 + $0x18a0] sm:$0xf0] }
 0x1d6   : > { %6211 = vmatpush.bf16.msrb.mxu1 %v9528_v4  ;;  %v9308_v4 = vor.u32 %v11194_v54, %v9307_v53 }
 0x1d7   : > { %6224 = vmatpush.bf16.msrb.mxu2 %v9688_v0  ;;  %v5960_v0 = vpop.f32.mrf.mxu1 }
 0x1d8   : > { %6237 = vmatpush.bf16.msrb.mxu3 %v9848_v7  ;;  %v9287_v7 = vld [vmem:[%s11905_s6 + $0xf30] sm:$0xf]  ;;  %v11374_v0 = vld [vmem:[%s11905_s6 + $0x1508] sm:$0xf0] }
 0x1d9   : > { %6199 = vmatpush.bf16.msrb.mxu0 %v9348_v15  ;;  %v11309_v15 = vld [vmem:[%s11905_s6 + $0x1300] sm:$0xf0]  ;;  %v9288_v16 = vor.u32 %v11189_v8, %v9287_v7  ;;  %v5973_v47 = vpop.f32.mrf.mxu2  ;;  %v11414_v7 = vld [vmem:[%s11905_s6 + $0x1648] sm:$0xf0]  ;;  %v10347_v8 = vld [vmem:[%s11905_s6 + $0x1778] sm:$0xf] }
 0x1da   : > { %6212 = vmatpush.bf16.msrb.mxu1 %v9508_v17  ;;  %v9267_v17 = vld [vmem:[%s11905_s6 + $0xf08] sm:$0xf]  ;;  %v9768_v40 = vor.u32 %v11309_v15, %v9767_v14  ;;  %v5986_v53 = vpop.f32.mrf.mxu3  ;;  %v10348_v14 = vor.u32 %v11454_v9, %v10347_v8  ;;  %v10007_v15 = vld [vmem:[%s11905_s6 + $0x14d0] sm:$0xf]  ;;  %v11364_v47 = vld [vmem:[%s11905_s6 + $0x14b8] sm:$0xf0] }
 0x1db   : > { %6225 = vmatpush.bf16.msrb.mxu2 %v9668_v21  ;;  %v11184_v21 = vld [vmem:[%s11905_s6 + $0xf18] sm:$0xf0]  ;;  %v10307_v53 = vld [vmem:[%s11905_s6 + $0x1728] sm:$0xf]  ;;  %v11479_v8 = vld [vmem:[%s11905_s6 + $0x1850] sm:$0xf0] }
 0x1dc   : > { %6238 = vmatpush.bf16.msrb.mxu3 %v9828_v34  ;;  %v11224_v34 = vld [vmem:[%s11905_s6 + $0x1058] sm:$0xf0]  ;;  %v9268_v54 = vor.u32 %v11184_v21, %v9267_v17  ;;  %v10167_v17 = vld [vmem:[%s11905_s6 + $0x1610] sm:$0xf] }
 0x1dd   : > { %6200 = vmatpush.bf16.msrb.mxu0 %v9328_v48  ;;  %v10047_v48 = vld [vmem:[%s11905_s6 + $0x1520] sm:$0xf]  ;;  %v9428_v58 = vor.u32 %v11224_v34, %v9427_v26  ;;  %v11449_v26 = vld [vmem:[%s11905_s6 + $0x1760] sm:$0xf0]  ;;  %v10487_v34 = vld [vmem:[%s11905_s6 + $0x1890] sm:$0xf] }
 0x1de   : > { %6213 = vmatpush.bf16.msrb.mxu1 %v9488_v51  ;;  %v11379_v51 = vld [vmem:[%s11905_s6 + $0x1530] sm:$0xf0] }
 0x1df   : > { %6226 = vmatpush.bf16.msrb.mxu2 %v9648_v52  ;;  %v10207_v52 = vld [vmem:[%s11905_s6 + $0x1660] sm:$0xf]  ;;  %v10048_v1 = vor.u32 %v11379_v51, %v10047_v48  ;;  %v10147_v48 = vld [vmem:[%s11905_s6 + $0x15e8] sm:$0xf]  ;;  %v10488_v51 = vor.u32 %v11489_v36, %v10487_v34  ;;  %v10427_v34 = vld [vmem:[%s11905_s6 + $0x1818] sm:$0xf] }
 0x1e0   : > { %6239 = vmatpush.bf16.msrb.mxu3 %v9808_v56  ;;  %v10367_v56 = vld [vmem:[%s11905_s6 + $0x17a0] sm:$0xf]  ;;  %v10208_v2 = vor.u32 %v11419_v55, %v10207_v52  ;;  %v11404_v52 = vld [vmem:[%s11905_s6 + $0x15f8] sm:$0xf0]  ;;  %v11474_v36 = vld [vmem:[%s11905_s6 + $0x1828] sm:$0xf0] }
 0x1e1   : > { %6201 = vmatpush.bf16.msrb.mxu0 %v9308_v4  ;;  %v10368_v3 = vor.u32 %v11459_v57, %v10367_v56  ;;  %v10027_v4 = vld [vmem:[%s11905_s6 + $0x14f8] sm:$0xf]  ;;  %v10467_v56 = vld [vmem:[%s11905_s6 + $0x1868] sm:$0xf]  ;;  %v11484_v57 = vld [vmem:[%s11905_s6 + $0x1878] sm:$0xf0] }
 0x1e2   : > { %6214 = vmatpush.bf16.msrb.mxu1 %v9468_v50  ;;  %v10187_v50 = vld [vmem:[%s11905_s6 + $0x1638] sm:$0xf]  ;;  %v10028_v12 = vor.u32 %v11374_v0, %v10027_v4  ;;  %v10468_v4 = vor.u32 %v11484_v57, %v10467_v56  ;;  %v10247_v56 = vld [vmem:[%s11905_s6 + $0x16b0] sm:$0xf]  ;;  %v11429_v57 = vld [vmem:[%s11905_s6 + $0x16c0] sm:$0xf0] }
 0x1e3   : > { %6227 = vmatpush.bf16.msrb.mxu2 %v9628_v6  ;;  %v10528_v6 = vor.u32 %v11499_v61, %v10527_v60  ;;  %v10188_v13 = vor.u32 %v11414_v7, %v10187_v50  ;;  %v10148_v61 = vor.u32 %v11404_v52, %v10147_v48  ;;  %v11399_v50 = vld [vmem:[%s11905_s6 + $0x15d0] sm:$0xf0]  ;;  %v10447_v7 = vld [vmem:[%s11905_s6 + $0x1840] sm:$0xf]  ;;  %v11349_v52 = vld [vmem:[%s11905_s6 + $0x1440] sm:$0xf0] }
 0x1e4   : > { %6240 = vmatpush.bf16.msrb.mxu3 %v9788_v10  ;;  %v10507_v10 = vld [vmem:[%s11905_s6 + $0x18b8] sm:$0xf] }
 0x1e5   : > { %6202 = vmatpush.bf16.msrb.mxu0 %v9288_v16  ;;  %v11369_v16 = vld [vmem:[%s11905_s6 + $0x14e0] sm:$0xf0]  ;;  %v10508_v21 = vor.u32 %v11494_v11, %v10507_v10 }
 0x1e6   : > { %6215 = vmatpush.bf16.msrb.mxu1 %v9448_v27  ;;  %v11409_v27 = vld [vmem:[%s11905_s6 + $0x1620] sm:$0xf0] }
 0x1e7   : > { %6228 = vmatpush.bf16.msrb.mxu2 %v9608_v32  ;;  %v10327_v32 = vld [vmem:[%s11905_s6 + $0x1750] sm:$0xf]  ;;  %v10168_v43 = vor.u32 %v11409_v27, %v10167_v17  ;;  %v11394_v17 = vld [vmem:[%s11905_s6 + $0x15a8] sm:$0xf0] }
 0x1e8   : > { %6241 = vmatpush.bf16.msrb.mxu3 %v9768_v40  ;;  %v10008_v40 = vor.u32 %v11369_v16, %v10007_v15  ;;  %v10328_v39 = vor.u32 %v11449_v26, %v10327_v32  ;;  %v10448_v15 = vor.u32 %v11479_v8, %v10447_v7  ;;  %v11434_v27 = vld [vmem:[%s11905_s6 + $0x16e8] sm:$0xf0]  ;;  %v11464_v7 = vld [vmem:[%s11905_s6 + $0x17d8] sm:$0xf0] }
 0x1e9   : > { %6203 = vmatpush.bf16.msrb.mxu0 %v9268_v54  ;;  %v11444_v54 = vld [vmem:[%s11905_s6 + $0x1738] sm:$0xf0]  ;;  %v5997_v55 = vpop.f32.mrf.mxu0 }
 0x1ea   : > { %6216 = vmatpush.bf16.msrb.mxu1 %v9428_v58  ;;  %v5998_v58 = vadd.f32 %v5997_v55, %v12952_v5  ;;  %v6010_v60 = vpop.f32.mrf.mxu1  ;;  %v11439_v5 = vld [vmem:[%s11905_s6 + $0x1710] sm:$0xf0]  ;;  %v11389_v55 = vld [vmem:[%s11905_s6 + $0x1580] sm:$0xf0] }
 0x1eb   : > { %6229 = vmatpush.bf16.msrb.mxu2 %v9588_v59  ;;  %v9988_v59 = vor.u32 %v11364_v47, %v9987_v24 }
 0x1ec   : > { %6242 = vmatpush.bf16.msrb.mxu3 %v9748_v63  ;;  %6204 = vmatmul.bf16.vlgmr.msrb.gmra.mxu0 %v12248_v23  ;;  %v10308_v63 = vor.u32 %v11444_v54, %v10307_v53  ;;  %v6011_v0 = vadd.f32 %v6010_v60, %v5998_v58  ;;  %v10087_v53 = vld [vmem:[%s11905_s6 + $0x1570] sm:$0xf]  ;;  %v10428_v54 = vor.u32 %v11474_v36, %v10427_v34 }
 0x1ed   : > { %6248 = vmatpush.bf16.msra.mxu0 %v10048_v1  ;;  %6217 = vmatmul.bf16.vlgmr.msrb.gmra.mxu1 %v12255_v31  ;;  %v9967_v1 = vld [vmem:[%s11905_s6 + $0x1480] sm:$0xf]  ;;  %v10407_v58 = vld [vmem:[%s11905_s6 + $0x17f0] sm:$0xf] }
 0x1ee   : > { %6261 = vmatpush.bf16.msra.mxu1 %v10208_v2  ;;  %6230 = vmatmul.bf16.vlgmr.msrb.gmra.mxu2 %v12253_v28  ;;  %v11359_v2 = vld [vmem:[%s11905_s6 + $0x1490] sm:$0xf0] }
 0x1ef   : > { %6274 = vmatpush.bf16.msra.mxu2 %v10368_v3  ;;  %6243 = vmatmul.bf16.vlgmr.msrb.gmra.mxu3 %v12259_v35  ;;  %v10127_v3 = vld [vmem:[%s11905_s6 + $0x15c0] sm:$0xf]  ;;  %v9968_v9 = vor.u32 %v11359_v2, %v9967_v1  ;;  %v10088_v1 = vor.u32 %v11389_v55, %v10087_v53  ;;  %v10248_v2 = vor.u32 %v11429_v57, %v10247_v56  ;;  %v7789_v53 = vld [vmem:[%s11905_s6 + $0x38c] sm:$0xf0] }
 0x1f0   : > { %6287 = vmatpush.bf16.msra.mxu3 %v10528_v6  ;;  %v10287_v6 = vld [vmem:[%s11905_s6 + $0x1700] sm:$0xf]  ;;  %v10128_v10 = vor.u32 %v11399_v50, %v10127_v3  ;;  %v10067_v3 = vld [vmem:[%s11905_s6 + $0x1548] sm:$0xf]  ;;  %v7949_v55 = vld [vmem:[%s11905_s6 + $0x4cc] sm:$0xf0] }
 0x1f1   : > { %6249 = vmatpush.bf16.msra.mxu0 %v10028_v12  ;;  %v10288_v11 = vor.u32 %v11439_v5, %v10287_v6  ;;  %v9947_v12 = vld [vmem:[%s11905_s6 + $0x1458] sm:$0xf]  ;;  %v6023_v16 = vpop.f32.mrf.mxu2  ;;  %v11424_v6 = vld [vmem:[%s11905_s6 + $0x1698] sm:$0xf0]  ;;  %v10387_v5 = vld [vmem:[%s11905_s6 + $0x17c8] sm:$0xf] }
 0x1f2   : > { %6262 = vmatpush.bf16.msra.mxu1 %v10188_v13  ;;  %v11354_v13 = vld [vmem:[%s11905_s6 + $0x1468] sm:$0xf0]  ;;  %v6024_v32 = vadd.f32 %v6023_v16, %v6011_v0  ;;  %v6036_v26 = vpop.f32.mrf.mxu3  ;;  %v10227_v0 = vld [vmem:[%s11905_s6 + $0x1688] sm:$0xf]  ;;  %v7809_v16 = vld [vmem:[%s11905_s6 + $0x3b4] sm:$0xf0] }
 0x1f3   : > { %6275 = vmatpush.bf16.msra.mxu2 %v10348_v14  ;;  %v10107_v14 = vld [vmem:[%s11905_s6 + $0x1598] sm:$0xf] }
 0x1f4   : > { %6288 = vmatpush.bf16.msra.mxu3 %v10508_v21  ;;  %v10267_v21 = vld [vmem:[%s11905_s6 + $0x16d8] sm:$0xf]  ;;  %v13023_v24 = vadd.f32 %v6036_v26, %v6024_v32  ;;  %v10108_v47 = vor.u32 %v11394_v17, %v10107_v14  ;;  %v10388_v26 = vor.u32 %v11464_v7, %v10387_v5 }
 0x1f5   : > { %6250 = vmatpush.bf16.msra.mxu0 %v10008_v40  ;;  %v5999_v40 = vpop.f32.mrf.mxu0  ;;  %v10268_v48 = vor.u32 %v11434_v27, %v10267_v21  ;;  %v7649_v14 = vld [vmem:[%s11905_s6 + $0x274] sm:$0xf0]  ;;  %v10228_v21 = vor.u32 %v11424_v6, %v10227_v0  ;;  %v10857_v27 = vld [vmem:[%s11905_s6 + $0x4e4] sm:$0xf]  ;;  %v7929_v0 = vld [vmem:[%s11905_s6 + $0x4a4] sm:$0xf0] }
 0x1f6   : > { %6263 = vmatpush.bf16.msra.mxu1 %v10168_v43  ;;  %v9948_v43 = vor.u32 %v11354_v13, %v9947_v12  ;;  %v7969_v32 = vld [vmem:[%s11905_s6 + $0x4f4] sm:$0xf0]  ;;  %v10722_v6 = vld [vmem:[%s11905_s6 + $0xac] sm:$0xf] }
 0x1f7   : > { %6276 = vmatpush.bf16.msra.mxu2 %v10328_v39  ;;  %v6012_v39 = vpop.f32.mrf.mxu1 }
 0x1f8   : > { %6289 = vmatpush.bf16.msra.mxu3 %v10488_v51  ;;  %v9927_v51 = vld [vmem:[%s11905_s6 + $0x1430] sm:$0xf] }
 0x1f9   : > { %6251 = vmatpush.bf16.msra.mxu0 %v9988_v59  ;;  %v11469_v59 = vld [vmem:[%s11905_s6 + $0x1800] sm:$0xf0]  ;;  %v9928_v60 = vor.u32 %v11349_v52, %v9927_v51  ;;  %v6025_v8 = vpop.f32.mrf.mxu2  ;;  %v7469_v39 = vld [vmem:[%s11905_s6 + $0x10c] sm:$0xf0]  ;;  %v10812_v52 = vld [vmem:[%s11905_s6 + $0x37c] sm:$0xf] }
 0x1fa   : > { %6264 = vmatpush.bf16.msra.mxu1 %v10148_v61  ;;  %v9907_v61 = vld [vmem:[%s11905_s6 + $0x1408] sm:$0xf]  ;;  %v10408_v50 = vor.u32 %v11469_v59, %v10407_v58  ;;  %v6038_v12 = vpop.f32.mrf.mxu3  ;;  %v7629_v51 = vld [vmem:[%s11905_s6 + $0x24c] sm:$0xf0]  ;;  %v7792_v58 = vor.u32 %v10812_v52, %v7789_v53  ;;  %v10727_v59 = vld [vmem:[%s11905_s6 + $0xd4] sm:$0xf] }
 0x1fb   : > { %6277 = vmatpush.bf16.msra.mxu2 %v10308_v63  ;;  %v11344_v63 = vld [vmem:[%s11905_s6 + $0x1418] sm:$0xf0]  ;;  %v7429_v8 = vld [vmem:[%s11905_s6 + $0xbc] sm:$0xf0]  ;;  %v7729_v52 = vld [vmem:[%s11905_s6 + $0x314] sm:$0xf0] }
 0x1fc   : > { %6290 = vmatpush.bf16.msra.mxu3 %v10468_v4  ;;  %v11384_v4 = vld [vmem:[%s11905_s6 + $0x1558] sm:$0xf0]  ;;  %v9908_v13 = vor.u32 %v11344_v63, %v9907_v61  ;;  %v10767_v61 = vld [vmem:[%s11905_s6 + $0x214] sm:$0xf]  ;;  %v10837_v53 = vld [vmem:[%s11905_s6 + $0x444] sm:$0xf] }
 0x1fd   : > { %6252 = vmatpush.bf16.msra.mxu0 %v9968_v9  ;;  %v10737_v9 = vld [vmem:[%s11905_s6 + $0x124] sm:$0xf]  ;;  %v10068_v17 = vor.u32 %v11384_v4, %v10067_v3  ;;  %v7769_v3 = vld [vmem:[%s11905_s6 + $0x364] sm:$0xf0]  ;;  %v10847_v4 = vld [vmem:[%s11905_s6 + $0x494] sm:$0xf] }
 0x1fe   : > { %6265 = vmatpush.bf16.msra.mxu1 %v10128_v10  ;;  %v7489_v10 = vld [vmem:[%s11905_s6 + $0x134] sm:$0xf0]  ;;  %v7932_v12 = vor.u32 %v10847_v4, %v7929_v0  ;;  %v7709_v4 = vld [vmem:[%s11905_s6 + $0x2ec] sm:$0xf0] }
 0x1ff   : > { %6278 = vmatpush.bf16.msra.mxu2 %v10288_v11  ;;  %v10777_v11 = vld [vmem:[%s11905_s6 + $0x264] sm:$0xf]  ;;  %v7492_v34 = vor.u32 %v10737_v9, %v7489_v10  ;;  %v10762_v9 = vld [vmem:[%s11905_s6 + $0x1ec] sm:$0xf] }
 0x200   : > { %6291 = vmatpush.bf16.msra.mxu3 %v10448_v15  ;;  %v10817_v15 = vld [vmem:[%s11905_s6 + $0x3a4] sm:$0xf]  ;;  %v7652_v36 = vor.u32 %v10777_v11, %v7649_v14  ;;  %v10802_v14 = vld [vmem:[%s11905_s6 + $0x32c] sm:$0xf] }
 0x201   : > { %6253 = vmatpush.bf16.msra.mxu0 %v9948_v43  ;;  %v7812_v40 = vor.u32 %v10817_v15, %v7809_v16  ;;  %v10732_v43 = vld [vmem:[%s11905_s6 + $0xfc] sm:$0xf]  ;;  %v11623_v10 = vld [vmem:[%s12371_s12] ss:$2 sm:$0x1f] }
 0x202   : > { %6266 = vmatpush.bf16.msra.mxu1 %v10108_v47  ;;  %v10772_v47 = vld [vmem:[%s11905_s6 + $0x23c] sm:$0xf]  ;;  %v7472_v56 = vor.u32 %v10732_v43, %v7469_v39  ;;  %v1282_v11 = vperm.slane %v11623_v10, 2  ;;  %v7749_v15 = vld [vmem:[%s11905_s6 + $0x33c] sm:$0xf0] }
 0x203   : > { %6279 = vmatpush.bf16.msra.mxu2 %v10268_v48  ;;  %v7972_v48 = vor.u32 %v10857_v27, %v7969_v32  ;;  %v7632_v57 = vor.u32 %v10772_v47, %v7629_v51  ;;  %v10842_v16 = vld [vmem:[%s11905_s6 + $0x46c] sm:$0xf]  ;;  %v10797_v51 = vld [vmem:[%s11905_s6 + $0x304] sm:$0xf] }
 0x204   : > { %6292 = vmatpush.bf16.msra.mxu3 %v10428_v54  ;;  %v10852_v54 = vld [vmem:[%s11905_s6 + $0x4bc] sm:$0xf] }
 0x205   : > { %6254 = vmatpush.bf16.msra.mxu0 %v9928_v60  ;;  %v7449_v60 = vld [vmem:[%s11905_s6 + $0xe4] sm:$0xf0]  ;;  %v7952_v63 = vor.u32 %v10852_v54, %v7949_v55  ;;  %v7889_v54 = vld [vmem:[%s11905_s6 + $0x454] sm:$0xf0] }
 0x206   : > { %6267 = vmatpush.bf16.msra.mxu1 %v10088_v1  ;;  %v7609_v1 = vld [vmem:[%s11905_s6 + $0x224] sm:$0xf0] }
 0x207   : > { %6280 = vmatpush.bf16.msra.mxu2 %v10248_v2  ;;  %v10807_v2 = vld [vmem:[%s11905_s6 + $0x354] sm:$0xf]  ;;  %v7612_v5 = vor.u32 %v10767_v61, %v7609_v1  ;;  %v10752_v61 = vld [vmem:[%s11905_s6 + $0x19c] sm:$0xf]  ;;  %v7892_v1 = vor.u32 %v10837_v53, %v7889_v54  ;;  %v7669_v54 = vld [vmem:[%s11905_s6 + $0x29c] sm:$0xf0] }
 0x208   : > { %6293 = vmatpush.bf16.msra.mxu3 %v10408_v50  ;;  %v7452_v50 = vor.u32 %v10727_v59, %v7449_v60  ;;  %v7772_v7 = vor.u32 %v10807_v2, %v7769_v3  ;;  %v10712_v59 = vld [vmem:[%s11905_s6 + $0x5c] sm:$0xf]  ;;  %v7389_v60 = vld [vmem:[%s11905_s6 + $0x6c] sm:$0xf0] }
 0x209   : > { %6255 = vmatpush.bf16.msra.mxu0 %v9908_v13  ;;  %v7589_v13 = vld [vmem:[%s11905_s6 + $0x1fc] sm:$0xf0]  ;;  %v6049_v27 = vpop.f32.mrf.mxu0  ;;  %v7549_v2 = vld [vmem:[%s11905_s6 + $0x1ac] sm:$0xf0]  ;;  %v10792_v3 = vld [vmem:[%s11905_s6 + $0x2dc] sm:$0xf] }
 0x20a   : > { %6268 = vmatpush.bf16.msra.mxu1 %v10068_v17  ;;  %v7909_v17 = vld [vmem:[%s11905_s6 + $0x47c] sm:$0xf0]  ;;  %v7592_v32 = vor.u32 %v10762_v9, %v7589_v13  ;;  %v6050_v43 = vadd.f32 %v6049_v27, %v1282_v11  ;;  %v6062_v39 = vpop.f32.mrf.mxu1  ;;  %v7552_v10 = vor.u32 %v10752_v61, %v7549_v2  ;;  %v7712_v11 = vor.u32 %v10792_v3, %v7709_v4  ;;  %v7369_v13 = vld [vmem:[%s11905_s6 + $0x44] sm:$0xf0]  ;;  %v8449_v2 = vld [vmem:[%s11905_s6 + $0x8b4] sm:$0xf0] }
 0x20b   : > { %6281 = vmatpush.bf16.msra.mxu2 %v10228_v21  ;;  %v7432_v21 = vor.u32 %v10722_v6, %v7429_v8  ;;  %v7912_v47 = vor.u32 %v10842_v16, %v7909_v17  ;;  %v10832_v6 = vld [vmem:[%s11905_s6 + $0x41c] sm:$0xf]  ;;  %v7529_v17 = vld [vmem:[%s11905_s6 + $0x184] sm:$0xf0] }
 0x20c   : > { %6294 = vmatpush.bf16.msra.mxu3 %v10388_v26  ;;  %6256 = vmatmul.bf16.vlgmr.msra.gmra.mxu0 %v12331_v37  ;;  %v7752_v26 = vor.u32 %v10802_v14, %v7749_v15  ;;  %v6063_v55 = vadd.f32 %v6062_v39, %v6050_v43  ;;  %v10747_v14 = vld [vmem:[%s11905_s6 + $0x174] sm:$0xf]  ;;  %v7689_v27 = vld [vmem:[%s11905_s6 + $0x2c4] sm:$0xf0] }
 0x20d   : > { %6300 = vmatpush.bf16.msrb.mxu0 %v7492_v34  ;;  %6269 = vmatmul.bf16.vlgmr.msra.gmra.mxu1 %v12338_v46  ;;  %v10717_v34 = vld [vmem:[%s11905_s6 + $0x84] sm:$0xf]  ;;  %v7532_v43 = vor.u32 %v10747_v14, %v7529_v17  ;;  %v8269_v14 = vld [vmem:[%s11905_s6 + $0x74c] sm:$0xf0]  ;;  %v11012_v17 = vld [vmem:[%s11905_s6 + $0x9bc] sm:$0xf] }
 0x20e   : > { %6313 = vmatpush.bf16.msrb.mxu1 %v7652_v36  ;;  %6282 = vmatmul.bf16.vlgmr.msra.gmra.mxu2 %v12336_v45  ;;  %v7409_v36 = vld [vmem:[%s11905_s6 + $0x94] sm:$0xf0] }
 0x20f   : > { %6326 = vmatpush.bf16.msrb.mxu2 %v7812_v40  ;;  %6295 = vmatmul.bf16.vlgmr.msra.gmra.mxu3 %v12342_v49  ;;  %v10757_v40 = vld [vmem:[%s11905_s6 + $0x1c4] sm:$0xf] }
 0x210   : > { %6339 = vmatpush.bf16.msrb.mxu3 %v7972_v48  ;;  %v7569_v48 = vld [vmem:[%s11905_s6 + $0x1d4] sm:$0xf0] }
 0x211   : > { %6301 = vmatpush.bf16.msrb.mxu0 %v7472_v56  ;;  %v7412_v56 = vor.u32 %v10717_v34, %v7409_v36  ;;  %v6051_v9 = vpop.f32.mrf.mxu0  ;;  %v10702_v36 = vld [vmem:[%s11905_s6 + $0xc] sm:$0xf] }
 0x212   : > { %6314 = vmatpush.bf16.msrb.mxu1 %v7632_v57  ;;  %v7572_v57 = vor.u32 %v10757_v40, %v7569_v48  ;;  %v6064_v15 = vpop.f32.mrf.mxu1  ;;  %v7349_v40 = vld [vmem:[%s11905_s6 + $0x1c] sm:$0xf0] }
 0x213   : > { %6327 = vmatpush.bf16.msrb.mxu2 %v7792_v58  ;;  %v7732_v58 = vor.u32 %v10797_v51, %v7729_v52  ;;  %v7509_v48 = vld [vmem:[%s11905_s6 + $0x15c] sm:$0xf0]  ;;  %v10782_v51 = vld [vmem:[%s11905_s6 + $0x28c] sm:$0xf]  ;;  %v7352_v61 = vor.u32 %v10702_v36, %v7349_v40  ;;  %v10972_v15 = vld [vmem:[%s11905_s6 + $0x87c] sm:$0xf] }
 0x214   : > { %6340 = vmatpush.bf16.msrb.mxu3 %v7952_v63  ;;  %v6075_v63 = vpop.f32.mrf.mxu2  ;;  %v7672_v4 = vor.u32 %v10782_v51, %v7669_v54  ;;  %v8089_v36 = vld [vmem:[%s11905_s6 + $0x5e4] sm:$0xf0]  ;;  %v10927_v40 = vld [vmem:[%s11905_s6 + $0x714] sm:$0xf] }
 0x215   : > { %6302 = vmatpush.bf16.msrb.mxu0 %v7452_v50  ;;  %v6076_v0 = vadd.f32 %v6075_v63, %v6063_v55  ;;  %v6088_v50 = vpop.f32.mrf.mxu3  ;;  %v10822_v55 = vld [vmem:[%s11905_s6 + $0x3cc] sm:$0xf]  ;;  %v8289_v63 = vld [vmem:[%s11905_s6 + $0x774] sm:$0xf0]  ;;  %v11007_v51 = vld [vmem:[%s11905_s6 + $0x994] sm:$0xf] }
 0x216   : > { %6315 = vmatpush.bf16.msrb.mxu1 %v7612_v5  ;;  %v7869_v5 = vld [vmem:[%s11905_s6 + $0x42c] sm:$0xf0] }
 0x217   : > { %6328 = vmatpush.bf16.msrb.mxu2 %v7772_v7  ;;  %v7392_v7 = vor.u32 %v10712_v59, %v7389_v60  ;;  %v13094_v8 = vadd.f32 %v6088_v50, %v6076_v0  ;;  %v7872_v16 = vor.u32 %v10832_v6, %v7869_v5  ;;  %v8129_v59 = vld [vmem:[%s11905_s6 + $0x634] sm:$0xf0]  ;;  %v10937_v60 = vld [vmem:[%s11905_s6 + $0x764] sm:$0xf] }
 0x218   : > { %6341 = vmatpush.bf16.msrb.mxu3 %v7932_v12  ;;  %v10707_v12 = vld [vmem:[%s11905_s6 + $0x34] sm:$0xf]  ;;  %v11017_v0 = vld [vmem:[%s11905_s6 + $0x9e4] sm:$0xf]  ;;  %v8609_v50 = vld [vmem:[%s11905_s6 + $0x9f4] sm:$0xf0] }
 0x219   : > { %6303 = vmatpush.bf16.msrb.mxu0 %v7432_v21  ;;  %v10787_v21 = vld [vmem:[%s11905_s6 + $0x2b4] sm:$0xf]  ;;  %v7372_v34 = vor.u32 %v10707_v12, %v7369_v13  ;;  %v10932_v12 = vld [vmem:[%s11905_s6 + $0x73c] sm:$0xf]  ;;  %v8612_v13 = vor.u32 %v11017_v0, %v8609_v50 }
 0x21a   : > { %6316 = vmatpush.bf16.msrb.mxu1 %v7592_v32  ;;  %v10827_v32 = vld [vmem:[%s11905_s6 + $0x3f4] sm:$0xf]  ;;  %v7692_v39 = vor.u32 %v10787_v21, %v7689_v27  ;;  %v8589_v21 = vld [vmem:[%s11905_s6 + $0x9cc] sm:$0xf0] }
 0x21b   : > { %6329 = vmatpush.bf16.msrb.mxu2 %v7752_v26  ;;  %v7849_v26 = vld [vmem:[%s11905_s6 + $0x404] sm:$0xf0] }
 0x21c   : > { %6342 = vmatpush.bf16.msrb.mxu3 %v7912_v47  ;;  %v10742_v47 = vld [vmem:[%s11905_s6 + $0x14c] sm:$0xf]  ;;  %v6077_v52 = vpop.f32.mrf.mxu2  ;;  %v7852_v53 = vor.u32 %v10827_v32, %v7849_v26  ;;  %v8272_v32 = vor.u32 %v10932_v12, %v8269_v14  ;;  %v8209_v12 = vld [vmem:[%s11905_s6 + $0x6d4] sm:$0xf0] }
 0x21d   : > { %6304 = vmatpush.bf16.msrb.mxu0 %v7412_v56  ;;  %v7829_v56 = vld [vmem:[%s11905_s6 + $0x3dc] sm:$0xf0]  ;;  %v7512_v3 = vor.u32 %v10742_v47, %v7509_v48  ;;  %v10967_v47 = vld [vmem:[%s11905_s6 + $0x854] sm:$0xf]  ;;  %v8409_v48 = vld [vmem:[%s11905_s6 + $0x864] sm:$0xf0] }
 0x21e   : > { %6317 = vmatpush.bf16.msrb.mxu1 %v7572_v57  ;;  %v6090_v57 = vpop.f32.mrf.mxu3  ;;  %v7832_v6 = vor.u32 %v10822_v55, %v7829_v56  ;;  %v8569_v52 = vld [vmem:[%s11905_s6 + $0x9a4] sm:$0xf0]  ;;  %v8412_v55 = vor.u32 %v10967_v47, %v8409_v48  ;;  %v10882_v56 = vld [vmem:[%s11905_s6 + $0x5ac] sm:$0xf]  ;;  %v8369_v14 = vld [vmem:[%s11905_s6 + $0x814] sm:$0xf0] }
 0x21f   : > { %6330 = vmatpush.bf16.msrb.mxu2 %v7732_v58  ;;  %v10897_v58 = vld [vmem:[%s11905_s6 + $0x624] sm:$0xf]  ;;  %v8069_v57 = vld [vmem:[%s11905_s6 + $0x5bc] sm:$0xf0]  ;;  %v8349_v47 = vld [vmem:[%s11905_s6 + $0x7ec] sm:$0xf0] }
 0x220   : > { %6343 = vmatpush.bf16.msrb.mxu3 %v7892_v1  ;;  %v10977_v1 = vld [vmem:[%s11905_s6 + $0x8a4] sm:$0xf]  ;;  %v8132_v5 = vor.u32 %v10897_v58, %v8129_v59  ;;  %v10922_v58 = vld [vmem:[%s11905_s6 + $0x6ec] sm:$0xf]  ;;  %v8572_v59 = vor.u32 %v11007_v51, %v8569_v52  ;;  %v10992_v52 = vld [vmem:[%s11905_s6 + $0x91c] sm:$0xf] }
 0x221   : > { %6305 = vmatpush.bf16.msrb.mxu0 %v7392_v7  ;;  %v8292_v7 = vor.u32 %v10937_v60, %v8289_v63  ;;  %v8452_v9 = vor.u32 %v10977_v1, %v8449_v2  ;;  %v8229_v60 = vld [vmem:[%s11905_s6 + $0x6fc] sm:$0xf0]  ;;  %v11002_v1 = vld [vmem:[%s11905_s6 + $0x96c] sm:$0xf] }
 0x222   : > { %6318 = vmatpush.bf16.msrb.mxu1 %v7552_v10  ;;  %v10892_v10 = vld [vmem:[%s11905_s6 + $0x5fc] sm:$0xf]  ;;  %v8389_v63 = vld [vmem:[%s11905_s6 + $0x83c] sm:$0xf0]  ;;  %v8232_v0 = vor.u32 %v10922_v58, %v8229_v60  ;;  %v8009_v60 = vld [vmem:[%s11905_s6 + $0x544] sm:$0xf0] }
 0x223   : > { %6331 = vmatpush.bf16.msrb.mxu2 %v7712_v11  ;;  %v8109_v11 = vld [vmem:[%s11905_s6 + $0x60c] sm:$0xf0]  ;;  %v8549_v2 = vld [vmem:[%s11905_s6 + $0x97c] sm:$0xf0] }
 0x224   : > { %6344 = vmatpush.bf16.msrb.mxu3 %v7872_v16  ;;  %v8429_v16 = vld [vmem:[%s11905_s6 + $0x88c] sm:$0xf0]  ;;  %v8112_v27 = vor.u32 %v10892_v10, %v8109_v11  ;;  %v8552_v11 = vor.u32 %v11002_v1, %v8549_v2  ;;  %v8169_v2 = vld [vmem:[%s11905_s6 + $0x684] sm:$0xf0] }
 0x225   : > { %6306 = vmatpush.bf16.msrb.mxu0 %v7372_v34  ;;  %v8432_v26 = vor.u32 %v10972_v15, %v8429_v16  ;;  %v10887_v34 = vld [vmem:[%s11905_s6 + $0x5d4] sm:$0xf]  ;;  %v10997_v15 = vld [vmem:[%s11905_s6 + $0x944] sm:$0xf]  ;;  %v8529_v16 = vld [vmem:[%s11905_s6 + $0x954] sm:$0xf0] }
 0x226   : > { %6319 = vmatpush.bf16.msrb.mxu1 %v7532_v43  ;;  %v8592_v43 = vor.u32 %v11012_v17, %v8589_v21 }
 0x227   : > { %6332 = vmatpush.bf16.msrb.mxu2 %v7692_v39  ;;  %v8249_v39 = vld [vmem:[%s11905_s6 + $0x724] sm:$0xf0] }
 0x228   : > { %6345 = vmatpush.bf16.msrb.mxu3 %v7852_v53  ;;  %v8092_v53 = vor.u32 %v10887_v34, %v8089_v36  ;;  %v8252_v54 = vor.u32 %v10927_v40, %v8249_v39  ;;  %v10912_v34 = vld [vmem:[%s11905_s6 + $0x69c] sm:$0xf]  ;;  %v8532_v40 = vor.u32 %v10997_v15, %v8529_v16  ;;  %v8309_v16 = vld [vmem:[%s11905_s6 + $0x79c] sm:$0xf0] }
 0x229   : > { %6307 = vmatpush.bf16.msrb.mxu0 %v7352_v61  ;;  %v10962_v61 = vld [vmem:[%s11905_s6 + $0x82c] sm:$0xf]  ;;  %v10952_v39 = vld [vmem:[%s11905_s6 + $0x7dc] sm:$0xf] }
 0x22a   : > { %6320 = vmatpush.bf16.msrb.mxu1 %v7512_v3  ;;  %v8072_v3 = vor.u32 %v10882_v56, %v8069_v57  ;;  %v8392_v50 = vor.u32 %v10962_v61, %v8389_v63  ;;  %v6114_v10 = vpop.f32.mrf.mxu1  ;;  %v8352_v58 = vor.u32 %v10952_v39, %v8349_v47  ;;  %v10907_v61 = vld [vmem:[%s11905_s6 + $0x674] sm:$0xf] }
 0x22b   : > { %6333 = vmatpush.bf16.msrb.mxu2 %v7672_v4  ;;  %v6101_v4 = vpop.f32.mrf.mxu0 }
 0x22c   : > { %6346 = vmatpush.bf16.msrb.mxu3 %v7832_v6  ;;  %6308 = vmatmul.bf16.vlgmr.msrb.gmra.mxu0 %v12025_v19  ;;  %v10877_v6 = vld [vmem:[%s11905_s6 + $0x584] sm:$0xf] }
 0x22d   : > { %6352 = vmatpush.bf16.msra.mxu0 %v8132_v5  ;;  %6321 = vmatmul.bf16.vlgmr.msrb.gmra.mxu1 %v12029_v22  ;;  %v8049_v5 = vld [vmem:[%s11905_s6 + $0x594] sm:$0xf0] }
 0x22e   : > { %6365 = vmatpush.bf16.msra.mxu1 %v8292_v7  ;;  %6334 = vmatmul.bf16.vlgmr.msrb.gmra.mxu2 %v12023_v18  ;;  %v10917_v7 = vld [vmem:[%s11905_s6 + $0x6c4] sm:$0xf]  ;;  %v8052_v21 = vor.u32 %v10877_v6, %v8049_v5  ;;  %v10862_v5 = vld [vmem:[%s11905_s6 + $0x50c] sm:$0xf] }
 0x22f   : > { %6378 = vmatpush.bf16.msra.mxu2 %v8452_v9  ;;  %6347 = vmatmul.bf16.vlgmr.msrb.gmra.mxu3 %v12027_v20  ;;  %v6102_v9 = vadd.f32 %v6101_v4, %v13094_v8  ;;  %v8212_v8 = vor.u32 %v10917_v7, %v8209_v12  ;;  %v8329_v4 = vld [vmem:[%s11905_s6 + $0x7c4] sm:$0xf0]  ;;  %v7989_v7 = vld [vmem:[%s11905_s6 + $0x51c] sm:$0xf0] }
 0x230   : > { %6391 = vmatpush.bf16.msra.mxu3 %v8612_v13  ;;  %v10957_v13 = vld [vmem:[%s11905_s6 + $0x804] sm:$0xf]  ;;  %v8149_v12 = vld [vmem:[%s11905_s6 + $0x65c] sm:$0xf0] }
 0x231   : > { %6353 = vmatpush.bf16.msra.mxu0 %v8112_v27  ;;  %v6115_v17 = vadd.f32 %v6114_v10, %v6102_v9  ;;  %v8372_v27 = vor.u32 %v10957_v13, %v8369_v14  ;;  %v6127_v36 = vpop.f32.mrf.mxu2  ;;  %v8172_v9 = vor.u32 %v10907_v61, %v8169_v2  ;;  %v10942_v13 = vld [vmem:[%s11905_s6 + $0x78c] sm:$0xf]  ;;  %v8909_v61 = vld [vmem:[%s11905_s6 + $0xc4c] sm:$0xf0]  ;;  %v11172_v2 = vld [vmem:[%s11905_s6 + $0xebc] sm:$0xf] }
 0x232   : > { %6366 = vmatpush.bf16.msra.mxu1 %v8272_v32  ;;  %v10872_v32 = vld [vmem:[%s11905_s6 + $0x55c] sm:$0xf]  ;;  %v6140_v51 = vpop.f32.mrf.mxu3  ;;  %v6116_v63 = vpop.f32.mrf.mxu1  ;;  %v8312_v47 = vor.u32 %v10942_v13, %v8309_v16  ;;  %v11167_v13 = vld [vmem:[%s11905_s6 + $0xe94] sm:$0xf] }
 0x233   : > { %6379 = vmatpush.bf16.msra.mxu2 %v8432_v26  ;;  %v8029_v26 = vld [vmem:[%s11905_s6 + $0x56c] sm:$0xf0]  ;;  %v6128_v48 = vadd.f32 %v6127_v36, %v6115_v17  ;;  %v6103_v56 = vpop.f32.mrf.mxu0  ;;  %v10982_v17 = vld [vmem:[%s11905_s6 + $0x8cc] sm:$0xf]  ;;  %v8929_v36 = vld [vmem:[%s11905_s6 + $0xc74] sm:$0xf0] }
 0x234   : > { %6392 = vmatpush.bf16.msra.mxu3 %v8592_v43  ;;  %v8189_v43 = vld [vmem:[%s11905_s6 + $0x6ac] sm:$0xf0]  ;;  %v11132_v63 = vld [vmem:[%s11905_s6 + $0xd7c] sm:$0xf] }
 0x235   : > { %6354 = vmatpush.bf16.msra.mxu0 %v8092_v53  ;;  %v8509_v53 = vld [vmem:[%s11905_s6 + $0x92c] sm:$0xf0]  ;;  %v8192_v57 = vor.u32 %v10912_v34, %v8189_v43  ;;  %v7992_v34 = vor.u32 %v10862_v5, %v7989_v7  ;;  %v9089_v43 = vld [vmem:[%s11905_s6 + $0xdb4] sm:$0xf0]  ;;  %v8729_v5 = vld [vmem:[%s11905_s6 + $0xae4] sm:$0xf0] }
 0x236   : > { %6367 = vmatpush.bf16.msra.mxu1 %v8252_v54  ;;  %v8032_v54 = vor.u32 %v10872_v32, %v8029_v26  ;;  %v8512_v1 = vor.u32 %v10992_v52, %v8509_v53  ;;  %v8769_v32 = vld [vmem:[%s11905_s6 + $0xb34] sm:$0xf0]  ;;  %v11097_v26 = vld [vmem:[%s11905_s6 + $0xc64] sm:$0xf]  ;;  %v11087_v7 = vld [vmem:[%s11905_s6 + $0xc14] sm:$0xf] }
 0x237   : > { %6380 = vmatpush.bf16.msra.mxu2 %v8412_v55  ;;  %v13165_v55 = vadd.f32 %v6140_v51, %v6128_v48  ;;  %v11177_v48 = vld [vmem:[%s11905_s6 + $0xee4] sm:$0xf]  ;;  %v9249_v51 = vld [vmem:[%s11905_s6 + $0xef4] sm:$0xf0] }
 0x238   : > { %6393 = vmatpush.bf16.msra.mxu3 %v8572_v59  ;;  %v10867_v59 = vld [vmem:[%s11905_s6 + $0x534] sm:$0xf] }
 0x239   : > { %6355 = vmatpush.bf16.msra.mxu0 %v8072_v3  ;;  %v10947_v3 = vld [vmem:[%s11905_s6 + $0x7b4] sm:$0xf]  ;;  %v8012_v6 = vor.u32 %v10867_v59, %v8009_v60  ;;  %v6129_v14 = vpop.f32.mrf.mxu2  ;;  %v11092_v59 = vld [vmem:[%s11905_s6 + $0xc3c] sm:$0xf]  ;;  %v9252_v60 = vor.u32 %v11177_v48, %v9249_v51 }
 0x23a   : > { %6368 = vmatpush.bf16.msra.mxu1 %v8232_v0  ;;  %v10987_v0 = vld [vmem:[%s11905_s6 + $0x8f4] sm:$0xf]  ;;  %v8332_v10 = vor.u32 %v10947_v3, %v8329_v4  ;;  %v9229_v3 = vld [vmem:[%s11905_s6 + $0xecc] sm:$0xf0]  ;;  %v9209_v14 = vld [vmem:[%s11905_s6 + $0xea4] sm:$0xf0] }
 0x23b   : > { %6381 = vmatpush.bf16.msra.mxu2 %v8392_v50  ;;  %v8489_v50 = vld [vmem:[%s11905_s6 + $0x904] sm:$0xf0] }
 0x23c   : > { %6394 = vmatpush.bf16.msra.mxu3 %v8552_v11  ;;  %v10902_v11 = vld [vmem:[%s11905_s6 + $0x64c] sm:$0xf]  ;;  %v8492_v15 = vor.u32 %v10987_v0, %v8489_v50  ;;  %v8912_v0 = vor.u32 %v11092_v59, %v8909_v61  ;;  %v11117_v61 = vld [vmem:[%s11905_s6 + $0xd04] sm:$0xf] }
 0x23d   : > { %6356 = vmatpush.bf16.msra.mxu0 %v8052_v21  ;;  %v8469_v21 = vld [vmem:[%s11905_s6 + $0x8dc] sm:$0xf0]  ;;  %v8152_v39 = vor.u32 %v10902_v11, %v8149_v12  ;;  %v11127_v11 = vld [vmem:[%s11905_s6 + $0xd54] sm:$0xf]  ;;  %v9049_v12 = vld [vmem:[%s11905_s6 + $0xd64] sm:$0xf0] }
 0x23e   : > { %6369 = vmatpush.bf16.msra.mxu1 %v8212_v8  ;;  %v6142_v8 = vpop.f32.mrf.mxu3  ;;  %v8472_v52 = vor.u32 %v10982_v17, %v8469_v21  ;;  %v9052_v17 = vor.u32 %v11127_v11, %v9049_v12  ;;  %v11042_v21 = vld [vmem:[%s11905_s6 + $0xaac] sm:$0xf]  ;;  %v8989_v11 = vld [vmem:[%s11905_s6 + $0xcec] sm:$0xf0] }
 0x23f   : > { %6382 = vmatpush.bf16.msra.mxu2 %v8372_v27  ;;  %v11057_v27 = vld [vmem:[%s11905_s6 + $0xb24] sm:$0xf]  ;;  %v8709_v8 = vld [vmem:[%s11905_s6 + $0xabc] sm:$0xf0] }
 0x240   : > { %6395 = vmatpush.bf16.msra.mxu3 %v8532_v40  ;;  %v11137_v40 = vld [vmem:[%s11905_s6 + $0xda4] sm:$0xf]  ;;  %v8772_v53 = vor.u32 %v11057_v27, %v8769_v32  ;;  %v11082_v27 = vld [vmem:[%s11905_s6 + $0xbec] sm:$0xf]  ;;  %v9212_v32 = vor.u32 %v11167_v13, %v9209_v14  ;;  %v8712_v48 = vor.u32 %v11042_v21, %v8709_v8  ;;  %v11152_v14 = vld [vmem:[%s11905_s6 + $0xe1c] sm:$0xf] }
 0x241   : > { %6357 = vmatpush.bf16.msra.mxu0 %v8032_v54  ;;  %v8932_v54 = vor.u32 %v11097_v26, %v8929_v36  ;;  %v9092_v56 = vor.u32 %v11137_v40, %v9089_v43  ;;  %v8869_v26 = vld [vmem:[%s11905_s6 + $0xbfc] sm:$0xf0]  ;;  %v11162_v43 = vld [vmem:[%s11905_s6 + $0xe6c] sm:$0xf] }
 0x242   : > { %6370 = vmatpush.bf16.msra.mxu1 %v8192_v57  ;;  %v11052_v57 = vld [vmem:[%s11905_s6 + $0xafc] sm:$0xf]  ;;  %v9029_v36 = vld [vmem:[%s11905_s6 + $0xd3c] sm:$0xf0] }
 0x243   : > { %6383 = vmatpush.bf16.msra.mxu2 %v8352_v58  ;;  %v8749_v58 = vld [vmem:[%s11905_s6 + $0xb0c] sm:$0xf0] }
 0x244   : > { %6396 = vmatpush.bf16.msra.mxu3 %v8512_v1  ;;  %v9069_v1 = vld [vmem:[%s11905_s6 + $0xd8c] sm:$0xf0]  ;;  %v8752_v4 = vor.u32 %v11052_v57, %v8749_v58  ;;  %v11077_v57 = vld [vmem:[%s11905_s6 + $0xbc4] sm:$0xf] }
 0x245   : > { %6358 = vmatpush.bf16.msra.mxu0 %v8012_v6  ;;  %v9072_v50 = vor.u32 %v11132_v63, %v9069_v1  ;;  %v11047_v6 = vld [vmem:[%s11905_s6 + $0xad4] sm:$0xf]  ;;  %v11157_v63 = vld [vmem:[%s11905_s6 + $0xe44] sm:$0xf]  ;;  %v9169_v1 = vld [vmem:[%s11905_s6 + $0xe54] sm:$0xf0] }
 0x246   : > { %6371 = vmatpush.bf16.msra.mxu1 %v8172_v9  ;;  %v9232_v9 = vor.u32 %v11172_v2, %v9229_v3 }
 0x247   : > { %6384 = vmatpush.bf16.msra.mxu2 %v8332_v10  ;;  %v8889_v10 = vld [vmem:[%s11905_s6 + $0xc24] sm:$0xf0] }
 0x248   : > { %6397 = vmatpush.bf16.msra.mxu3 %v8492_v15  ;;  %v8732_v15 = vor.u32 %v11047_v6, %v8729_v5  ;;  %v8892_v16 = vor.u32 %v11087_v7, %v8889_v10  ;;  %v11072_v6 = vld [vmem:[%s11905_s6 + $0xb9c] sm:$0xf]  ;;  %v9172_v5 = vor.u32 %v11157_v63, %v9169_v1  ;;  %v11142_v63 = vld [vmem:[%s11905_s6 + $0xdcc] sm:$0xf]  ;;  %v9109_v1 = vld [vmem:[%s11905_s6 + $0xddc] sm:$0xf0] }
 0x249   : > { %6359 = vmatpush.bf16.msra.mxu0 %v7992_v34  ;;  %v11122_v34 = vld [vmem:[%s11905_s6 + $0xd2c] sm:$0xf]  ;;  %v6153_v40 = vpop.f32.mrf.mxu0  ;;  %v11112_v10 = vld [vmem:[%s11905_s6 + $0xcdc] sm:$0xf] }
 0x24a   : > { %6372 = vmatpush.bf16.msra.mxu1 %v8152_v39  ;;  %v9189_v39 = vld [vmem:[%s11905_s6 + $0xe7c] sm:$0xf0]  ;;  %v6166_v51 = vpop.f32.mrf.mxu1 }
 0x24b   : > { %6385 = vmatpush.bf16.msra.mxu2 %v8312_v47  ;;  %v6154_v47 = vadd.f32 %v6153_v40, %v13165_v55  ;;  %v9192_v58 = vor.u32 %v11162_v43, %v9189_v39  ;;  %v9009_v55 = vld [vmem:[%s11905_s6 + $0xd14] sm:$0xf0]  ;;  %v8809_v43 = vld [vmem:[%s11905_s6 + $0xb84] sm:$0xf0]  ;;  %v11107_v39 = vld [vmem:[%s11905_s6 + $0xcb4] sm:$0xf] }
 0x24c   : > { %6398 = vmatpush.bf16.msra.mxu3 %v8472_v52  ;;  %6360 = vmatmul.bf16.vlgmr.msra.gmra.mxu0 %v12091_v41  ;;  %v8872_v52 = vor.u32 %v11082_v27, %v8869_v26  ;;  %v11027_v26 = vld [vmem:[%s11905_s6 + $0xa34] sm:$0xf] }
 0x24d   : > { %6404 = vmatpush.bf16.msrb.mxu0 %v8772_v53  ;;  %6373 = vmatmul.bf16.vlgmr.msra.gmra.mxu1 %v12095_v44  ;;  %v9032_v53 = vor.u32 %v11122_v34, %v9029_v36  ;;  %v6167_v59 = vadd.f32 %v6166_v51, %v6154_v47  ;;  %v8649_v34 = vld [vmem:[%s11905_s6 + $0xa44] sm:$0xf0]  ;;  %v11067_v36 = vld [vmem:[%s11905_s6 + $0xb74] sm:$0xf] }
 0x24e   : > { %6417 = vmatpush.bf16.msrb.mxu1 %v8932_v54  ;;  %6386 = vmatmul.bf16.vlgmr.msra.gmra.mxu2 %v12087_v38  ;;  %v11037_v54 = vld [vmem:[%s11905_s6 + $0xa84] sm:$0xf]  ;;  %v8969_v47 = vld [vmem:[%s11905_s6 + $0xcc4] sm:$0xf0] }
 0x24f   : > { %6430 = vmatpush.bf16.msrb.mxu2 %v9092_v56  ;;  %6399 = vmatmul.bf16.vlgmr.msra.gmra.mxu3 %v12093_v42  ;;  %v8689_v56 = vld [vmem:[%s11905_s6 + $0xa94] sm:$0xf0]  ;;  %v9129_v51 = vld [vmem:[%s11905_s6 + $0xe04] sm:$0xf0] }
 0x250   : > { %6443 = vmatpush.bf16.msrb.mxu3 %v9252_v60  ;;  %v8849_v60 = vld [vmem:[%s11905_s6 + $0xbd4] sm:$0xf0]  ;;  %v8692_v2 = vor.u32 %v11037_v54, %v8689_v56  ;;  %v8629_v54 = vld [vmem:[%s11905_s6 + $0xa1c] sm:$0xf0]  ;;  %v8812_v56 = vor.u32 %v11067_v36, %v8809_v43  ;;  %v11292_v36 = vld [vmem:[%s11905_s6 + $0x127c] sm:$0xf] }
 0x251   : > { %6405 = vmatpush.bf16.msrb.mxu0 %v8752_v4  ;;  %v8852_v3 = vor.u32 %v11077_v57, %v8849_v60  ;;  %v9012_v4 = vor.u32 %v11117_v61, %v9009_v55  ;;  %v6179_v7 = vpop.f32.mrf.mxu2  ;;  %v8972_v57 = vor.u32 %v11107_v39, %v8969_v47  ;;  %v11102_v60 = vld [vmem:[%s11905_s6 + $0xc8c] sm:$0xf]  ;;  %v8949_v55 = vld [vmem:[%s11905_s6 + $0xc9c] sm:$0xf0]  ;;  %v11332_v43 = vld [vmem:[%s11905_s6 + $0x13bc] sm:$0xf] }
 0x252   : > { %6418 = vmatpush.bf16.msrb.mxu1 %v8912_v0  ;;  %v11032_v0 = vld [vmem:[%s11905_s6 + $0xa5c] sm:$0xf]  ;;  %v6180_v12 = vadd.f32 %v6179_v7, %v6167_v59  ;;  %v6192_v13 = vpop.f32.mrf.mxu3  ;;  %v6168_v21 = vpop.f32.mrf.mxu1  ;;  %v8789_v59 = vld [vmem:[%s11905_s6 + $0xb5c] sm:$0xf0]  ;;  %v11297_v7 = vld [vmem:[%s11905_s6 + $0x12a4] sm:$0xf] }
 0x253   : > { %6431 = vmatpush.bf16.msrb.mxu2 %v9072_v50  ;;  %v8669_v50 = vld [vmem:[%s11905_s6 + $0xa6c] sm:$0xf0]  ;;  %v11212_v21 = vld [vmem:[%s11905_s6 + $0xffc] sm:$0xf] }
 0x254   : > { %6444 = vmatpush.bf16.msrb.mxu3 %v9232_v9  ;;  %v8829_v9 = vld [vmem:[%s11905_s6 + $0xbac] sm:$0xf0]  ;;  %v13236_v8 = vadd.f32 %v6192_v13, %v6180_v12  ;;  %v11337_v12 = vld [vmem:[%s11905_s6 + $0x13e4] sm:$0xf]  ;;  %v9889_v13 = vld [vmem:[%s11905_s6 + $0x13f4] sm:$0xf0] }
 0x255   : > { %6406 = vmatpush.bf16.msrb.mxu0 %v8732_v15  ;;  %v9149_v15 = vld [vmem:[%s11905_s6 + $0xe2c] sm:$0xf0]  ;;  %v8832_v27 = vor.u32 %v11072_v6, %v8829_v9  ;;  %v9729_v9 = vld [vmem:[%s11905_s6 + $0x12b4] sm:$0xf0] }
 0x256   : > { %6419 = vmatpush.bf16.msrb.mxu1 %v8892_v16  ;;  %v6155_v16 = vpop.f32.mrf.mxu0  ;;  %v9152_v40 = vor.u32 %v11152_v14, %v9149_v15  ;;  %v9112_v14 = vor.u32 %v11142_v63, %v9109_v1  ;;  %v9869_v39 = vld [vmem:[%s11905_s6 + $0x13cc] sm:$0xf0] }
 0x257   : > { %6432 = vmatpush.bf16.msrb.mxu2 %v9052_v17  ;;  %v8672_v17 = vor.u32 %v11032_v0, %v8669_v50  ;;  %v11257_v0 = vld [vmem:[%s11905_s6 + $0x1164] sm:$0xf] }
 0x258   : > { %6445 = vmatpush.bf16.msrb.mxu3 %v9212_v32  ;;  %v8992_v32 = vor.u32 %v11112_v10, %v8989_v11  ;;  %v8952_v11 = vor.u32 %v11102_v60, %v8949_v55  ;;  %v11327_v60 = vld [vmem:[%s11905_s6 + $0x1394] sm:$0xf] }
 0x259   : > { %6407 = vmatpush.bf16.msrb.mxu0 %v8712_v48  ;;  %v11147_v48 = vld [vmem:[%s11905_s6 + $0xdf4] sm:$0xf] }
 0x25a   : > { %6420 = vmatpush.bf16.msrb.mxu1 %v8872_v52  ;;  %v8652_v52 = vor.u32 %v11027_v26, %v8649_v34  ;;  %v9132_v61 = vor.u32 %v11147_v48, %v9129_v51  ;;  %v6194_v50 = vpop.f32.mrf.mxu3  ;;  %v9892_v26 = vor.u32 %v11337_v12, %v9889_v13  ;;  %v9549_v34 = vld [vmem:[%s11905_s6 + $0x114c] sm:$0xf0] }
 0x25b   : > { %6433 = vmatpush.bf16.msrb.mxu2 %v9032_v53  ;;  %v11022_v53 = vld [vmem:[%s11905_s6 + $0xa0c] sm:$0xf]  ;;  %v9509_v50 = vld [vmem:[%s11905_s6 + $0x10fc] sm:$0xf0] }
 0x25c   : > { %6446 = vmatpush.bf16.msrb.mxu3 %v9192_v58  ;;  %v11062_v58 = vld [vmem:[%s11905_s6 + $0xb4c] sm:$0xf]  ;;  %v8632_v6 = vor.u32 %v11022_v53, %v8629_v54  ;;  %v9369_v53 = vld [vmem:[%s11905_s6 + $0xfe4] sm:$0xf0]  ;;  %v11247_v54 = vld [vmem:[%s11905_s6 + $0x1114] sm:$0xf] }
 0x25d   : > { %6408 = vmatpush.bf16.msrb.mxu0 %v8692_v2  ;;  %v6181_v2 = vpop.f32.mrf.mxu2  ;;  %v8792_v10 = vor.u32 %v11062_v58, %v8789_v59  ;;  %v11287_v58 = vld [vmem:[%s11905_s6 + $0x1254] sm:$0xf]  ;;  %v9689_v59 = vld [vmem:[%s11905_s6 + $0x1264] sm:$0xf0] }
 0x25e   : > { %6421 = vmatpush.bf16.msrb.mxu1 %v8852_v3  ;;  %v11217_v3 = vld [vmem:[%s11905_s6 + $0x1024] sm:$0xf]  ;;  %v9692_v1 = vor.u32 %v11287_v58, %v9689_v59  ;;  %v11202_v2 = vld [vmem:[%s11905_s6 + $0xfac] sm:$0xf]  ;;  %v9629_v58 = vld [vmem:[%s11905_s6 + $0x11ec] sm:$0xf0] }
 0x25f   : > { %6434 = vmatpush.bf16.msrb.mxu2 %v9012_v4  ;;  %v9409_v4 = vld [vmem:[%s11905_s6 + $0x1034] sm:$0xf0] }
 0x260   : > { %6447 = vmatpush.bf16.msrb.mxu3 %v9172_v5  ;;  %v9569_v5 = vld [vmem:[%s11905_s6 + $0x1174] sm:$0xf0]  ;;  %v9412_v15 = vor.u32 %v11217_v3, %v9409_v4  ;;  %v9349_v3 = vld [vmem:[%s11905_s6 + $0xfbc] sm:$0xf0]  ;;  %v11242_v4 = vld [vmem:[%s11905_s6 + $0x10ec] sm:$0xf] }
 0x261   : > { %6409 = vmatpush.bf16.msrb.mxu0 %v8672_v17  ;;  %v9572_v16 = vor.u32 %v11257_v0, %v9569_v5  ;;  %v9732_v17 = vor.u32 %v11297_v7, %v9729_v9  ;;  %v9669_v5 = vld [vmem:[%s11905_s6 + $0x123c] sm:$0xf0]  ;;  %v11322_v9 = vld [vmem:[%s11905_s6 + $0x136c] sm:$0xf]  ;;  %v9352_v12 = vor.u32 %v11202_v2, %v9349_v3 }
 0x262   : > { %6422 = vmatpush.bf16.msrb.mxu1 %v8832_v27  ;;  %v9389_v27 = vld [vmem:[%s11905_s6 + $0x100c] sm:$0xf0] }
 0x263   : > { %6435 = vmatpush.bf16.msrb.mxu2 %v8992_v32  ;;  %v11252_v32 = vld [vmem:[%s11905_s6 + $0x113c] sm:$0xf]  ;;  %v9392_v47 = vor.u32 %v11212_v21, %v9389_v27  ;;  %v11237_v21 = vld [vmem:[%s11905_s6 + $0x10c4] sm:$0xf] }
 0x264   : > { %6448 = vmatpush.bf16.msrb.mxu3 %v9152_v40  ;;  %v9709_v40 = vld [vmem:[%s11905_s6 + $0x128c] sm:$0xf0]  ;;  %v9552_v48 = vor.u32 %v11252_v32, %v9549_v34  ;;  %v11277_v34 = vld [vmem:[%s11905_s6 + $0x1204] sm:$0xf] }
 0x265   : > { %6410 = vmatpush.bf16.msrb.mxu0 %v8652_v52  ;;  %v9712_v51 = vor.u32 %v11292_v36, %v9709_v40  ;;  %v11207_v52 = vld [vmem:[%s11905_s6 + $0xfd4] sm:$0xf]  ;;  %v11317_v36 = vld [vmem:[%s11905_s6 + $0x1344] sm:$0xf]  ;;  %v9809_v40 = vld [vmem:[%s11905_s6 + $0x1354] sm:$0xf0] }
 0x266   : > { %6423 = vmatpush.bf16.msrb.mxu1 %v8812_v56  ;;  %v9872_v56 = vor.u32 %v11332_v43, %v9869_v39  ;;  %v9372_v55 = vor.u32 %v11207_v52, %v9369_v53  ;;  %v11232_v52 = vld [vmem:[%s11905_s6 + $0x109c] sm:$0xf]  ;;  %v9812_v53 = vor.u32 %v11317_v36, %v9809_v40  ;;  %v11302_v36 = vld [vmem:[%s11905_s6 + $0x12cc] sm:$0xf]  ;;  %v9749_v40 = vld [vmem:[%s11905_s6 + $0x12dc] sm:$0xf0] }
 0x267   : > { %6436 = vmatpush.bf16.msrb.mxu2 %v8972_v57  ;;  %v9529_v57 = vld [vmem:[%s11905_s6 + $0x1124] sm:$0xf0] }
 0x268   : > { %6449 = vmatpush.bf16.msrb.mxu3 %v9132_v61  ;;  %v9849_v61 = vld [vmem:[%s11905_s6 + $0x13a4] sm:$0xf0]  ;;  %v9532_v63 = vor.u32 %v11247_v54, %v9529_v57  ;;  %v11272_v57 = vld [vmem:[%s11905_s6 + $0x11dc] sm:$0xf] }
 0x269   : > { %6411 = vmatpush.bf16.msrb.mxu0 %v8632_v6  ;;  %v9852_v0 = vor.u32 %v11327_v60, %v9849_v61  ;;  %v11282_v6 = vld [vmem:[%s11905_s6 + $0x122c] sm:$0xf]  ;;  %v6205_v7 = vpop.f32.mrf.mxu0  ;;  %v11312_v61 = vld [vmem:[%s11905_s6 + $0x131c] sm:$0xf] }
 0x26a   : > { %6424 = vmatpush.bf16.msrb.mxu1 %v8792_v10  ;;  %v9829_v10 = vld [vmem:[%s11905_s6 + $0x137c] sm:$0xf0]  ;;  %v6218_v13 = vpop.f32.mrf.mxu1 }
 0x26b   : > { %6437 = vmatpush.bf16.msrb.mxu2 %v8952_v11  ;;  %v6206_v11 = vadd.f32 %v6205_v7, %v13236_v8  ;;  %v9832_v27 = vor.u32 %v11322_v9, %v9829_v10  ;;  %v9649_v8 = vld [vmem:[%s11905_s6 + $0x1214] sm:$0xf0]  ;;  %v9449_v9 = vld [vmem:[%s11905_s6 + $0x1084] sm:$0xf0]  ;;  %v11267_v10 = vld [vmem:[%s11905_s6 + $0x11b4] sm:$0xf] }
 0x26c   : > { %6450 = vmatpush.bf16.msrb.mxu3 %v9112_v14  ;;  %6412 = vmatmul.bf16.vlgmr.msrb.gmra.mxu0 %v12166_v25  ;;  %v9512_v14 = vor.u32 %v11242_v4, %v9509_v50  ;;  %v11187_v50 = vld [vmem:[%s11905_s6 + $0xf34] sm:$0xf] }
 0x26d   : > { %6456 = vmatpush.bf16.msra.mxu0 %v9412_v15  ;;  %6425 = vmatmul.bf16.vlgmr.msrb.gmra.mxu1 %v12173_v30  ;;  %v9672_v15 = vor.u32 %v11282_v6, %v9669_v5  ;;  %v6219_v32 = vadd.f32 %v6218_v13, %v6206_v11  ;;  %v9289_v6 = vld [vmem:[%s11905_s6 + $0xf44] sm:$0xf0]  ;;  %v11227_v5 = vld [vmem:[%s11905_s6 + $0x1074] sm:$0xf] }
 0x26e   : > { %6469 = vmatpush.bf16.msra.mxu1 %v9572_v16  ;;  %6438 = vmatmul.bf16.vlgmr.msrb.gmra.mxu2 %v12171_v29  ;;  %v11197_v16 = vld [vmem:[%s11905_s6 + $0xf84] sm:$0xf]  ;;  %v9609_v11 = vld [vmem:[%s11905_s6 + $0x11c4] sm:$0xf0] }
 0x26f   : > { %6482 = vmatpush.bf16.msra.mxu2 %v9732_v17  ;;  %6451 = vmatmul.bf16.vlgmr.msrb.gmra.mxu3 %v12177_v33  ;;  %v9329_v17 = vld [vmem:[%s11905_s6 + $0xf94] sm:$0xf0]  ;;  %v9769_v13 = vld [vmem:[%s11905_s6 + $0x1304] sm:$0xf0] }
 0x270   : > { %6495 = vmatpush.bf16.msra.mxu3 %v9892_v26  ;;  %v9489_v26 = vld [vmem:[%s11905_s6 + $0x10d4] sm:$0xf0]  ;;  %v9332_v43 = vor.u32 %v11197_v16, %v9329_v17  ;;  %v9269_v16 = vld [vmem:[%s11905_s6 + $0xf1c] sm:$0xf0]  ;;  %v9452_v17 = vor.u32 %v11227_v5, %v9449_v9  ;;  %v11452_v5 = vld [vmem:[%s11905_s6 + $0x177c] sm:$0xf] }
 0x271   : > { %6457 = vmatpush.bf16.msra.mxu0 %v9392_v47  ;;  %v9492_v39 = vor.u32 %v11237_v21, %v9489_v26  ;;  %v9652_v47 = vor.u32 %v11277_v34, %v9649_v8  ;;  %v6231_v54 = vpop.f32.mrf.mxu2  ;;  %v9612_v21 = vor.u32 %v11267_v10, %v9609_v11  ;;  %v11262_v26 = vld [vmem:[%s11905_s6 + $0x118c] sm:$0xf]  ;;  %v9589_v8 = vld [vmem:[%s11905_s6 + $0x119c] sm:$0xf0]  ;;  %v11492_v9 = vld [vmem:[%s11905_s6 + $0x18bc] sm:$0xf] }
 0x272   : > { %6470 = vmatpush.bf16.msra.mxu1 %v9552_v48  ;;  %v11192_v48 = vld [vmem:[%s11905_s6 + $0xf5c] sm:$0xf]  ;;  %v6232_v59 = vadd.f32 %v6231_v54, %v6219_v32  ;;  %v6244_v60 = vpop.f32.mrf.mxu3  ;;  %v6220_v2 = vpop.f32.mrf.mxu1  ;;  %v9429_v32 = vld [vmem:[%s11905_s6 + $0x105c] sm:$0xf0]  ;;  %v11457_v54 = vld [vmem:[%s11905_s6 + $0x17a4] sm:$0xf] }
 0x273   : > { %6483 = vmatpush.bf16.msra.mxu2 %v9712_v51  ;;  %v9309_v51 = vld [vmem:[%s11905_s6 + $0xf6c] sm:$0xf0]  ;;  %v11372_v2 = vld [vmem:[%s11905_s6 + $0x14fc] sm:$0xf] }
 0x274   : > { %6496 = vmatpush.bf16.msra.mxu3 %v9872_v56  ;;  %v9469_v56 = vld [vmem:[%s11905_s6 + $0x10ac] sm:$0xf0]  ;;  %v13307_v3 = vadd.f32 %v6244_v60, %v6232_v59  ;;  %v11497_v59 = vld [vmem:[%s11905_s6 + $0x18e4] sm:$0xf]  ;;  %v10529_v60 = vld [vmem:[%s11905_s6 + $0x18f4] sm:$0xf0] }
 0x275   : > { %6458 = vmatpush.bf16.msra.mxu0 %v9372_v55  ;;  %v9789_v55 = vld [vmem:[%s11905_s6 + $0x132c] sm:$0xf0]  ;;  %v9472_v4 = vor.u32 %v11232_v52, %v9469_v56  ;;  %v10369_v56 = vld [vmem:[%s11905_s6 + $0x17b4] sm:$0xf0] }
 0x276   : > { %6471 = vmatpush.bf16.msra.mxu1 %v9532_v63  ;;  %v6207_v63 = vpop.f32.mrf.mxu0  ;;  %v9792_v7 = vor.u32 %v11312_v61, %v9789_v55  ;;  %v9752_v61 = vor.u32 %v11302_v36, %v9749_v40  ;;  %v10509_v10 = vld [vmem:[%s11905_s6 + $0x18cc] sm:$0xf0] }
 0x277   : > { %6484 = vmatpush.bf16.msra.mxu2 %v9692_v1  ;;  %v9312_v1 = vor.u32 %v11192_v48, %v9309_v51  ;;  %v11417_v48 = vld [vmem:[%s11905_s6 + $0x1664] sm:$0xf] }
 0x278   : > { %6497 = vmatpush.bf16.msra.mxu3 %v9852_v0  ;;  %v9632_v0 = vor.u32 %v11272_v57, %v9629_v58  ;;  %v9592_v58 = vor.u32 %v11262_v26, %v9589_v8  ;;  %v11487_v26 = vld [vmem:[%s11905_s6 + $0x1894] sm:$0xf] }
 0x279   : > { %6459 = vmatpush.bf16.msra.mxu0 %v9352_v12  ;;  %v11307_v12 = vld [vmem:[%s11905_s6 + $0x12f4] sm:$0xf] }
 0x27a   : > { %6472 = vmatpush.bf16.msra.mxu1 %v9512_v14  ;;  %v9292_v14 = vor.u32 %v11187_v50, %v9289_v6  ;;  %v9772_v34 = vor.u32 %v11307_v12, %v9769_v13  ;;  %v6246_v51 = vpop.f32.mrf.mxu3  ;;  %v10532_v50 = vor.u32 %v11497_v59, %v10529_v60  ;;  %v10189_v6 = vld [vmem:[%s11905_s6 + $0x164c] sm:$0xf0] }
 0x27b   : > { %6485 = vmatpush.bf16.msra.mxu2 %v9672_v15  ;;  %v11182_v15 = vld [vmem:[%s11905_s6 + $0xf0c] sm:$0xf]  ;;  %v10149_v51 = vld [vmem:[%s11905_s6 + $0x15fc] sm:$0xf0] }
 0x27c   : > { %6498 = vmatpush.bf16.msra.mxu3 %v9832_v27  ;;  %v11222_v27 = vld [vmem:[%s11905_s6 + $0x104c] sm:$0xf]  ;;  %v9272_v52 = vor.u32 %v11182_v15, %v9269_v16  ;;  %v10009_v15 = vld [vmem:[%s11905_s6 + $0x14e4] sm:$0xf0]  ;;  %v11407_v16 = vld [vmem:[%s11905_s6 + $0x1614] sm:$0xf] }
 0x27d   : > { %6460 = vmatpush.bf16.msra.mxu0 %v9332_v43  ;;  %v6233_v43 = vpop.f32.mrf.mxu2  ;;  %v9432_v57 = vor.u32 %v11222_v27, %v9429_v32  ;;  %v11447_v27 = vld [vmem:[%s11905_s6 + $0x1754] sm:$0xf]  ;;  %v10329_v32 = vld [vmem:[%s11905_s6 + $0x1764] sm:$0xf0] }
 0x27e   : > { %6473 = vmatpush.bf16.msra.mxu1 %v9492_v39  ;;  %v11377_v39 = vld [vmem:[%s11905_s6 + $0x1524] sm:$0xf]  ;;  %v10332_v40 = vor.u32 %v11447_v27, %v10329_v32  ;;  %v11362_v43 = vld [vmem:[%s11905_s6 + $0x14ac] sm:$0xf]  ;;  %v10269_v27 = vld [vmem:[%s11905_s6 + $0x16ec] sm:$0xf0] }
 0x27f   : > { %6486 = vmatpush.bf16.msra.mxu2 %v9652_v47  ;;  %v10049_v47 = vld [vmem:[%s11905_s6 + $0x1534] sm:$0xf0] }
 0x280   : > { %6499 = vmatpush.bf16.msra.mxu3 %v9812_v53  ;;  %v10209_v53 = vld [vmem:[%s11905_s6 + $0x1674] sm:$0xf0]  ;;  %v10052_v55 = vor.u32 %v11377_v39, %v10049_v47  ;;  %v9989_v39 = vld [vmem:[%s11905_s6 + $0x14bc] sm:$0xf0]  ;;  %v11402_v47 = vld [vmem:[%s11905_s6 + $0x15ec] sm:$0xf] }
 0x281   : > { %6461 = vmatpush.bf16.msra.mxu0 %v9312_v1  ;;  %v10212_v63 = vor.u32 %v11417_v48, %v10209_v53  ;;  %v10372_v1 = vor.u32 %v11457_v54, %v10369_v56  ;;  %v10309_v53 = vld [vmem:[%s11905_s6 + $0x173c] sm:$0xf0]  ;;  %v11482_v56 = vld [vmem:[%s11905_s6 + $0x186c] sm:$0xf]  ;;  %v9992_v59 = vor.u32 %v11362_v43, %v9989_v39 }
 0x282   : > { %6474 = vmatpush.bf16.msra.mxu1 %v9472_v4  ;;  %v10029_v4 = vld [vmem:[%s11905_s6 + $0x150c] sm:$0xf0] }
 0x283   : > { %6487 = vmatpush.bf16.msra.mxu2 %v9632_v0  ;;  %v11412_v0 = vld [vmem:[%s11905_s6 + $0x163c] sm:$0xf]  ;;  %v10032_v11 = vor.u32 %v11372_v2, %v10029_v4  ;;  %v11397_v2 = vld [vmem:[%s11905_s6 + $0x15c4] sm:$0xf] }
 0x284   : > { %6500 = vmatpush.bf16.msra.mxu3 %v9792_v7  ;;  %v10349_v7 = vld [vmem:[%s11905_s6 + $0x178c] sm:$0xf0]  ;;  %v10192_v12 = vor.u32 %v11412_v0, %v10189_v6  ;;  %v11437_v6 = vld [vmem:[%s11905_s6 + $0x1704] sm:$0xf] }
 0x285   : > { %6462 = vmatpush.bf16.msra.mxu0 %v9292_v14  ;;  %v10352_v13 = vor.u32 %v11452_v5, %v10349_v7  ;;  %v11367_v14 = vld [vmem:[%s11905_s6 + $0x14d4] sm:$0xf]  ;;  %v11477_v5 = vld [vmem:[%s11905_s6 + $0x1844] sm:$0xf]  ;;  %v10449_v7 = vld [vmem:[%s11905_s6 + $0x1854] sm:$0xf0] }
 0x286   : > { %6475 = vmatpush.bf16.msra.mxu1 %v9452_v17  ;;  %v10512_v17 = vor.u32 %v11492_v9, %v10509_v10  ;;  %v10012_v8 = vor.u32 %v11367_v14, %v10009_v15  ;;  %v11392_v14 = vld [vmem:[%s11905_s6 + $0x159c] sm:$0xf]  ;;  %v10452_v15 = vor.u32 %v11477_v5, %v10449_v7  ;;  %v11462_v5 = vld [vmem:[%s11905_s6 + $0x17cc] sm:$0xf]  ;;  %v10389_v7 = vld [vmem:[%s11905_s6 + $0x17dc] sm:$0xf0] }
 0x287   : > { %6488 = vmatpush.bf16.msra.mxu2 %v9612_v21  ;;  %v10169_v21 = vld [vmem:[%s11905_s6 + $0x1624] sm:$0xf0] }
 0x288   : > { %6501 = vmatpush.bf16.msra.mxu3 %v9772_v34  ;;  %v10489_v34 = vld [vmem:[%s11905_s6 + $0x18a4] sm:$0xf0]  ;;  %v10172_v36 = vor.u32 %v11407_v16, %v10169_v21  ;;  %v11432_v21 = vld [vmem:[%s11905_s6 + $0x16dc] sm:$0xf] }
 0x289   : > { %6463 = vmatpush.bf16.msra.mxu0 %v9272_v52  ;;  %v10492_v48 = vor.u32 %v11487_v26, %v10489_v34  ;;  %v11442_v52 = vld [vmem:[%s11905_s6 + $0x172c] sm:$0xf]  ;;  %v6257_v54 = vpop.f32.mrf.mxu0  ;;  %v11472_v34 = vld [vmem:[%s11905_s6 + $0x181c] sm:$0xf] }
 0x28a   : > { %6476 = vmatpush.bf16.msra.mxu1 %v9432_v57  ;;  %v10469_v57 = vld [vmem:[%s11905_s6 + $0x187c] sm:$0xf0]  ;;  %v6270_v60 = vpop.f32.mrf.mxu1 }
 0x28b   : > { %6489 = vmatpush.bf16.msra.mxu2 %v9592_v58  ;;  %v6258_v58 = vadd.f32 %v6257_v54, %v13307_v3  ;;  %v10472_v4 = vor.u32 %v11482_v56, %v10469_v57  ;;  %v10289_v3 = vld [vmem:[%s11905_s6 + $0x1714] sm:$0xf0]  ;;  %v10089_v56 = vld [vmem:[%s11905_s6 + $0x1584] sm:$0xf0]  ;;  %v11427_v57 = vld [vmem:[%s11905_s6 + $0x16b4] sm:$0xf] }
 0x28c   : > { %6502 = vmatpush.bf16.msra.mxu3 %v9752_v61  ;;  %6464 = vmatmul.bf16.vlgmr.msra.gmra.mxu0 %v12248_v23  ;;  %v10152_v61 = vor.u32 %v11402_v47, %v10149_v51  ;;  %v11347_v51 = vld [vmem:[%s11905_s6 + $0x1434] sm:$0xf] }
 0x28d   : > { %6508 = vmatpush.bf16.msrb.mxu0 %v10052_v55  ;;  %6477 = vmatmul.bf16.vlgmr.msra.gmra.mxu1 %v12255_v31  ;;  %v10312_v55 = vor.u32 %v11442_v52, %v10309_v53  ;;  %v6271_v0 = vadd.f32 %v6270_v60, %v6258_v58  ;;  %v9929_v52 = vld [vmem:[%s11905_s6 + $0x1444] sm:$0xf0]  ;;  %v11387_v53 = vld [vmem:[%s11905_s6 + $0x1574] sm:$0xf] }
 0x28e   : > { %6521 = vmatpush.bf16.msrb.mxu1 %v10212_v63  ;;  %6490 = vmatmul.bf16.vlgmr.msra.gmra.mxu2 %v12253_v28  ;;  %v11357_v63 = vld [vmem:[%s11905_s6 + $0x1484] sm:$0xf]  ;;  %v10249_v58 = vld [vmem:[%s11905_s6 + $0x16c4] sm:$0xf0] }
 0x28f   : > { %6534 = vmatpush.bf16.msrb.mxu2 %v10372_v1  ;;  %6503 = vmatmul.bf16.vlgmr.msra.gmra.mxu3 %v12259_v35  ;;  %v9969_v1 = vld [vmem:[%s11905_s6 + $0x1494] sm:$0xf0]  ;;  %v10409_v60 = vld [vmem:[%s11905_s6 + $0x1804] sm:$0xf0] }
 0x290   : > { %6547 = vmatpush.bf16.msrb.mxu3 %v10532_v50  ;;  %v10129_v50 = vld [vmem:[%s11905_s6 + $0x15d4] sm:$0xf0]  ;;  %v9972_v9 = vor.u32 %v11357_v63, %v9969_v1  ;;  %v9909_v63 = vld [vmem:[%s11905_s6 + $0x141c] sm:$0xf0]  ;;  %v10092_v1 = vor.u32 %v11387_v53, %v10089_v56 }
 0x291   : > { %6509 = vmatpush.bf16.msrb.mxu0 %v10032_v11  ;;  %v10132_v10 = vor.u32 %v11397_v2, %v10129_v50  ;;  %v10292_v11 = vor.u32 %v11437_v6, %v10289_v3  ;;  %v6283_v16 = vpop.f32.mrf.mxu2  ;;  %v10252_v2 = vor.u32 %v11427_v57, %v10249_v58  ;;  %v11422_v50 = vld [vmem:[%s11905_s6 + $0x168c] sm:$0xf]  ;;  %v10229_v3 = vld [vmem:[%s11905_s6 + $0x169c] sm:$0xf0]  ;;  %v10855_v57 = vld [vmem:[%s11905_s6 + $0x4d0] sm:$0xf0] }
 0x292   : > { %6522 = vmatpush.bf16.msrb.mxu1 %v10192_v12  ;;  %v11352_v12 = vld [vmem:[%s11905_s6 + $0x145c] sm:$0xf]  ;;  %v6284_v32 = vadd.f32 %v6283_v16, %v6271_v0  ;;  %v6296_v26 = vpop.f32.mrf.mxu3  ;;  %v6272_v43 = vpop.f32.mrf.mxu1  ;;  %v10069_v0 = vld [vmem:[%s11905_s6 + $0x155c] sm:$0xf0]  ;;  %v7815_v16 = vld [vmem:[%s11905_s6 + $0x3a8] sm:$0xf] }
 0x293   : > { %6535 = vmatpush.bf16.msrb.mxu2 %v10352_v13  ;;  %v9949_v13 = vld [vmem:[%s11905_s6 + $0x146c] sm:$0xf0]  ;;  %v7475_v43 = vld [vmem:[%s11905_s6 + $0x100] sm:$0xf] }
 0x294   : > { %6548 = vmatpush.bf16.msrb.mxu3 %v10512_v17  ;;  %v10109_v17 = vld [vmem:[%s11905_s6 + $0x15ac] sm:$0xf0]  ;;  %v13378_v39 = vadd.f32 %v6296_v26, %v6284_v32  ;;  %v7975_v32 = vld [vmem:[%s11905_s6 + $0x4e8] sm:$0xf]  ;;  %v10860_v26 = vld [vmem:[%s11905_s6 + $0x4f8] sm:$0xf0] }
 0x295   : > { %6510 = vmatpush.bf16.msrb.mxu0 %v10012_v8  ;;  %v10429_v8 = vld [vmem:[%s11905_s6 + $0x182c] sm:$0xf0]  ;;  %v10112_v47 = vor.u32 %v11392_v14, %v10109_v17  ;;  %v10820_v17 = vld [vmem:[%s11905_s6 + $0x3b8] sm:$0xf0]  ;;  %v7795_v53 = vld [vmem:[%s11905_s6 + $0x380] sm:$0xf] }
 0x296   : > { %6523 = vmatpush.bf16.msrb.mxu1 %v10172_v36  ;;  %v6259_v36 = vpop.f32.mrf.mxu0  ;;  %v10432_v54 = vor.u32 %v11472_v34, %v10429_v8  ;;  %v10392_v34 = vor.u32 %v11462_v5, %v10389_v7  ;;  %v7955_v56 = vld [vmem:[%s11905_s6 + $0x4c0] sm:$0xf]  ;;  %v7435_v5 = vld [vmem:[%s11905_s6 + $0xb0] sm:$0xf] }
 0x297   : > { %6536 = vmatpush.bf16.msrb.mxu2 %v10332_v40  ;;  %v9952_v40 = vor.u32 %v11352_v12, %v9949_v13  ;;  %v7655_v12 = vld [vmem:[%s11905_s6 + $0x268] sm:$0xf] }
 0x298   : > { %6549 = vmatpush.bf16.msrb.mxu3 %v10492_v48  ;;  %v10272_v48 = vor.u32 %v11432_v21, %v10269_v27  ;;  %v10232_v27 = vor.u32 %v11422_v50, %v10229_v3  ;;  %v7935_v50 = vld [vmem:[%s11905_s6 + $0x498] sm:$0xf] }
 0x299   : > { %6511 = vmatpush.bf16.msrb.mxu0 %v9992_v59  ;;  %v11467_v59 = vld [vmem:[%s11905_s6 + $0x17f4] sm:$0xf] }
 0x29a   : > { %6524 = vmatpush.bf16.msrb.mxu1 %v10152_v61  ;;  %v9932_v61 = vor.u32 %v11347_v51, %v9929_v52  ;;  %v10412_v6 = vor.u32 %v11467_v59, %v10409_v60  ;;  %v6298_v13 = vpop.f32.mrf.mxu3  ;;  %v7976_v51 = vor.u32 %v10860_v26, %v7975_v32  ;;  %v10775_v52 = vld [vmem:[%s11905_s6 + $0x250] sm:$0xf0] }
 0x29b   : > { %6537 = vmatpush.bf16.msrb.mxu2 %v10312_v55  ;;  %v11342_v55 = vld [vmem:[%s11905_s6 + $0x140c] sm:$0xf] }
 0x29c   : > { %6550 = vmatpush.bf16.msrb.mxu3 %v10472_v4  ;;  %v11382_v4 = vld [vmem:[%s11905_s6 + $0x154c] sm:$0xf]  ;;  %v9912_v14 = vor.u32 %v11342_v55, %v9909_v63  ;;  %v7615_v63 = vld [vmem:[%s11905_s6 + $0x218] sm:$0xf] }
 0x29d   : > { %6512 = vmatpush.bf16.msrb.mxu0 %v9972_v9  ;;  %v6285_v9 = vpop.f32.mrf.mxu2  ;;  %v10072_v21 = vor.u32 %v11382_v4, %v10069_v0  ;;  %v10730_v55 = vld [vmem:[%s11905_s6 + $0xe8] sm:$0xf0]  ;;  %v7775_v4 = vld [vmem:[%s11905_s6 + $0x358] sm:$0xf] }
 0x29e   : > { %6525 = vmatpush.bf16.msrb.mxu1 %v10132_v10  ;;  %v7495_v10 = vld [vmem:[%s11905_s6 + $0x128] sm:$0xf]  ;;  %v10810_v0 = vld [vmem:[%s11905_s6 + $0x368] sm:$0xf0] }
 0x29f   : > { %6538 = vmatpush.bf16.msrb.mxu2 %v10292_v11  ;;  %v10740_v11 = vld [vmem:[%s11905_s6 + $0x138] sm:$0xf0]  ;;  %v7776_v9 = vor.u32 %v10810_v0, %v7775_v4  ;;  %v10755_v0 = vld [vmem:[%s11905_s6 + $0x1b0] sm:$0xf0] }
 0x2a0   : > { %6551 = vmatpush.bf16.msrb.mxu3 %v10452_v15  ;;  %v10780_v15 = vld [vmem:[%s11905_s6 + $0x278] sm:$0xf0]  ;;  %v7496_v8 = vor.u32 %v10740_v11, %v7495_v10  ;;  %v10725_v10 = vld [vmem:[%s11905_s6 + $0xc0] sm:$0xf0]  ;;  %v7595_v11 = vld [vmem:[%s11905_s6 + $0x1f0] sm:$0xf] }
 0x2a1   : > { %6513 = vmatpush.bf16.msrb.mxu0 %v9952_v40  ;;  %v7656_v36 = vor.u32 %v10780_v15, %v7655_v12  ;;  %v7816_v40 = vor.u32 %v10820_v17, %v7815_v16  ;;  %v11624_v12 = vld [vmem:[%s12371_s12] ss:$2 sm:$0x1f]  ;;  %v7755_v16 = vld [vmem:[%s11905_s6 + $0x330] sm:$0xf]  ;;  %v7436_v32 = vor.u32 %v10725_v10, %v7435_v5 }
 0x2a2   : > { %6526 = vmatpush.bf16.msrb.mxu1 %v10112_v47  ;;  %v10735_v47 = vld [vmem:[%s11905_s6 + $0x110] sm:$0xf0]  ;;  %v1283_v13 = vperm.slane %v11624_v12, 3  ;;  %v10765_v15 = vld [vmem:[%s11905_s6 + $0x200] sm:$0xf0] }
 0x2a3   : > { %6539 = vmatpush.bf16.msrb.mxu2 %v10272_v48  ;;  %v7635_v48 = vld [vmem:[%s11905_s6 + $0x240] sm:$0xf]  ;;  %v7476_v58 = vor.u32 %v10735_v47, %v7475_v43  ;;  %v10805_v17 = vld [vmem:[%s11905_s6 + $0x340] sm:$0xf0]  ;;  %v7575_v43 = vld [vmem:[%s11905_s6 + $0x1c8] sm:$0xf] }
 0x2a4   : > { %6552 = vmatpush.bf16.msrb.mxu3 %v10432_v54  ;;  %v10815_v54 = vld [vmem:[%s11905_s6 + $0x390] sm:$0xf0]  ;;  %v7636_v59 = vor.u32 %v10775_v52, %v7635_v48  ;;  %v10760_v52 = vld [vmem:[%s11905_s6 + $0x1d8] sm:$0xf0] }
 0x2a5   : > { %6514 = vmatpush.bf16.msrb.mxu0 %v9932_v61  ;;  %v7796_v60 = vor.u32 %v10815_v54, %v7795_v53  ;;  %v7455_v61 = vld [vmem:[%s11905_s6 + $0xd8] sm:$0xf]  ;;  %v7735_v53 = vld [vmem:[%s11905_s6 + $0x308] sm:$0xf]  ;;  %v10800_v54 = vld [vmem:[%s11905_s6 + $0x318] sm:$0xf0] }
 0x2a6   : > { %6527 = vmatpush.bf16.msrb.mxu1 %v10092_v1  ;;  %v7956_v1 = vor.u32 %v10855_v57, %v7955_v56  ;;  %v7456_v3 = vor.u32 %v10730_v55, %v7455_v61  ;;  %v7895_v56 = vld [vmem:[%s11905_s6 + $0x448] sm:$0xf]  ;;  %v10840_v57 = vld [vmem:[%s11905_s6 + $0x458] sm:$0xf0]  ;;  %v7736_v61 = vor.u32 %v10800_v54, %v7735_v53  ;;  %v7395_v55 = vld [vmem:[%s11905_s6 + $0x60] sm:$0xf] }
 0x2a7   : > { %6540 = vmatpush.bf16.msrb.mxu2 %v10252_v2  ;;  %v10770_v2 = vld [vmem:[%s11905_s6 + $0x228] sm:$0xf0]  ;;  %v7896_v4 = vor.u32 %v10840_v57, %v7895_v56  ;;  %v10745_v53 = vld [vmem:[%s11905_s6 + $0x160] sm:$0xf0]  ;;  %v7675_v54 = vld [vmem:[%s11905_s6 + $0x290] sm:$0xf] }
 0x2a8   : > { %6553 = vmatpush.bf16.msrb.mxu3 %v10412_v6  ;;  %v10850_v6 = vld [vmem:[%s11905_s6 + $0x4a8] sm:$0xf0]  ;;  %v7616_v7 = vor.u32 %v10770_v2, %v7615_v63  ;;  %v10715_v63 = vld [vmem:[%s11905_s6 + $0x70] sm:$0xf0] }
 0x2a9   : > { %6515 = vmatpush.bf16.msrb.mxu0 %v9912_v14  ;;  %v7936_v14 = vor.u32 %v10850_v6, %v7935_v50  ;;  %v6309_v26 = vpop.f32.mrf.mxu0  ;;  %v7715_v50 = vld [vmem:[%s11905_s6 + $0x2e0] sm:$0xf]  ;;  %v10795_v6 = vld [vmem:[%s11905_s6 + $0x2f0] sm:$0xf0]  ;;  %v7396_v10 = vor.u32 %v10715_v63, %v7395_v55  ;;  %v8135_v55 = vld [vmem:[%s11905_s6 + $0x628] sm:$0xf] }
 0x2aa   : > { %6528 = vmatpush.bf16.msrb.mxu1 %v10072_v21  ;;  %v7915_v21 = vld [vmem:[%s11905_s6 + $0x470] sm:$0xf]  ;;  %v6310_v47 = vadd.f32 %v6309_v26, %v1283_v13  ;;  %v6322_v48 = vpop.f32.mrf.mxu1  ;;  %v7695_v26 = vld [vmem:[%s11905_s6 + $0x2b8] sm:$0xf]  ;;  %v10900_v63 = vld [vmem:[%s11905_s6 + $0x638] sm:$0xf0] }
 0x2ab   : > { %6541 = vmatpush.bf16.msrb.mxu2 %v10232_v27  ;;  %v10845_v27 = vld [vmem:[%s11905_s6 + $0x480] sm:$0xf0] }
 0x2ac   : > { %6554 = vmatpush.bf16.msrb.mxu3 %v10392_v34  ;;  %6516 = vmatmul.bf16.vlgmr.msrb.gmra.mxu0 %v12331_v37  ;;  %v7596_v34 = vor.u32 %v10765_v15, %v7595_v11  ;;  %v7375_v15 = vld [vmem:[%s11905_s6 + $0x38] sm:$0xf] }
 0x2ad   : > { %6560 = vmatpush.bf16.msra.mxu0 %v7496_v8  ;;  %6529 = vmatmul.bf16.vlgmr.msrb.gmra.mxu1 %v12338_v46  ;;  %v7756_v8 = vor.u32 %v10805_v17, %v7755_v16  ;;  %v10710_v16 = vld [vmem:[%s11905_s6 + $0x48] sm:$0xf0]  ;;  %v7535_v17 = vld [vmem:[%s11905_s6 + $0x178] sm:$0xf] }
 0x2ae   : > { %6573 = vmatpush.bf16.msra.mxu1 %v7656_v36  ;;  %6542 = vmatmul.bf16.vlgmr.msrb.gmra.mxu2 %v12336_v45  ;;  %v7415_v36 = vld [vmem:[%s11905_s6 + $0x88] sm:$0xf] }
 0x2af   : > { %6586 = vmatpush.bf16.msra.mxu2 %v7816_v40  ;;  %6555 = vmatmul.bf16.vlgmr.msrb.gmra.mxu3 %v12342_v49  ;;  %v10720_v40 = vld [vmem:[%s11905_s6 + $0x98] sm:$0xf0] }
 0x2b0   : > { %6599 = vmatpush.bf16.msra.mxu3 %v7976_v51  ;;  %v7916_v51 = vor.u32 %v10845_v27, %v7915_v21 }
 0x2b1   : > { %6561 = vmatpush.bf16.msra.mxu0 %v7476_v58  ;;  %v6323_v58 = vadd.f32 %v6322_v48, %v6310_v47  ;;  %v6335_v2 = vpop.f32.mrf.mxu2  ;;  %v6311_v12 = vpop.f32.mrf.mxu0  ;;  %v10705_v47 = vld [vmem:[%s11905_s6 + $0x20] sm:$0xf0] }
 0x2b2   : > { %6574 = vmatpush.bf16.msra.mxu1 %v7636_v59  ;;  %v7416_v59 = vor.u32 %v10720_v40, %v7415_v36  ;;  %v6348_v5 = vpop.f32.mrf.mxu3  ;;  %v6324_v21 = vpop.f32.mrf.mxu1  ;;  %v10830_v36 = vld [vmem:[%s11905_s6 + $0x408] sm:$0xf0]  ;;  %v7376_v40 = vor.u32 %v10710_v16, %v7375_v15  ;;  %v10895_v15 = vld [vmem:[%s11905_s6 + $0x610] sm:$0xf0]  ;;  %v8275_v16 = vld [vmem:[%s11905_s6 + $0x740] sm:$0xf] }
 0x2b3   : > { %6587 = vmatpush.bf16.msra.mxu2 %v7796_v60  ;;  %v7576_v60 = vor.u32 %v10760_v52, %v7575_v43  ;;  %v7355_v43 = vld [vmem:[%s11905_s6 + $0x10] sm:$0xf]  ;;  %v10935_v21 = vld [vmem:[%s11905_s6 + $0x750] sm:$0xf0] }
 0x2b4   : > { %6600 = vmatpush.bf16.msra.mxu3 %v7956_v1  ;;  %v7555_v1 = vld [vmem:[%s11905_s6 + $0x1a0] sm:$0xf]  ;;  %v7515_v52 = vld [vmem:[%s11905_s6 + $0x150] sm:$0xf] }
 0x2b5   : > { %6562 = vmatpush.bf16.msra.mxu0 %v7456_v3  ;;  %v6336_v3 = vadd.f32 %v6335_v2, %v6323_v58  ;;  %v7556_v13 = vor.u32 %v10755_v0, %v7555_v1  ;;  %v10785_v58 = vld [vmem:[%s11905_s6 + $0x2a0] sm:$0xf0]  ;;  %v8295_v1 = vld [vmem:[%s11905_s6 + $0x768] sm:$0xf]  ;;  %v7356_v2 = vor.u32 %v10705_v47, %v7355_v43  ;;  %v8095_v43 = vld [vmem:[%s11905_s6 + $0x5d8] sm:$0xf] }
 0x2b6   : > { %6575 = vmatpush.bf16.msra.mxu1 %v7616_v7  ;;  %v7875_v7 = vld [vmem:[%s11905_s6 + $0x420] sm:$0xf]  ;;  %v8455_v0 = vld [vmem:[%s11905_s6 + $0x8a8] sm:$0xf]  ;;  %v10890_v47 = vld [vmem:[%s11905_s6 + $0x5e8] sm:$0xf0] }
 0x2b7   : > { %6588 = vmatpush.bf16.msra.mxu2 %v7776_v9  ;;  %v10835_v9 = vld [vmem:[%s11905_s6 + $0x430] sm:$0xf0]  ;;  %v13449_v11 = vadd.f32 %v6348_v5, %v6336_v3  ;;  %v7676_v3 = vor.u32 %v10785_v58, %v7675_v54  ;;  %v8615_v5 = vld [vmem:[%s11905_s6 + $0x9e8] sm:$0xf]  ;;  %v10970_v54 = vld [vmem:[%s11905_s6 + $0x868] sm:$0xf0]  ;;  %v8096_v58 = vor.u32 %v10890_v47, %v8095_v43 }
 0x2b8   : > { %6601 = vmatpush.bf16.msra.mxu3 %v7936_v14  ;;  %v7716_v14 = vor.u32 %v10795_v6, %v7715_v50  ;;  %v7876_v27 = vor.u32 %v10835_v9, %v7875_v7  ;;  %v10980_v50 = vld [vmem:[%s11905_s6 + $0x8b8] sm:$0xf0]  ;;  %v7516_v6 = vor.u32 %v10745_v53, %v7515_v52  ;;  %v10930_v52 = vld [vmem:[%s11905_s6 + $0x728] sm:$0xf0]  ;;  %v8415_v53 = vld [vmem:[%s11905_s6 + $0x858] sm:$0xf] }
 0x2b9   : > { %6563 = vmatpush.bf16.msra.mxu0 %v7436_v32  ;;  %v10750_v32 = vld [vmem:[%s11905_s6 + $0x188] sm:$0xf0]  ;;  %v6337_v56 = vpop.f32.mrf.mxu2  ;;  %v11020_v7 = vld [vmem:[%s11905_s6 + $0x9f8] sm:$0xf0]  ;;  %v10915_v43 = vld [vmem:[%s11905_s6 + $0x6b0] sm:$0xf0] }
 0x2ba   : > { %6576 = vmatpush.bf16.msra.mxu1 %v7596_v34  ;;  %v10790_v34 = vld [vmem:[%s11905_s6 + $0x2c8] sm:$0xf0]  ;;  %v7536_v48 = vor.u32 %v10750_v32, %v7535_v17  ;;  %v8616_v17 = vor.u32 %v11020_v7, %v8615_v5  ;;  %v10975_v32 = vld [vmem:[%s11905_s6 + $0x890] sm:$0xf0]  ;;  %v8575_v56 = vld [vmem:[%s11905_s6 + $0x998] sm:$0xf] }
 0x2bb   : > { %6589 = vmatpush.bf16.msra.mxu2 %v7756_v8  ;;  %v7855_v8 = vld [vmem:[%s11905_s6 + $0x3f8] sm:$0xf]  ;;  %v10880_v5 = vld [vmem:[%s11905_s6 + $0x598] sm:$0xf0]  ;;  %v8215_v7 = vld [vmem:[%s11905_s6 + $0x6c8] sm:$0xf] }
 0x2bc   : > { %6602 = vmatpush.bf16.msra.mxu3 %v7916_v51  ;;  %v7696_v51 = vor.u32 %v10790_v34, %v7695_v26  ;;  %v7856_v57 = vor.u32 %v10830_v36, %v7855_v8  ;;  %v8595_v26 = vld [vmem:[%s11905_s6 + $0x9c0] sm:$0xf]  ;;  %v11015_v34 = vld [vmem:[%s11905_s6 + $0x9d0] sm:$0xf0]  ;;  %v8276_v36 = vor.u32 %v10935_v21, %v8275_v16  ;;  %v8535_v16 = vld [vmem:[%s11905_s6 + $0x948] sm:$0xf] }
 0x2bd   : > { %6564 = vmatpush.bf16.msra.mxu0 %v7416_v59  ;;  %v7835_v59 = vld [vmem:[%s11905_s6 + $0x3d0] sm:$0xf]  ;;  %v8355_v47 = vld [vmem:[%s11905_s6 + $0x7e0] sm:$0xf] }
 0x2be   : > { %6577 = vmatpush.bf16.msra.mxu1 %v7576_v60  ;;  %v10825_v60 = vld [vmem:[%s11905_s6 + $0x3e0] sm:$0xf0] }
 0x2bf   : > { %6590 = vmatpush.bf16.msra.mxu2 %v7736_v61  ;;  %v6350_v61 = vpop.f32.mrf.mxu3  ;;  %v7836_v9 = vor.u32 %v10825_v60, %v7835_v59  ;;  %v8416_v60 = vor.u32 %v10970_v54, %v8415_v53  ;;  %v8515_v53 = vld [vmem:[%s11905_s6 + $0x920] sm:$0xf]  ;;  %v10995_v54 = vld [vmem:[%s11905_s6 + $0x930] sm:$0xf0] }
 0x2c0   : > { %6603 = vmatpush.bf16.msra.mxu3 %v7896_v4  ;;  %v10940_v4 = vld [vmem:[%s11905_s6 + $0x778] sm:$0xf0]  ;;  %v10885_v61 = vld [vmem:[%s11905_s6 + $0x5c0] sm:$0xf0] }
 0x2c1   : > { %6565 = vmatpush.bf16.msra.mxu0 %v7396_v10  ;;  %v8136_v10 = vor.u32 %v10900_v63, %v8135_v55  ;;  %v8296_v12 = vor.u32 %v10940_v4, %v8295_v1  ;;  %v8235_v55 = vld [vmem:[%s11905_s6 + $0x6f0] sm:$0xf]  ;;  %v10925_v63 = vld [vmem:[%s11905_s6 + $0x700] sm:$0xf0] }
 0x2c2   : > { %6578 = vmatpush.bf16.msra.mxu1 %v7556_v13  ;;  %v8456_v13 = vor.u32 %v10980_v50, %v8455_v0  ;;  %v10965_v1 = vld [vmem:[%s11905_s6 + $0x840] sm:$0xf0]  ;;  %v8236_v50 = vor.u32 %v10925_v63, %v8235_v55  ;;  %v8175_v55 = vld [vmem:[%s11905_s6 + $0x678] sm:$0xf]  ;;  %v8516_v63 = vor.u32 %v10995_v54, %v8515_v53  ;;  %v8755_v54 = vld [vmem:[%s11905_s6 + $0xb00] sm:$0xf] }
 0x2c3   : > { %6591 = vmatpush.bf16.msra.mxu2 %v7716_v14  ;;  %v8115_v14 = vld [vmem:[%s11905_s6 + $0x600] sm:$0xf]  ;;  %v11005_v4 = vld [vmem:[%s11905_s6 + $0x980] sm:$0xf0] }
 0x2c4   : > { %6604 = vmatpush.bf16.msra.mxu3 %v7876_v27  ;;  %v8435_v27 = vld [vmem:[%s11905_s6 + $0x880] sm:$0xf]  ;;  %v8116_v8 = vor.u32 %v10895_v15, %v8115_v14  ;;  %v8375_v14 = vld [vmem:[%s11905_s6 + $0x808] sm:$0xf]  ;;  %v10960_v15 = vld [vmem:[%s11905_s6 + $0x818] sm:$0xf0] }
 0x2c5   : > { %6566 = vmatpush.bf16.msra.mxu0 %v7376_v40  ;;  %v8436_v40 = vor.u32 %v10975_v32, %v8435_v27  ;;  %v8376_v32 = vor.u32 %v10960_v15, %v8375_v14  ;;  %v10945_v14 = vld [vmem:[%s11905_s6 + $0x7a0] sm:$0xf0]  ;;  %v8475_v15 = vld [vmem:[%s11905_s6 + $0x8d0] sm:$0xf] }
 0x2c6   : > { %6579 = vmatpush.bf16.msra.mxu1 %v7536_v48  ;;  %v8255_v48 = vld [vmem:[%s11905_s6 + $0x718] sm:$0xf] }
 0x2c7   : > { %6592 = vmatpush.bf16.msra.mxu2 %v7696_v51  ;;  %v8596_v51 = vor.u32 %v11015_v34, %v8595_v26  ;;  %v8256_v59 = vor.u32 %v10930_v52, %v8255_v48  ;;  %v8035_v26 = vld [vmem:[%s11905_s6 + $0x560] sm:$0xf]  ;;  %v10875_v34 = vld [vmem:[%s11905_s6 + $0x570] sm:$0xf0] }
 0x2c8   : > { %6605 = vmatpush.bf16.msra.mxu3 %v7856_v57  ;;  %v11010_v57 = vld [vmem:[%s11905_s6 + $0x9a8] sm:$0xf0]  ;;  %v10955_v48 = vld [vmem:[%s11905_s6 + $0x7f0] sm:$0xf0] }
 0x2c9   : > { %6567 = vmatpush.bf16.msra.mxu0 %v7356_v2  ;;  %v8555_v2 = vld [vmem:[%s11905_s6 + $0x970] sm:$0xf]  ;;  %v6361_v0 = vpop.f32.mrf.mxu0 }
 0x2ca   : > { %6580 = vmatpush.bf16.msra.mxu1 %v7516_v6 }
 0x2cb   : > { %6593 = vmatpush.bf16.msra.mxu2 %v7676_v3  ;;  %v8055_v3 = vld [vmem:[%s11905_s6 + $0x588] sm:$0xf] }
 0x2cc   : > { %6606 = vmatpush.bf16.msra.mxu3 %v7836_v9  ;;  %6568 = vmatmul.bf16.vlgmr.msra.gmra.mxu0 %v12025_v19  ;;  %v8576_v19 = vor.u32 %v11010_v57, %v8575_v56  ;;  %v6362_v9 = vadd.f32 %v6361_v0, %v13449_v11  ;;  %v8056_v27 = vor.u32 %v10880_v5, %v8055_v3 }
 0x2cd   : > { %6612 = vmatpush.bf16.msrb.mxu0 %v8136_v10  ;;  %6581 = vmatmul.bf16.vlgmr.msra.gmra.mxu1 %v12029_v22  ;;  %v6374_v10 = vpop.f32.mrf.mxu1  ;;  %v8036_v56 = vor.u32 %v10875_v34, %v8035_v26  ;;  %v11100_v26 = vld [vmem:[%s11905_s6 + $0xc78] sm:$0xf0]  ;;  %v9095_v34 = vld [vmem:[%s11905_s6 + $0xda8] sm:$0xf] }
 0x2ce   : > { %6625 = vmatpush.bf16.msrb.mxu1 %v8296_v12  ;;  %6594 = vmatmul.bf16.vlgmr.msra.gmra.mxu2 %v12023_v18  ;;  %v8075_v18 = vld [vmem:[%s11905_s6 + $0x5b0] sm:$0xf]  ;;  %v8556_v12 = vor.u32 %v11005_v4, %v8555_v2  ;;  %v6375_v21 = vadd.f32 %v6374_v10, %v6362_v9  ;;  %v10950_v2 = vld [vmem:[%s11905_s6 + $0x7c8] sm:$0xf0]  ;;  %v8495_v4 = vld [vmem:[%s11905_s6 + $0x8f8] sm:$0xf] }
 0x2cf   : > { %6638 = vmatpush.bf16.msrb.mxu2 %v8456_v13  ;;  %6607 = vmatmul.bf16.vlgmr.msra.gmra.mxu3 %v12027_v20  ;;  %v8395_v20 = vld [vmem:[%s11905_s6 + $0x830] sm:$0xf]  ;;  %v8076_v22 = vor.u32 %v10885_v61, %v8075_v18  ;;  %v10920_v13 = vld [vmem:[%s11905_s6 + $0x6d8] sm:$0xf0]  ;;  %v8015_v18 = vld [vmem:[%s11905_s6 + $0x538] sm:$0xf] }
 0x2d0   : > { %6651 = vmatpush.bf16.msrb.mxu3 %v8616_v17  ;;  %v8396_v6 = vor.u32 %v10965_v1, %v8395_v20  ;;  %v11000_v17 = vld [vmem:[%s11905_s6 + $0x958] sm:$0xf0]  ;;  %v8216_v11 = vor.u32 %v10920_v13, %v8215_v7  ;;  %v10870_v61 = vld [vmem:[%s11905_s6 + $0x548] sm:$0xf0]  ;;  %v8335_v1 = vld [vmem:[%s11905_s6 + $0x7b8] sm:$0xf] }
 0x2d1   : > { %6613 = vmatpush.bf16.msrb.mxu0 %v8116_v8  ;;  %v8195_v8 = vld [vmem:[%s11905_s6 + $0x6a0] sm:$0xf]  ;;  %v10910_v20 = vld [vmem:[%s11905_s6 + $0x688] sm:$0xf0]  ;;  %v8016_v0 = vor.u32 %v10870_v61, %v8015_v18  ;;  %v8336_v5 = vor.u32 %v10950_v2, %v8335_v1  ;;  %v8155_v7 = vld [vmem:[%s11905_s6 + $0x650] sm:$0xf] }
 0x2d2   : > { %6626 = vmatpush.bf16.msrb.mxu1 %v8276_v36  ;;  %v6387_v36 = vpop.f32.mrf.mxu2  ;;  %v6400_v52 = vpop.f32.mrf.mxu3  ;;  %v8176_v3 = vor.u32 %v10910_v20, %v8175_v55  ;;  %v10905_v9 = vld [vmem:[%s11905_s6 + $0x660] sm:$0xf0]  ;;  %v8315_v10 = vld [vmem:[%s11905_s6 + $0x790] sm:$0xf]  ;;  %v9075_v18 = vld [vmem:[%s11905_s6 + $0xd80] sm:$0xf] }
 0x2d3   : > { %6639 = vmatpush.bf16.msrb.mxu2 %v8436_v40  ;;  %v8536_v40 = vor.u32 %v11000_v17, %v8535_v16  ;;  %v10985_v16 = vld [vmem:[%s11905_s6 + $0x8e0] sm:$0xf0]  ;;  %v11135_v61 = vld [vmem:[%s11905_s6 + $0xd90] sm:$0xf0]  ;;  %v9235_v55 = vld [vmem:[%s11905_s6 + $0xec0] sm:$0xf] }
 0x2d4   : > { %6652 = vmatpush.bf16.msrb.mxu3 %v8596_v51  ;;  %v6388_v51 = vadd.f32 %v6387_v36, %v6375_v21  ;;  %v8775_v21 = vld [vmem:[%s11905_s6 + $0xb28] sm:$0xf]  ;;  %v8156_v36 = vor.u32 %v10905_v9, %v8155_v7  ;;  %v9076_v1 = vor.u32 %v11135_v61, %v9075_v18  ;;  %v8735_v2 = vld [vmem:[%s11905_s6 + $0xad8] sm:$0xf]  ;;  %v11170_v7 = vld [vmem:[%s11905_s6 + $0xea8] sm:$0xf0] }
 0x2d5   : > { %6614 = vmatpush.bf16.msrb.mxu0 %v8096_v58  ;;  %v6363_v58 = vpop.f32.mrf.mxu0  ;;  %v8835_v18 = vld [vmem:[%s11905_s6 + $0xba0] sm:$0xf] }
 0x2d6   : > { %6627 = vmatpush.bf16.msrb.mxu1 %v8256_v59  ;;  %v13520_v57 = vadd.f32 %v6400_v52, %v6388_v51  ;;  %v8196_v59 = vor.u32 %v10915_v43, %v8195_v8  ;;  %v11140_v8 = vld [vmem:[%s11905_s6 + $0xdb8] sm:$0xf0]  ;;  %v9255_v43 = vld [vmem:[%s11905_s6 + $0xee8] sm:$0xf]  ;;  %v8915_v58 = vld [vmem:[%s11905_s6 + $0xc40] sm:$0xf] }
 0x2d7   : > { %6640 = vmatpush.bf16.msrb.mxu2 %v8416_v60  ;;  %v8356_v60 = vor.u32 %v10955_v48, %v8355_v47  ;;  %v11180_v47 = vld [vmem:[%s11905_s6 + $0xef8] sm:$0xf0]  ;;  %v8476_v48 = vor.u32 %v10985_v16, %v8475_v15  ;;  %v9096_v53 = vor.u32 %v11140_v8, %v9095_v34  ;;  %v11125_v16 = vld [vmem:[%s11905_s6 + $0xd40] sm:$0xf0]  ;;  %v8695_v8 = vld [vmem:[%s11905_s6 + $0xa88] sm:$0xf] }
 0x2d8   : > { %6653 = vmatpush.bf16.msrb.mxu3 %v8576_v19  ;;  %v6376_v19 = vpop.f32.mrf.mxu1 }
 0x2d9   : > { %6615 = vmatpush.bf16.msrb.mxu0 %v8076_v22  ;;  %v10990_v22 = vld [vmem:[%s11905_s6 + $0x908] sm:$0xf0]  ;;  %v11175_v19 = vld [vmem:[%s11905_s6 + $0xed0] sm:$0xf0] }
 0x2da   : > { %6628 = vmatpush.bf16.msrb.mxu1 %v8236_v50  ;;  %v7995_v50 = vld [vmem:[%s11905_s6 + $0x510] sm:$0xf]  ;;  %v8496_v13 = vor.u32 %v10990_v22, %v8495_v4  ;;  %v6402_v17 = vpop.f32.mrf.mxu3  ;;  %v11050_v4 = vld [vmem:[%s11905_s6 + $0xae8] sm:$0xf0]  ;;  %v8895_v22 = vld [vmem:[%s11905_s6 + $0xc18] sm:$0xf] }
 0x2db   : > { %6641 = vmatpush.bf16.msrb.mxu2 %v8396_v6  ;;  %v10865_v6 = vld [vmem:[%s11905_s6 + $0x520] sm:$0xf0]  ;;  %v8736_v9 = vor.u32 %v11050_v4, %v8735_v2  ;;  %v9155_v4 = vld [vmem:[%s11905_s6 + $0xe20] sm:$0xf] }
 0x2dc   : > { %6654 = vmatpush.bf16.msrb.mxu3 %v8556_v12  ;;  %v6389_v12 = vpop.f32.mrf.mxu2 }
 0x2dd   : > { %6616 = vmatpush.bf16.msrb.mxu0 %v8056_v27  ;;  %v11060_v27 = vld [vmem:[%s11905_s6 + $0xb38] sm:$0xf0]  ;;  %v8715_v12 = vld [vmem:[%s11905_s6 + $0xab0] sm:$0xf] }
 0x2de   : > { %6629 = vmatpush.bf16.msrb.mxu1 %v8216_v11  ;;  %v8935_v11 = vld [vmem:[%s11905_s6 + $0xc68] sm:$0xf]  ;;  %v8776_v51 = vor.u32 %v11060_v27, %v8775_v21  ;;  %v9195_v21 = vld [vmem:[%s11905_s6 + $0xe70] sm:$0xf]  ;;  %v11165_v27 = vld [vmem:[%s11905_s6 + $0xe80] sm:$0xf0] }
 0x2df   : > { %6642 = vmatpush.bf16.msrb.mxu2 %v8376_v32  ;;  %v7996_v32 = vor.u32 %v10865_v6, %v7995_v50  ;;  %v8936_v52 = vor.u32 %v11100_v26, %v8935_v11  ;;  %v11090_v50 = vld [vmem:[%s11905_s6 + $0xc28] sm:$0xf0]  ;;  %v9055_v6 = vld [vmem:[%s11905_s6 + $0xd58] sm:$0xf] }
 0x2e0   : > { %6655 = vmatpush.bf16.msrb.mxu3 %v8536_v40  ;;  %v8316_v40 = vor.u32 %v10945_v14, %v8315_v10  ;;  %v8875_v14 = vld [vmem:[%s11905_s6 + $0xbf0] sm:$0xf] }
 0x2e1   : > { %6617 = vmatpush.bf16.msrb.mxu0 %v8036_v56  ;;  %v11055_v56 = vld [vmem:[%s11905_s6 + $0xb10] sm:$0xf0] }
 0x2e2   : > { %6630 = vmatpush.bf16.msrb.mxu1 %v8196_v59  ;;  %v9256_v59 = vor.u32 %v11180_v47, %v9255_v43  ;;  %v9196_v43 = vor.u32 %v11165_v27, %v9195_v21  ;;  %v11025_v21 = vld [vmem:[%s11905_s6 + $0xa20] sm:$0xf0] }
 0x2e3   : > { %6643 = vmatpush.bf16.msrb.mxu2 %v8356_v60  ;;  %v11095_v60 = vld [vmem:[%s11905_s6 + $0xc50] sm:$0xf0] }
 0x2e4   : > { %6656 = vmatpush.bf16.msrb.mxu3 %v8516_v63  ;;  %v8756_v63 = vor.u32 %v11055_v56, %v8755_v54  ;;  %v8916_v20 = vor.u32 %v11095_v60, %v8915_v58  ;;  %v11035_v60 = vld [vmem:[%s11905_s6 + $0xa70] sm:$0xf0] }
 0x2e5   : > { %6618 = vmatpush.bf16.msrb.mxu0 %v8016_v0  ;;  %v9236_v0 = vor.u32 %v11175_v19, %v9235_v55  ;;  %v11075_v19 = vld [vmem:[%s11905_s6 + $0xbb0] sm:$0xf0] }
 0x2e6   : > { %6631 = vmatpush.bf16.msrb.mxu1 %v8176_v3  ;;  %v11130_v3 = vld [vmem:[%s11905_s6 + $0xd68] sm:$0xf0] }
 0x2e7   : > { %6644 = vmatpush.bf16.msrb.mxu2 %v8336_v5  ;;  %v9215_v5 = vld [vmem:[%s11905_s6 + $0xe98] sm:$0xf]  ;;  %v9056_v10 = vor.u32 %v11130_v3, %v9055_v6 }
 0x2e8   : > { %6657 = vmatpush.bf16.msrb.mxu3 %v8496_v13  ;;  %v11045_v13 = vld [vmem:[%s11905_s6 + $0xac0] sm:$0xf0]  ;;  %v9216_v15 = vor.u32 %v11170_v7, %v9215_v5  ;;  %v8836_v5 = vor.u32 %v11075_v19, %v8835_v18  ;;  %v11340_v18 = vld [vmem:[%s11905_s6 + $0x13f8] sm:$0xf0] }
 0x2e9   : > { %6619 = vmatpush.bf16.msrb.mxu0 %v7996_v32  ;;  %v6413_v17 = vpop.f32.mrf.mxu0  ;;  %v8716_v11 = vor.u32 %v11045_v13, %v8715_v12  ;;  %v11070_v13 = vld [vmem:[%s11905_s6 + $0xb88] sm:$0xf0] }
 0x2ea   : > { %6632 = vmatpush.bf16.msrb.mxu1 %v8156_v36  ;;  %v6426_v32 = vpop.f32.mrf.mxu1  ;;  %v11040_v36 = vld [vmem:[%s11905_s6 + $0xa98] sm:$0xf0] }
 0x2eb   : > { %6645 = vmatpush.bf16.msrb.mxu2 %v8316_v40  ;;  %v8855_v40 = vld [vmem:[%s11905_s6 + $0xbc8] sm:$0xf]  ;;  %v8696_v54 = vor.u32 %v11040_v36, %v8695_v8  ;;  %v11105_v8 = vld [vmem:[%s11905_s6 + $0xca0] sm:$0xf0]  ;;  %v9115_v36 = vld [vmem:[%s11905_s6 + $0xdd0] sm:$0xf] }
 0x2ec   : > { %6658 = vmatpush.bf16.msrb.mxu3 %v8476_v48  ;;  %6620 = vmatmul.bf16.vlgmr.msrb.gmra.mxu0 %v12091_v41  ;;  %v11085_v41 = vld [vmem:[%s11905_s6 + $0xc00] sm:$0xf0]  ;;  %v11080_v48 = vld [vmem:[%s11905_s6 + $0xbd8] sm:$0xf0] }
 0x2ed   : > { %6664 = vmatpush.bf16.msra.mxu0 %v8776_v51  ;;  %6633 = vmatmul.bf16.vlgmr.msrb.gmra.mxu1 %v12095_v44  ;;  %v6414_v44 = vadd.f32 %v6413_v17, %v13520_v57  ;;  %v8876_v26 = vor.u32 %v11085_v41, %v8875_v14  ;;  %v9015_v51 = vld [vmem:[%s11905_s6 + $0xd08] sm:$0xf]  ;;  %v11120_v57 = vld [vmem:[%s11905_s6 + $0xd18] sm:$0xf0]  ;;  %v8856_v56 = vor.u32 %v11080_v48, %v8855_v40  ;;  %v8975_v14 = vld [vmem:[%s11905_s6 + $0xcb8] sm:$0xf] }
 0x2ee   : > { %6677 = vmatpush.bf16.msra.mxu1 %v8936_v52  ;;  %6646 = vmatmul.bf16.vlgmr.msrb.gmra.mxu2 %v12087_v38  ;;  %v8896_v38 = vor.u32 %v11090_v50, %v8895_v22  ;;  %v9175_v52 = vld [vmem:[%s11905_s6 + $0xe48] sm:$0xf]  ;;  %v9016_v58 = vor.u32 %v11120_v57, %v9015_v51  ;;  %v11155_v22 = vld [vmem:[%s11905_s6 + $0xe30] sm:$0xf0]  ;;  %v9135_v41 = vld [vmem:[%s11905_s6 + $0xdf8] sm:$0xf] }
 0x2ef   : > { %6690 = vmatpush.bf16.msra.mxu2 %v9096_v53  ;;  %6659 = vmatmul.bf16.vlgmr.msrb.gmra.mxu3 %v12093_v42  ;;  %v9035_v42 = vld [vmem:[%s11905_s6 + $0xd30] sm:$0xf]  ;;  %v6427_v47 = vadd.f32 %v6426_v32, %v6414_v44  ;;  %v11160_v53 = vld [vmem:[%s11905_s6 + $0xe58] sm:$0xf0]  ;;  %v9156_v12 = vor.u32 %v11155_v22, %v9155_v4  ;;  %v11065_v32 = vld [vmem:[%s11905_s6 + $0xb60] sm:$0xf0] }
 0x2f0   : > { %6703 = vmatpush.bf16.msra.mxu3 %v9256_v59  ;;  %v9036_v34 = vor.u32 %v11125_v16, %v9035_v42  ;;  %v8675_v59 = vld [vmem:[%s11905_s6 + $0xa60] sm:$0xf]  ;;  %v9176_v61 = vor.u32 %v11160_v53, %v9175_v52  ;;  %v11150_v42 = vld [vmem:[%s11905_s6 + $0xe08] sm:$0xf0]  ;;  %v8635_v17 = vld [vmem:[%s11905_s6 + $0xa10] sm:$0xf] }
 0x2f1   : > { %6665 = vmatpush.bf16.msra.mxu0 %v8756_v63  ;;  %v6439_v55 = vpop.f32.mrf.mxu2  ;;  %v8995_v63 = vld [vmem:[%s11905_s6 + $0xce0] sm:$0xf]  ;;  %v8676_v50 = vor.u32 %v11035_v60, %v8675_v59  ;;  %v11145_v40 = vld [vmem:[%s11905_s6 + $0xde0] sm:$0xf0]  ;;  %v11220_v48 = vld [vmem:[%s11905_s6 + $0x1038] sm:$0xf0]  ;;  %v8636_v52 = vor.u32 %v11025_v21, %v8635_v17 }
 0x2f2   : > { %6678 = vmatpush.bf16.msra.mxu1 %v8916_v20  ;;  %v11115_v20 = vld [vmem:[%s11905_s6 + $0xcf0] sm:$0xf0]  ;;  %v6452_v2 = vpop.f32.mrf.mxu3  ;;  %v6428_v6 = vpop.f32.mrf.mxu1  ;;  %v9575_v51 = vld [vmem:[%s11905_s6 + $0x1168] sm:$0xf]  ;;  %v11260_v53 = vld [vmem:[%s11905_s6 + $0x1178] sm:$0xf0] }
 0x2f3   : > { %6691 = vmatpush.bf16.msra.mxu2 %v9076_v1  ;;  %v6440_v1 = vadd.f32 %v6439_v55, %v6427_v47  ;;  %v8996_v7 = vor.u32 %v11115_v20, %v8995_v63  ;;  %v9415_v47 = vld [vmem:[%s11905_s6 + $0x1028] sm:$0xf]  ;;  %v9576_v19 = vor.u32 %v11260_v53, %v9575_v51  ;;  %v9395_v20 = vld [vmem:[%s11905_s6 + $0x1000] sm:$0xf]  ;;  %v11255_v22 = vld [vmem:[%s11905_s6 + $0x1150] sm:$0xf0] }
 0x2f4   : > { %6704 = vmatpush.bf16.msra.mxu3 %v9236_v0  ;;  %v6415_v0 = vpop.f32.mrf.mxu0  ;;  %v9895_v60 = vld [vmem:[%s11905_s6 + $0x13e8] sm:$0xf]  ;;  %v9416_v55 = vor.u32 %v11220_v48, %v9415_v47  ;;  %v9875_v6 = vld [vmem:[%s11905_s6 + $0x13c0] sm:$0xf]  ;;  %v11330_v17 = vld [vmem:[%s11905_s6 + $0x13a8] sm:$0xf0] }
 0x2f5   : > { %6666 = vmatpush.bf16.msra.mxu0 %v8736_v9  ;;  %v13591_v3 = vadd.f32 %v6452_v2, %v6440_v1  ;;  %v8655_v9 = vld [vmem:[%s11905_s6 + $0xa38] sm:$0xf]  ;;  %v11215_v1 = vld [vmem:[%s11905_s6 + $0x1010] sm:$0xf0]  ;;  %v9555_v2 = vld [vmem:[%s11905_s6 + $0x1140] sm:$0xf]  ;;  %v9896_v4 = vor.u32 %v11340_v18, %v9895_v60 }
 0x2f6   : > { %6679 = vmatpush.bf16.msra.mxu1 %v8896_v38  ;;  %v11030_v38 = vld [vmem:[%s11905_s6 + $0xa48] sm:$0xf0]  ;;  %v9715_v0 = vld [vmem:[%s11905_s6 + $0x1280] sm:$0xf]  ;;  %v9495_v53 = vld [vmem:[%s11905_s6 + $0x10c8] sm:$0xf] }
 0x2f7   : > { %6692 = vmatpush.bf16.msra.mxu2 %v9056_v10  ;;  %v8815_v10 = vld [vmem:[%s11905_s6 + $0xb78] sm:$0xf]  ;;  %v8656_v16 = vor.u32 %v11030_v38, %v8655_v9  ;;  %v9556_v9 = vor.u32 %v11255_v22, %v9555_v2  ;;  %v9815_v60 = vld [vmem:[%s11905_s6 + $0x1348] sm:$0xf]  ;;  %v11320_v18 = vld [vmem:[%s11905_s6 + $0x1358] sm:$0xf0] }
 0x2f8   : > { %6705 = vmatpush.bf16.msra.mxu3 %v9216_v15  ;;  %v11110_v15 = vld [vmem:[%s11905_s6 + $0xcc8] sm:$0xf0]  ;;  %v8816_v27 = vor.u32 %v11070_v13, %v8815_v10  ;;  %v9375_v10 = vld [vmem:[%s11905_s6 + $0xfd8] sm:$0xf]  ;;  %v9816_v2 = vor.u32 %v11320_v18, %v9815_v60  ;;  %v11235_v22 = vld [vmem:[%s11905_s6 + $0x10b0] sm:$0xf0] }
 0x2f9   : > { %6667 = vmatpush.bf16.msra.mxu0 %v8716_v11  ;;  %v8976_v44 = vor.u32 %v11110_v15, %v8975_v14  ;;  %v8795_v11 = vld [vmem:[%s11905_s6 + $0xb50] sm:$0xf]  ;;  %v9535_v13 = vld [vmem:[%s11905_s6 + $0x1118] sm:$0xf]  ;;  %v11250_v15 = vld [vmem:[%s11905_s6 + $0x1128] sm:$0xf0] }
 0x2fa   : > { %6680 = vmatpush.bf16.msra.mxu1 %v8876_v26  ;;  %v8955_v26 = vld [vmem:[%s11905_s6 + $0xc90] sm:$0xf]  ;;  %v6454_v57 = vpop.f32.mrf.mxu3  ;;  %v9536_v21 = vor.u32 %v11250_v15, %v9535_v13  ;;  %v11190_v15 = vld [vmem:[%s11905_s6 + $0xf48] sm:$0xf0]  ;;  %v10535_v18 = vld [vmem:[%s11905_s6 + $0x18e8] sm:$0xf] }
 0x2fb   : > { %6693 = vmatpush.bf16.msra.mxu2 %v9036_v34  ;;  %v9136_v34 = vor.u32 %v11150_v42, %v9135_v41  ;;  %v8956_v59 = vor.u32 %v11105_v8, %v8955_v26  ;;  %v9695_v41 = vld [vmem:[%s11905_s6 + $0x1258] sm:$0xf]  ;;  %v11290_v42 = vld [vmem:[%s11905_s6 + $0x1268] sm:$0xf0]  ;;  %v9675_v26 = vld [vmem:[%s11905_s6 + $0x1230] sm:$0xf] }
 0x2fc   : > { %6706 = vmatpush.bf16.msra.mxu3 %v9196_v43  ;;  %v6441_v43 = vpop.f32.mrf.mxu2  ;;  %v9835_v8 = vld [vmem:[%s11905_s6 + $0x1370] sm:$0xf]  ;;  %v9335_v57 = vld [vmem:[%s11905_s6 + $0xf88] sm:$0xf] }
 0x2fd   : > { %6668 = vmatpush.bf16.msra.mxu0 %v8696_v54  ;;  %v9735_v54 = vld [vmem:[%s11905_s6 + $0x12a8] sm:$0xf] }
 0x2fe   : > { %6681 = vmatpush.bf16.msra.mxu1 %v8856_v56  ;;  %v11300_v56 = vld [vmem:[%s11905_s6 + $0x12b8] sm:$0xf0] }
 0x2ff   : > { %6694 = vmatpush.bf16.msra.mxu2 %v9016_v58  ;;  %v8796_v58 = vor.u32 %v11065_v32, %v8795_v11  ;;  %v9736_v63 = vor.u32 %v11300_v56, %v9735_v54  ;;  %v11205_v11 = vld [vmem:[%s11905_s6 + $0xfc0] sm:$0xf0] }
 0x300   : > { %6707 = vmatpush.bf16.msra.mxu3 %v9176_v61  ;;  %v9116_v61 = vor.u32 %v11145_v40, %v9115_v36  ;;  %v11245_v32 = vld [vmem:[%s11905_s6 + $0x1100] sm:$0xf0] }
 0x301   : > { %6669 = vmatpush.bf16.msra.mxu0 %v8676_v50  ;;  %v11295_v50 = vld [vmem:[%s11905_s6 + $0x1290] sm:$0xf0]  ;;  %v11325_v36 = vld [vmem:[%s11905_s6 + $0x1380] sm:$0xf0] }
 0x302   : > { %6682 = vmatpush.bf16.msra.mxu1 %v8836_v5  ;;  %v11335_v5 = vld [vmem:[%s11905_s6 + $0x13d0] sm:$0xf0]  ;;  %v9716_v38 = vor.u32 %v11295_v50, %v9715_v0  ;;  %v9836_v54 = vor.u32 %v11325_v36, %v9835_v8  ;;  %v9635_v0 = vld [vmem:[%s11905_s6 + $0x11e0] sm:$0xf]  ;;  %v11265_v36 = vld [vmem:[%s11905_s6 + $0x11a0] sm:$0xf0] }
 0x303   : > { %6695 = vmatpush.bf16.msra.mxu2 %v8996_v7  ;;  %v9396_v7 = vor.u32 %v11215_v1, %v9395_v20  ;;  %v9876_v14 = vor.u32 %v11335_v5, %v9875_v6  ;;  %v11195_v20 = vld [vmem:[%s11905_s6 + $0xf70] sm:$0xf0]  ;;  %v9475_v1 = vld [vmem:[%s11905_s6 + $0x10a0] sm:$0xf] }
 0x304   : > { %6708 = vmatpush.bf16.msra.mxu3 %v9156_v12  ;;  %v11210_v12 = vld [vmem:[%s11905_s6 + $0xfe8] sm:$0xf0]  ;;  %v11275_v50 = vld [vmem:[%s11905_s6 + $0x11f0] sm:$0xf0]  ;;  %v9795_v5 = vld [vmem:[%s11905_s6 + $0x1320] sm:$0xf] }
 0x305   : > { %6670 = vmatpush.bf16.msra.mxu0 %v8656_v16  ;;  %v9855_v16 = vld [vmem:[%s11905_s6 + $0x1398] sm:$0xf]  ;;  %v9636_v13 = vor.u32 %v11275_v50, %v9635_v0  ;;  %v11415_v50 = vld [vmem:[%s11905_s6 + $0x1650] sm:$0xf0] }
 0x306   : > { %6683 = vmatpush.bf16.msra.mxu1 %v8816_v27  ;;  %v9696_v27 = vor.u32 %v11290_v42, %v9695_v41  ;;  %v9455_v41 = vld [vmem:[%s11905_s6 + $0x1078] sm:$0xf] }
 0x307   : > { %6696 = vmatpush.bf16.msra.mxu2 %v8976_v44  ;;  %v9355_v44 = vld [vmem:[%s11905_s6 + $0xfb0] sm:$0xf] }
 0x308   : > { %6709 = vmatpush.bf16.msra.mxu3 %v9136_v34  ;;  %v11285_v34 = vld [vmem:[%s11905_s6 + $0x1240] sm:$0xf0]  ;;  %v9356_v43 = vor.u32 %v11205_v11, %v9355_v44  ;;  %v9275_v11 = vld [vmem:[%s11905_s6 + $0xf10] sm:$0xf] }
 0x309   : > { %6671 = vmatpush.bf16.msra.mxu0 %v8636_v52  ;;  %v9676_v51 = vor.u32 %v11285_v34, %v9675_v26  ;;  %v11200_v52 = vld [vmem:[%s11905_s6 + $0xf98] sm:$0xf0]  ;;  %v9435_v26 = vld [vmem:[%s11905_s6 + $0x1050] sm:$0xf]  ;;  %v11225_v34 = vld [vmem:[%s11905_s6 + $0x1060] sm:$0xf0] }
 0x30a   : > { %6684 = vmatpush.bf16.msra.mxu1 %v8796_v58  ;;  %v6478_v47 = vpop.f32.mrf.mxu1  ;;  %v11240_v58 = vld [vmem:[%s11905_s6 + $0x10d8] sm:$0xf0] }
 0x30b   : > { %6697 = vmatpush.bf16.msra.mxu2 %v8956_v59  ;;  %v11280_v59 = vld [vmem:[%s11905_s6 + $0x1218] sm:$0xf0] }
 0x30c   : > { %6710 = vmatpush.bf16.msra.mxu3 %v9116_v61  ;;  %6672 = vmatmul.bf16.vlgmr.msra.gmra.mxu0 %v12166_v25  ;;  %v9376_v25 = vor.u32 %v11210_v12, %v9375_v10  ;;  %v9336_v61 = vor.u32 %v11200_v52, %v9335_v57  ;;  %v9476_v12 = vor.u32 %v11235_v22, %v9475_v1  ;;  %v10215_v57 = vld [vmem:[%s11905_s6 + $0x1668] sm:$0xf]  ;;  %v10035_v1 = vld [vmem:[%s11905_s6 + $0x1500] sm:$0xf] }
 0x30d   : > { %6716 = vmatpush.bf16.msrb.mxu0 %v9416_v55  ;;  %6685 = vmatmul.bf16.vlgmr.msra.gmra.mxu1 %v12173_v30  ;;  %v9856_v30 = vor.u32 %v11330_v17, %v9855_v16  ;;  %v9496_v55 = vor.u32 %v11240_v58, %v9495_v53  ;;  %v11230_v16 = vld [vmem:[%s11905_s6 + $0x1088] sm:$0xf0]  ;;  %v9615_v17 = vld [vmem:[%s11905_s6 + $0x11b8] sm:$0xf]  ;;  %v10375_v58 = vld [vmem:[%s11905_s6 + $0x17a8] sm:$0xf] }
 0x30e   : > { %6729 = vmatpush.bf16.msrb.mxu1 %v9576_v19  ;;  %6698 = vmatmul.bf16.vlgmr.msra.gmra.mxu2 %v12171_v29  ;;  %v9515_v29 = vld [vmem:[%s11905_s6 + $0x10f0] sm:$0xf]  ;;  %v10195_v22 = vld [vmem:[%s11905_s6 + $0x1640] sm:$0xf] }
 0x30f   : > { %6742 = vmatpush.bf16.msrb.mxu2 %v9736_v63  ;;  %6711 = vmatmul.bf16.vlgmr.msra.gmra.mxu3 %v12177_v33  ;;  %v6465_v33 = vpop.f32.mrf.mxu0  ;;  %v9516_v48 = vor.u32 %v11245_v32, %v9515_v29  ;;  %v9315_v63 = vld [vmem:[%s11905_s6 + $0xf60] sm:$0xf]  ;;  %v11185_v29 = vld [vmem:[%s11905_s6 + $0xf20] sm:$0xf0] }
 0x310   : > { %6755 = vmatpush.bf16.msrb.mxu3 %v9896_v4  ;;  %v6466_v40 = vadd.f32 %v6465_v33, %v13591_v3  ;;  %v9655_v3 = vld [vmem:[%s11905_s6 + $0x1208] sm:$0xf]  ;;  %v9595_v33 = vld [vmem:[%s11905_s6 + $0x1190] sm:$0xf]  ;;  %v9276_v53 = vor.u32 %v11185_v29, %v9275_v11 }
 0x311   : > { %6717 = vmatpush.bf16.msrb.mxu0 %v9396_v7  ;;  %v9656_v19 = vor.u32 %v11280_v59, %v9655_v3  ;;  %v13659_v4 = vpop.f32.mrf.mxu2  ;;  %v11315_v7 = vld [vmem:[%s11905_s6 + $0x1330] sm:$0xf0]  ;;  %v11460_v3 = vld [vmem:[%s11905_s6 + $0x17b8] sm:$0xf0]  ;;  %v9436_v59 = vor.u32 %v11225_v34, %v9435_v26  ;;  %v9596_v60 = vor.u32 %v11265_v36, %v9595_v33  ;;  %v9995_v29 = vld [vmem:[%s11905_s6 + $0x14b0] sm:$0xf] }
 0x312   : > { %6730 = vmatpush.bf16.msrb.mxu1 %v9556_v9  ;;  %v13649_v56 = vadd.f32 %v6478_v47, %v6466_v40  ;;  %v13664_v6 = vpop.f32.mrf.mxu3  ;;  %v6480_v10 = vpop.f32.mrf.mxu1  ;;  %v9796_v42 = vor.u32 %v11315_v7, %v9795_v5  ;;  %v9755_v40 = vld [vmem:[%s11905_s6 + $0x12d0] sm:$0xf]  ;;  %v10355_v5 = vld [vmem:[%s11905_s6 + $0x1780] sm:$0xf]  ;;  %v11455_v7 = vld [vmem:[%s11905_s6 + $0x1790] sm:$0xf0] }
 0x313   : > { %6743 = vmatpush.bf16.msrb.mxu2 %v9716_v38  ;;  %v9316_v38 = vor.u32 %v11195_v20, %v9315_v63  ;;  %v10376_v20 = vor.u32 %v11460_v3, %v10375_v58  ;;  %v10315_v26 = vld [vmem:[%s11905_s6 + $0x1730] sm:$0xf]  ;;  %v11445_v34 = vld [vmem:[%s11905_s6 + $0x1740] sm:$0xf0]  ;;  %v11440_v58 = vld [vmem:[%s11905_s6 + $0x1718] sm:$0xf0] }
 0x314   : > { %6756 = vmatpush.bf16.msrb.mxu3 %v9876_v14  ;;  %v9295_v14 = vld [vmem:[%s11905_s6 + $0xf38] sm:$0xf]  ;;  %v10475_v33 = vld [vmem:[%s11905_s6 + $0x1870] sm:$0xf]  ;;  %v10455_v3 = vld [vmem:[%s11905_s6 + $0x1848] sm:$0xf] }
 0x315   : > { %6718 = vmatpush.bf16.msrb.mxu0 %v9376_v25  ;;  %v11270_v25 = vld [vmem:[%s11905_s6 + $0x11c8] sm:$0xf0]  ;;  %v9296_v44 = vor.u32 %v11190_v15, %v9295_v14  ;;  %v10015_v14 = vld [vmem:[%s11905_s6 + $0x14d8] sm:$0xf] }
 0x316   : > { %6731 = vmatpush.bf16.msrb.mxu1 %v9536_v21  ;;  %v9775_v21 = vld [vmem:[%s11905_s6 + $0x12f8] sm:$0xf]  ;;  %v9616_v32 = vor.u32 %v11270_v25, %v9615_v17  ;;  %v11370_v15 = vld [vmem:[%s11905_s6 + $0x14e8] sm:$0xf0] }
 0x317   : > { %6744 = vmatpush.bf16.msrb.mxu2 %v9696_v27  ;;  %v6467_v9 = vpop.f32.mrf.mxu0  ;;  %v11310_v27 = vld [vmem:[%s11905_s6 + $0x1308] sm:$0xf0]  ;;  %v10335_v17 = vld [vmem:[%s11905_s6 + $0x1758] sm:$0xf] }
 0x318   : > { %6757 = vmatpush.bf16.msrb.mxu3 %v9856_v30  ;;  %v9456_v30 = vor.u32 %v11230_v16, %v9455_v41  ;;  %v9776_v8 = vor.u32 %v11310_v27, %v9775_v21  ;;  %v10515_v9 = vld [vmem:[%s11905_s6 + $0x18c0] sm:$0xf]  ;;  %v10175_v41 = vld [vmem:[%s11905_s6 + $0x1618] sm:$0xf]  ;;  %v11410_v16 = vld [vmem:[%s11905_s6 + $0x1628] sm:$0xf0] }
 0x319   : > { %6719 = vmatpush.bf16.msrb.mxu0 %v9356_v43  ;;  %v11305_v43 = vld [vmem:[%s11905_s6 + $0x12e0] sm:$0xf0]  ;;  %v6493_v47 = vpop.f32.mrf.mxu2  ;;  %v11450_v25 = vld [vmem:[%s11905_s6 + $0x1768] sm:$0xf0]  ;;  %v10495_v21 = vld [vmem:[%s11905_s6 + $0x1898] sm:$0xf] }
 0x31a   : > { %6732 = vmatpush.bf16.msrb.mxu1 %v9516_v48  ;;  %v10055_v48 = vld [vmem:[%s11905_s6 + $0x1528] sm:$0xf]  ;;  %v6506_v52 = vpop.f32.mrf.mxu3  ;;  %v11490_v27 = vld [vmem:[%s11905_s6 + $0x18a8] sm:$0xf0]  ;;  %v10336_v11 = vor.u32 %v11450_v25, %v10335_v17  ;;  %v10316_v47 = vor.u32 %v11445_v34, %v10315_v26  ;;  %v10255_v17 = vld [vmem:[%s11905_s6 + $0x16b8] sm:$0xf] }
 0x31b   : > { %6745 = vmatpush.bf16.msrb.mxu2 %v9676_v51  ;;  %v11380_v51 = vld [vmem:[%s11905_s6 + $0x1538] sm:$0xf0]  ;;  %v11430_v25 = vld [vmem:[%s11905_s6 + $0x16c8] sm:$0xf0]  ;;  %v10235_v26 = vld [vmem:[%s11905_s6 + $0x1690] sm:$0xf] }
 0x31c   : > { %6758 = vmatpush.bf16.msrb.mxu3 %v9836_v54  ;;  %v11420_v54 = vld [vmem:[%s11905_s6 + $0x1678] sm:$0xf0]  ;;  %v11425_v34 = vld [vmem:[%s11905_s6 + $0x16a0] sm:$0xf0] }
 0x31d   : > { %6720 = vmatpush.bf16.msrb.mxu0 %v9336_v61  ;;  %v11500_v61 = vld [vmem:[%s11905_s6 + $0x18f8] sm:$0xf0]  ;;  %v10216_v63 = vor.u32 %v11420_v54, %v10215_v57  ;;  %v10135_v57 = vld [vmem:[%s11905_s6 + $0x15c8] sm:$0xf] }
 0x31e   : > { %6733 = vmatpush.bf16.msrb.mxu1 %v9496_v55  ;;  %v9756_v55 = vor.u32 %v11305_v43, %v9755_v40  ;;  %v10536_v0 = vor.u32 %v11500_v61, %v10535_v18  ;;  %v10295_v54 = vld [vmem:[%s11905_s6 + $0x1708] sm:$0xf] }
 0x31f   : > { %6746 = vmatpush.bf16.msrb.mxu2 %v9656_v19  ;;  %v10056_v19 = vor.u32 %v11380_v51, %v10055_v48  ;;  %v9975_v48 = vld [vmem:[%s11905_s6 + $0x1488] sm:$0xf]  ;;  %v11360_v51 = vld [vmem:[%s11905_s6 + $0x1498] sm:$0xf0]  ;;  %v10296_v61 = vor.u32 %v11440_v58, %v10295_v54 }
 0x320   : > { %6759 = vmatpush.bf16.msrb.mxu3 %v9816_v2  ;;  %v11375_v2 = vld [vmem:[%s11905_s6 + $0x1510] sm:$0xf0]  ;;  %v11524_v54 = vld [vmem:[%s11915_s10 + $0xb8] sm:$0xff] }
 0x321   : > { %6721 = vmatpush.bf16.msrb.mxu0 %v9316_v38  ;;  %v11495_v38 = vld [vmem:[%s11905_s6 + $0x18d0] sm:$0xf0]  ;;  %v10036_v10 = vor.u32 %v11375_v2, %v10035_v1  ;;  %v11532_v58 = vld [vmem:[%s11915_s10 + $0xf8] sm:$0xff] }
 0x322   : > { %6734 = vmatpush.bf16.msrb.mxu1 %v9476_v12  ;;  %v10196_v12 = vor.u32 %v11415_v50, %v10195_v22  ;;  %v11395_v2 = vld [vmem:[%s11905_s6 + $0x15b0] sm:$0xf0]  ;;  %v10275_v22 = vld [vmem:[%s11905_s6 + $0x16e0] sm:$0xf] }
 0x323   : > { %6747 = vmatpush.bf16.msrb.mxu2 %v9636_v13  ;;  %v10356_v13 = vor.u32 %v11455_v7, %v10355_v5  ;;  %v10435_v5 = vld [vmem:[%s11905_s6 + $0x1820] sm:$0xf]  ;;  %v11475_v7 = vld [vmem:[%s11905_s6 + $0x1830] sm:$0xf0] }
 0x324   : > { %6760 = vmatpush.bf16.msrb.mxu3 %v9796_v42  ;;  %v10516_v42 = vor.u32 %v11495_v38, %v10515_v9 }
 0x325   : > { %6722 = vmatpush.bf16.msrb.mxu0 %v9296_v44  ;;  %v10176_v44 = vor.u32 %v11410_v16, %v10175_v41  ;;  %v10095_v41 = vld [vmem:[%s11905_s6 + $0x1578] sm:$0xf]  ;;  %v11390_v16 = vld [vmem:[%s11905_s6 + $0x1588] sm:$0xf0] }
 0x326   : > { %6735 = vmatpush.bf16.msrb.mxu1 %v9456_v30  ;;  %v11365_v30 = vld [vmem:[%s11905_s6 + $0x14c0] sm:$0xf0] }
 0x327   : > { %6748 = vmatpush.bf16.msrb.mxu2 %v9616_v32  ;;  %v11405_v32 = vld [vmem:[%s11905_s6 + $0x1600] sm:$0xf0]  ;;  %v9996_v36 = vor.u32 %v11365_v30, %v9995_v29  ;;  %v9915_v29 = vld [vmem:[%s11905_s6 + $0x1410] sm:$0xf] }
 0x328   : > { %6761 = vmatpush.bf16.msrb.mxu3 %v9776_v8  ;;  %v11485_v8 = vld [vmem:[%s11905_s6 + $0x1880] sm:$0xf0] }
 0x329   : > { %6723 = vmatpush.bf16.msrb.mxu0 %v9276_v53  ;;  %v10476_v52 = vor.u32 %v11485_v8, %v10475_v33  ;;  %v11400_v53 = vld [vmem:[%s11905_s6 + $0x15d8] sm:$0xf0]  ;;  %v11345_v30 = vld [vmem:[%s11905_s6 + $0x1420] sm:$0xf0]  ;;  %v10395_v8 = vld [vmem:[%s11905_s6 + $0x17d0] sm:$0xf] }
 0x32a   : > { %6736 = vmatpush.bf16.msrb.mxu1 %v9436_v59  ;;  %v13722_v40 = vpop.f32.mrf.mxu1  ;;  %v11480_v59 = vld [vmem:[%s11905_s6 + $0x1858] sm:$0xf0]  ;;  %v10136_v18 = vor.u32 %v11400_v53, %v10135_v57  ;;  %v11516_v53 = vld [vmem:[%s11915_s10 + $0x78] sm:$0xff] }
 0x32b   : > { %6749 = vmatpush.bf16.msrb.mxu2 %v9596_v60  ;;  %v9976_v60 = vor.u32 %v11360_v51, %v9975_v48  ;;  %v10236_v51 = vor.u32 %v11425_v34, %v10235_v26  ;;  %v6820_v26 = vmax.f32 %v12668_v62, 0.0  ;;  %v11517_v34 = vld [vmem:[%s11915_s10 + $0x80] sm:$0xff] }
 0x32c   : > { %6762 = vmatpush.bf16.msrb.mxu3 %v9756_v55  ;;  %6724 = vmatmul.bf16.vlgmr.msrb.gmra.mxu0 %v12248_v23  ;;  %v10016_v23 = vor.u32 %v11370_v15, %v10015_v14  ;;  %v9955_v55 = vld [vmem:[%s11905_s6 + $0x1460] sm:$0xf]  ;;  %v9935_v14 = vld [vmem:[%s11905_s6 + $0x1438] sm:$0xf]  ;;  %v11350_v15 = vld [vmem:[%s11905_s6 + $0x1448] sm:$0xf0] }
 0x32d   : > { %6768 = vmatpush.bf16.msra.mxu0 %v10056_v19  ;;  %6737 = vmatmul.bf16.vlgmr.msrb.gmra.mxu1 %v12255_v31  ;;  %v10496_v31 = vor.u32 %v11490_v27, %v10495_v21  ;;  %v11355_v19 = vld [vmem:[%s11905_s6 + $0x1470] sm:$0xf0]  ;;  %v10415_v21 = vld [vmem:[%s11905_s6 + $0x17f8] sm:$0xf]  ;;  %v11470_v27 = vld [vmem:[%s11905_s6 + $0x1808] sm:$0xf0] }
 0x32e   : > { %6781 = vmatpush.bf16.msra.mxu1 %v10216_v63  ;;  %6750 = vmatmul.bf16.vlgmr.msrb.gmra.mxu2 %v12253_v28  ;;  %v10155_v28 = vld [vmem:[%s11905_s6 + $0x15f0] sm:$0xf]  ;;  %v10115_v63 = vld [vmem:[%s11905_s6 + $0x15a0] sm:$0xf]  ;;  %v9956_v38 = vor.u32 %v11355_v19, %v9955_v55 }
 0x32f   : > { %6794 = vmatpush.bf16.msra.mxu2 %v10376_v20  ;;  %6763 = vmatmul.bf16.vlgmr.msrb.gmra.mxu3 %v12259_v35  ;;  %v13718_v35 = vpop.f32.mrf.mxu0  ;;  %v10156_v43 = vor.u32 %v11405_v32, %v10155_v28  ;;  %v10456_v20 = vor.u32 %v11480_v59, %v10455_v3  ;;  %v10075_v28 = vld [vmem:[%s11905_s6 + $0x1550] sm:$0xf]  ;;  %v11385_v32 = vld [vmem:[%s11905_s6 + $0x1560] sm:$0xf0]  ;;  %v11507_v3 = vld [vmem:[%s11915_s10 + $0x30] sm:$0xff] }
 0x330   : > { %6807 = vmatpush.bf16.msra.mxu3 %v10536_v0  ;;  %v11435_v0 = vld [vmem:[%s11905_s6 + $0x16f0] sm:$0xf0]  ;;  %v10076_v48 = vor.u32 %v11385_v32, %v10075_v28  ;;  %v11515_v59 = vld [vmem:[%s11915_s10 + $0x70] sm:$0xff]  ;;  %v11501_v32 = vld [vmem:[%s11915_s10] sm:$0xff] }
 0x331   : > { %6769 = vmatpush.bf16.msra.mxu0 %v10036_v10  ;;  %v13735_v1 = vpop.f32.mrf.mxu2  ;;  %v11514_v55 = vld [vmem:[%s11915_s10 + $0x68] sm:$0xff] }
 0x332   : > { %6782 = vmatpush.bf16.msra.mxu1 %v10196_v12  ;;  %v13740_v50 = vpop.f32.mrf.mxu3  ;;  %v6532_v10 = vpop.f32.mrf.mxu1  ;;  %v10116_v12 = vor.u32 %v11395_v2, %v10115_v63  ;;  %v11522_v19 = vld [vmem:[%s11915_s10 + $0xa8] sm:$0xff]  ;;  %v11625_v63 = vld [vmem:[%s12371_s12] ss:$2 sm:$0x1f]  ;;  %v11513_v2 = vld [vmem:[%s11915_s10 + $0x60] sm:$0xff] }
 0x333   : > { %6795 = vmatpush.bf16.msra.mxu2 %v10356_v13  ;;  %v10276_v13 = vor.u32 %v11435_v0, %v10275_v22  ;;  %v11521_v22 = vld [vmem:[%s11915_s10 + $0xa0] sm:$0xff]  ;;  %v11512_v10 = vld [vmem:[%s11915_s10 + $0x58] sm:$0xff] }
 0x334   : > { %6808 = vmatpush.bf16.msra.mxu3 %v10516_v42  ;;  %v10436_v42 = vor.u32 %v11475_v7, %v10435_v5  ;;  %v11529_v7 = vld [vmem:[%s11915_s10 + $0xe0] sm:$0xff] }
 0x335   : > { %6770 = vmatpush.bf16.msra.mxu0 %v10016_v23  ;;  %v9936_v23 = vor.u32 %v11350_v15, %v9935_v14  ;;  %v11528_v14 = vld [vmem:[%s11915_s10 + $0xd8] sm:$0xff] }
 0x336   : > { %6783 = vmatpush.bf16.msra.mxu1 %v10176_v44  ;;  %v10096_v44 = vor.u32 %v11390_v16, %v10095_v41 }
 0x337   : > { %6796 = vmatpush.bf16.msra.mxu2 %v10336_v11  ;;  %v6519_v9 = vpop.f32.mrf.mxu0  ;;  %v10256_v11 = vor.u32 %v11430_v25, %v10255_v17  ;;  %v11511_v17 = vld [vmem:[%s11915_s10 + $0x50] sm:$0xff] }
 0x338   : > { %6809 = vmatpush.bf16.msra.mxu3 %v10496_v31  ;;  %v10416_v31 = vor.u32 %v11470_v27, %v10415_v21  ;;  %v11519_v25 = vld [vmem:[%s11915_s10 + $0x90] sm:$0xff] }
 0x339   : > { %6771 = vmatpush.bf16.msra.mxu0 %v9996_v36  ;;  %v6545_v33 = vpop.f32.mrf.mxu2  ;;  %v11465_v36 = vld [vmem:[%s11905_s6 + $0x17e0] sm:$0xf0]  ;;  %v11527_v27 = vld [vmem:[%s11915_s10 + $0xd0] sm:$0xff]  ;;  %s7335_s6 = sshll.u32 %s13855_s18, 3 }
 0x33a   : > { %6784 = vmatpush.bf16.msra.mxu1 %v10156_v43  ;;  %v6558_v43 = vpop.f32.mrf.mxu3  ;;  %v10396_v57 = vor.u32 %v11465_v36, %v10395_v8  ;;  %v6821_v33 = vmax.f32 %v13023_v24, 0.0  ;;  %v6822_v8 = vmax.f32 %v13378_v39, 0.0  ;;  %v11525_v36 = vld [vmem:[%s11915_s10 + $0xc0] sm:$0xff]  ;;  %s293_s24 = scalar_lea.vmem %s13842_s4, %s7335_s6 }
 0x33b   : > { %6797 = vmatpush.bf16.msra.mxu2 %v10316_v47  ;;  %v9916_v47 = vor.u32 %v11345_v30, %v9915_v29  ;;  %v11518_v29 = vld [vmem:[%s11915_s10 + $0x88] sm:$0xff] }
 0x33c   : > { %6810 = vmatpush.bf16.msra.mxu3 %v10476_v52  ;;  %v11508_v52 = vld [vmem:[%s11915_s10 + $0x38] sm:$0xff]  ;;  %v11526_v30 = vld [vmem:[%s11915_s10 + $0xc8] sm:$0xff] }
 0x33d   : > { %6772 = vmatpush.bf16.msra.mxu0 %v9976_v60  ;;  %v11523_v60 = vld [vmem:[%s11915_s10 + $0xb0] sm:$0xff] }
 0x33e   : > { %6785 = vmatpush.bf16.msra.mxu1 %v10136_v18  ;;  %v11531_v18 = vld [vmem:[%s11915_s10 + $0xf0] sm:$0xff] }
 0x33f   : > { %6798 = vmatpush.bf16.msra.mxu2 %v10296_v61  ;;  %v11506_v61 = vld [vmem:[%s11915_s10 + $0x28] sm:$0xff] }
 0x340   : > { %6811 = vmatpush.bf16.msra.mxu3 %v10456_v20  ;;  %v1284_v20 = vperm.slane %v11625_v63, 4 }
 0x341   : > { %6773 = vmatpush.bf16.msra.mxu0 %v9956_v38 }
 0x342   : > { %6786 = vmatpush.bf16.msra.mxu1 %v10116_v12  ;;  %v11520_v12 = vld [vmem:[%s11915_s10 + $0x98] sm:$0xff] }
 0x343   : > { %6799 = vmatpush.bf16.msra.mxu2 %v10276_v13 }
 0x344   : > { %6812 = vmatpush.bf16.msra.mxu3 %v10436_v42 }
 0x345   : > { %6774 = vmatpush.bf16.msra.mxu0 %v9936_v23 }
 0x346   : > { %6787 = vmatpush.bf16.msra.mxu1 %v10096_v44  ;;  %v11502_v44 = vld [vmem:[%s11915_s10 + $0x8] sm:$0xff] }
 0x347   : > { %6800 = vmatpush.bf16.msra.mxu2 %v10256_v11  ;;  %v11510_v11 = vld [vmem:[%s11915_s10 + $0x48] sm:$0xff] }
 0x348   : > { %6813 = vmatpush.bf16.msra.mxu3 %v10416_v31 }
 0x349   : > { %6775 = vmatpush.bf16.msra.mxu0 %v9916_v47  ;;  %v6826_v47 = vpack.c.bf16 %v6820_v26, %v6820_v26 }
 0x34a   : > { %6788 = vmatpush.bf16.msra.mxu1 %v10076_v48  ;;  %v6582_v5 = vpop.f32.mrf.mxu1  ;;  %v6828_v48 = vpack.c.bf16 %v6822_v8, %v6822_v8 }
 0x34b   : > { %6801 = vmatpush.bf16.msra.mxu2 %v10236_v51 }
 0x34c   : > { %6814 = vmatpush.bf16.msra.mxu3 %v10396_v57  ;;  %6776 = vmatmul.bf16.vlgmr.msra.gmra.mxu0 %v12331_v37  ;;  %v11530_v37 = vld [vmem:[%s11915_s10 + $0xe8] sm:$0xff] }
 0x34d   : > { %7151 = vmatpush.bf16.msrb.mxu0 %v11508_v52  ;;  %6789 = vmatmul.bf16.vlgmr.msra.gmra.mxu1 %v12338_v46  ;;  %v6492_v46 = vadd.f32 %v13659_v4, %v13649_v56  ;;  %v11504_v56 = vld [vmem:[%s11915_s10 + $0x18] sm:$0xff] }
 0x34e   : > { %7164 = vmatpush.bf16.msrb.mxu1 %v11516_v53  ;;  %6802 = vmatmul.bf16.vlgmr.msra.gmra.mxu2 %v12336_v45  ;;  %v11505_v45 = vld [vmem:[%s11915_s10 + $0x20] sm:$0xff] }
 0x34f   : > { %7177 = vmatpush.bf16.msrb.mxu2 %v11524_v54  ;;  %6815 = vmatmul.bf16.vlgmr.msra.gmra.mxu3 %v12342_v49  ;;  %v6569_v49 = vpop.f32.mrf.mxu0  ;;  %v6505_v9 = vadd.f32 %v13664_v6, %v6492_v46  ;;  %v11503_v6 = vld [vmem:[%s11915_s10 + $0x10] sm:$0xff] }
 0x350   : > { %7190 = vmatpush.bf16.msrb.mxu3 %v11532_v58  ;;  %v6570_v0 = vadd.f32 %v6569_v49, %v1284_v20  ;;  %v11538_v49 = vld [vmem:[%s11915_s10 + $0x128] sm:$0xff] }
 0x351   : > { %7152 = vmatpush.bf16.msrb.mxu0 %v11507_v3  ;;  %v6518_v4 = vadd.f32 %v13718_v35, %v6505_v9  ;;  %v6595_v13 = vpop.f32.mrf.mxu2 }
 0x352   : > { %7165 = vmatpush.bf16.msrb.mxu1 %v11515_v59  ;;  %v6583_v38 = vadd.f32 %v6582_v5, %v6570_v0  ;;  %v6608_v41 = vpop.f32.mrf.mxu3  ;;  %v6584_v21 = vpop.f32.mrf.mxu1  ;;  %v11537_v0 = vld [vmem:[%s11915_s10 + $0x120] sm:$0xff]  ;;  %v11536_v5 = vld [vmem:[%s11915_s10 + $0x118] sm:$0xff] }
 0x353   : > { %7178 = vmatpush.bf16.msrb.mxu2 %v11523_v60  ;;  %v6531_v35 = vadd.f32 %v13722_v40, %v6518_v4 }
 0x354   : > { %7191 = vmatpush.bf16.msrb.mxu3 %v11531_v18  ;;  %v6596_v15 = vadd.f32 %v6595_v13, %v6583_v38  ;;  %v11535_v38 = vld [vmem:[%s11915_s10 + $0x110] sm:$0xff] }
 0x355   : > { %7153 = vmatpush.bf16.msrb.mxu0 %v11506_v61  ;;  %v6544_v23 = vadd.f32 %v13735_v1, %v6531_v35  ;;  %v11509_v1 = vld [vmem:[%s11915_s10 + $0x40] sm:$0xff] }
 0x356   : > { %7166 = vmatpush.bf16.msrb.mxu1 %v11514_v55  ;;  %v6609_v42 = vadd.f32 %v6608_v41, %v6596_v15  ;;  %v11533_v15 = vld [vmem:[%s11915_s10 + $0x100] sm:$0xff] }
 0x357   : > { %7179 = vmatpush.bf16.msrb.mxu2 %v11522_v19  ;;  %v6571_v16 = vpop.f32.mrf.mxu0  ;;  %v6557_v31 = vadd.f32 %v13740_v50, %v6544_v23  ;;  %v6827_v50 = vpack.c.bf16 %v6821_v33, %v6821_v33 }
 0x358   : > { %7192 = vmatpush.bf16.msrb.mxu3 %v11530_v37  ;;  %v11540_v37 = vld [vmem:[%s11915_s10 + $0x138] sm:$0xff] }
 0x359   : > { %7154 = vmatpush.bf16.msrb.mxu0 %v11505_v45  ;;  %v6597_v40 = vpop.f32.mrf.mxu2  ;;  %v6823_v43 = vmax.f32 %v6557_v31, 0.0  ;;  %v11539_v45 = vld [vmem:[%s11915_s10 + $0x130] sm:$0xff] }
 0x35a   : > { %7167 = vmatpush.bf16.msrb.mxu1 %v11513_v2  ;;  %v6610_v28 = vpop.f32.mrf.mxu3 }
 0x35b   : > { %7180 = vmatpush.bf16.msrb.mxu2 %v11521_v22  ;;  %v6829_v51 = vpack.c.bf16 %v6823_v43, %v6823_v43 }
 0x35c   : > { %7193 = vmatpush.bf16.msrb.mxu3 %v11529_v7 }
 0x35d   : > { %7155 = vmatpush.bf16.msrb.mxu0 %v11504_v56  ;;  %v11534_v56 = vld [vmem:[%s11915_s10 + $0x108] sm:$0xff] }
 0x35e   : > { %7168 = vmatpush.bf16.msrb.mxu1 %v11512_v10 }
 0x35f   : > { %7181 = vmatpush.bf16.msrb.mxu2 %v11520_v12 }
 0x360   : > { %7194 = vmatpush.bf16.msrb.mxu3 %v11528_v14 }
 0x361   : > { %7156 = vmatpush.bf16.msrb.mxu0 %v11503_v6 }
 0x362   : > { %7169 = vmatpush.bf16.msrb.mxu1 %v11511_v17 }
 0x363   : > { %7182 = vmatpush.bf16.msrb.mxu2 %v11519_v25 }
 0x364   : > { %7195 = vmatpush.bf16.msrb.mxu3 %v11527_v27 }
 0x365   : > { %7157 = vmatpush.bf16.msrb.mxu0 %v11502_v44 }
 0x366   : > { %7170 = vmatpush.bf16.msrb.mxu1 %v11510_v11 }
 0x367   : > { %7183 = vmatpush.bf16.msrb.mxu2 %v11518_v29 }
 0x368   : > { %7196 = vmatpush.bf16.msrb.mxu3 %v11526_v30 }
 0x369   : > { %7158 = vmatpush.bf16.msrb.mxu0 %v11501_v32  ;;  %v6621_v62 = vpop.f32.mrf.mxu0 }
 0x36a   : > { %7171 = vmatpush.bf16.msrb.mxu1 %v11509_v1  ;;  %v6622_v57 = vadd.f32 %v6621_v62, %v6609_v42  ;;  %v6634_v24 = vpop.f32.mrf.mxu1 }
 0x36b   : > { %7184 = vmatpush.bf16.msrb.mxu2 %v11517_v34 }
 0x36c   : > { %7197 = vmatpush.bf16.msrb.mxu3 %v11525_v36  ;;  %7159 = vmatmul.bf16.vlgmr.msrb.gmra.mxu0 %v6826_v47  ;;  %v6635_v39 = vadd.f32 %v6634_v24, %v6622_v57 }
 0x36d   : > { %7172 = vmatmul.bf16.vlgmr.msrb.gmra.mxu1 %v6827_v50  ;;  %7203 = vmatpush.bf16.msra.mxu0 %v11540_v37 }
 0x36e   : > { %7185 = vmatmul.bf16.vlgmr.msrb.gmra.mxu2 %v6828_v48 }
 0x36f   : > { %7198 = vmatmul.bf16.vlgmr.msrb.gmra.mxu3 %v6829_v51 }
 0x371   : > { %v6647_v52 = vpop.f32.mrf.mxu2  ;;  %v6623_v3 = vpop.f32.mrf.mxu0  ;;  %7204 = vmatpush.bf16.msra.mxu0 %v11539_v45 }
 0x372   : > { %v6648_v53 = vadd.f32 %v6647_v52, %v6635_v39  ;;  %v6660_v54 = vpop.f32.mrf.mxu3  ;;  %v6636_v59 = vpop.f32.mrf.mxu1 }
 0x374   : > { %v6661_v58 = vadd.f32 %v6660_v54, %v6648_v53 }
 0x375   : > { %7205 = vmatpush.bf16.msra.mxu0 %v11538_v49 }
 0x379   : > { %v6649_v60 = vpop.f32.mrf.mxu2  ;;  %7206 = vmatpush.bf16.msra.mxu0 %v11537_v0 }
 0x37a   : > { %v6662_v18 = vpop.f32.mrf.mxu3 }
 0x37d   : > { %7207 = vmatpush.bf16.msra.mxu0 %v11536_v5 }
 0x381   : > { %7208 = vmatpush.bf16.msra.mxu0 %v11535_v38 }
 0x385   : > { %7209 = vmatpush.bf16.msra.mxu0 %v11534_v56 }
 0x389   : > { %v6673_v61 = vpop.f32.mrf.mxu0  ;;  %7210 = vmatpush.bf16.msra.mxu0 %v11533_v15 }
 0x38a   : > { %v6686_v55 = vpop.f32.mrf.mxu1  ;;  %v6674_v10 = vadd.f32 %v6673_v61, %v6661_v58 }
 0x38c   : > { %v6687_v41 = vadd.f32 %v6686_v55, %v6674_v10 }
 0x391   : > { %v6699_v19 = vpop.f32.mrf.mxu2  ;;  %v6675_v20 = vpop.f32.mrf.mxu0 }
 0x392   : > { %v6712_v63 = vpop.f32.mrf.mxu3  ;;  %v6688_v46 = vpop.f32.mrf.mxu1  ;;  %v6700_v6 = vadd.f32 %v6699_v19, %v6687_v41 }
 0x394   : > { %v6713_v35 = vadd.f32 %v6712_v63, %v6700_v6 }
 0x399   : > { %v6701_v2 = vpop.f32.mrf.mxu2 }
 0x39a   : > { %v6714_v22 = vpop.f32.mrf.mxu3 }
 0x3a9   : > { %v6725_v7 = vpop.f32.mrf.mxu0 }
 0x3aa   : > { %v6738_v9 = vpop.f32.mrf.mxu1  ;;  %v6726_v17 = vadd.f32 %v6725_v7, %v6713_v35 }
 0x3ac   : > { %v6739_v25 = vadd.f32 %v6738_v9, %v6726_v17 }
 0x3b1   : > { %v6751_v4 = vpop.f32.mrf.mxu2  ;;  %v6727_v13 = vpop.f32.mrf.mxu0 }
 0x3b2   : > { %v6764_v12 = vpop.f32.mrf.mxu3  ;;  %v6740_v14 = vpop.f32.mrf.mxu1  ;;  %v6752_v21 = vadd.f32 %v6751_v4, %v6739_v25 }
 0x3b4   : > { %v6765_v27 = vadd.f32 %v6764_v12, %v6752_v21 }
 0x3b9   : > { %v6753_v42 = vpop.f32.mrf.mxu2 }
 0x3ba   : > { %v6766_v16 = vpop.f32.mrf.mxu3 }
 0x3c9   : > { %v6777_v23 = vpop.f32.mrf.mxu0 }
 0x3ca   : > { %v6790_v44 = vpop.f32.mrf.mxu1  ;;  %v6778_v11 = vadd.f32 %v6777_v23, %v6765_v27 }
 0x3cc   : > { %v6791_v29 = vadd.f32 %v6790_v44, %v6778_v11 }
 0x3d1   : > { %v6803_v40 = vpop.f32.mrf.mxu2  ;;  %v6779_v31 = vpop.f32.mrf.mxu0 }
 0x3d2   : > { %v6804_v30 = vadd.f32 %v6803_v40, %v6791_v29  ;;  %v6816_v28 = vpop.f32.mrf.mxu3  ;;  %v6792_v32 = vpop.f32.mrf.mxu1 }
 0x3d4   : > { %v6817_v26 = vadd.f32 %v6816_v28, %v6804_v30 }
 0x3d6   : > { %v6824_v1 = vmax.f32 %v6817_v26, 0.0 }
 0x3d8   : > { %v6830_v34 = vpack.c.bf16 %v6824_v1, %v6824_v1 }
 0x3d9   : > { %v6805_v33 = vpop.f32.mrf.mxu2 }
 0x3da   : > { %v6818_v8 = vpop.f32.mrf.mxu3  ;;  %7211 = vmatmul.bf16.vlgmr.msra.gmra.mxu0 %v6830_v34 }
 0x3e9   : > { %v7160_v36 = vpop.f32.mrf.mxu0 }
 0x3ea   : > { %v7173_v43 = vpop.f32.mrf.mxu1 }
 0x3eb   : > { %v7174_v47 = vadd.f32 %v7173_v43, %v7160_v36 }
 0x3f1   : > { %v7186_v50 = vpop.f32.mrf.mxu2  ;;  %v7162_v62 = vpop.f32.mrf.mxu0 }
 0x3f2   : > { %v7187_v48 = vadd.f32 %v7186_v50, %v7174_v47  ;;  %v7199_v51 = vpop.f32.mrf.mxu3  ;;  %v7175_v57 = vpop.f32.mrf.mxu1 }
 0x3f4   : > { %v7200_v24 = vadd.f32 %v7199_v51, %v7187_v48 }
 0x3f9   : > { %v7188_v39 = vpop.f32.mrf.mxu2 }
 0x3fa   : > { %v7201_v52 = vpop.f32.mrf.mxu3 }
 0x457   : > { %v7212_v53 = vpop.f32.mrf.mxu0 }
 0x458   : > { %v7213_v54 = vadd.f32 %v7212_v53, %v7200_v24 }
 0x45a   : > { %7217 = vst [vmem:[%s293_s24] sm:$0xff] %v7213_v54 }
 0x45f   : > { %v7214_v58 = vpop.f32.mrf.mxu0 }
 0x460 PF: > { %s18_s20 = sadd.s32 1, %s11774_s20   ;;  %s13847_s15 = smov %s11758_s16 }
 0x461   : > { %p15_p2 = scmp.ge.s32.totalorder %s18_s20, 4   ;;  %s13848_s16 = smov %s11762_s17 }
 0x462   : > { %s13849_s17 = smov %s11851_s27  ;;  %s13850_s18 = smov %s11770_s19 }
 0x463   : > { %s13851_s19 = smov %s13853_s21  ;;  %17 = sbr.rel (!%p15_p2) target bundleno = 5 (0x5), region = 96 }
 0x468   :  { %7237 = vsyncpa [#allocation3], 1 }
 0x469   :  { %7239 = vsyncpa [#allocation3 + $0x1], 1 }
 0x46a   :  { %7240 = vsyncpa [#allocation5], 1 }

</bundles_post_ra>
